<compile_context>
chip_gen: v6e
topology: v6e:2x2x1
jax: 0.10.0
libtpu: 0.0.40
codegen_flags: <defaults>
</compile_context>

<pallas_src>
import functools

import jax
import jax.numpy as jnp
import numpy as np
from jax.experimental import pallas as pl
from jax.experimental.pallas import tpu as pltpu


# ----------------------------------------------------------------------------
# Generation-aware VMEM budgets
# ----------------------------------------------------------------------------
def _tpu_vmem_capacity():
    try:
        info = pltpu.get_tpu_info()
        cap = getattr(info, "vmem_capacity_bytes", None)
        if cap:
            return int(cap)
    except Exception:
        pass
    return 64 * 1024 * 1024          # conservative default (v7x per-core VMEM)


_VMEM_CAP = _tpu_vmem_capacity()
_VMEM_LIMIT = int(min(_VMEM_CAP * 3 // 4, 100 * 1024 * 1024))   # 48MB v7x, 96MB v5e/v6e
_TILE_BUDGET = _VMEM_LIMIT // 3


def _cparams(dimension_semantics):
    return pltpu.CompilerParams(dimension_semantics=dimension_semantics,
                                vmem_limit_bytes=_VMEM_LIMIT)


def _round_up(x, m):
    return ((x + m - 1) // m) * m


def _pick_tile_m(m, cin, cout, budget_bytes=None, max_tile=2048):
    """Row tile (multiple of 32, bf16-friendly) from the VMEM budget; capped so the
    row grid has >= 2 steps (pipelining / v7x 2-TC megacore)."""
    if budget_bytes is None:
        budget_bytes = _TILE_BUDGET
    per_row = 2 * 2 * (cin + cout) + 8 * cout      # dbl-buffered bf16 in/out + f32 temps
    t = min(max_tile, max(32, budget_bytes // max(per_row, 1)))
    t = min(t, _round_up((m + 1) // 2, 32))
    return max(32, (t // 32) * 32)


def _pick_strip_rows(h, w, c, c4, n_imgs, budget_bytes=None):
    """Rows per H-strip for the fused pw1+dw kernel.  Must divide H exactly (halo
    logic assumes full strips); prefer enough strips that n_imgs * n_strips >= 8."""
    if budget_bytes is None:
        budget_bytes = _TILE_BUDGET
    per_row = 6 * w * c4 * 4 + 2 * 2 * w * (c + c4)   # ~6 f32 strip temps + bf16 I/O
    cap = max(1, budget_bytes // max(per_row, 1))
    divs = [d for d in range(1, h + 1) if h % d == 0]
    target_steps = max(2, 8 // max(n_imgs, 1))
    good = [d for d in divs if d <= cap and h // d >= target_steps]
    if good:
        return max(good)
    ok = [d for d in divs if d <= cap]
    return max(ok) if ok else 1      # worst case 1-row strips (still correct)


# ----------------------------------------------------------------------------
# cv0 + cv1 fused: single read of x, one matmul with [w0 | w1], bf16 outputs
# ----------------------------------------------------------------------------
def _pw_split_kernel(x_ref, w_ref, shift_ref, o0_ref, o1_ref, *, c):
    y = jnp.dot(x_ref[...], w_ref[...], preferred_element_type=jnp.float32)
    y = y + shift_ref[...]
    y = y * jax.nn.sigmoid(y)                       # SiLU in f32
    o0_ref[...] = y[:, :c].astype(o0_ref.dtype)
    o1_ref[...] = y[:, c:].astype(o1_ref.dtype)


def pw_split_silu(x2, w01, shift01, c, out_dtype=jnp.bfloat16):
    m, cin = x2.shape
    c2w = w01.shape[1]                              # 2c
    tm = _pick_tile_m(m, cin, c2w)
    y0, y1 = pl.pallas_call(
        functools.partial(_pw_split_kernel, c=c),
        out_shape=(jax.ShapeDtypeStruct((m, c), out_dtype),
                   jax.ShapeDtypeStruct((m, c), out_dtype)),
        grid=(pl.cdiv(m, tm),),
        in_specs=[
            pl.BlockSpec((tm, cin), lambda i: (i, 0)),
            pl.BlockSpec((cin, c2w), lambda i: (0, 0)),
            pl.BlockSpec((1, c2w), lambda i: (0, 0)),
        ],
        out_specs=(pl.BlockSpec((tm, c), lambda i: (i, 0)),
                   pl.BlockSpec((tm, c), lambda i: (i, 0))),
        compiler_params=_cparams(("parallel",)),
    )(x2, w01, shift01.reshape(1, c2w))
    return y0, y1


# ----------------------------------------------------------------------------
# Fused conv_pw_1 (1x1 c->4c, BN, SiLU) + 3x3 depthwise (BN, SiLU), H-tiled with
# a 1-row halo.  Also emits per-strip channel sums for the EffectiveSE mean.
# ----------------------------------------------------------------------------
def _pw1_dw_kernel(x_ref, top_ref, bot_ref, w1_ref, s1_ref, wd_ref, sd_ref,
                   o_ref, sum_ref, *, th, width, c_mid):
    s = pl.program_id(1)
    last = pl.num_programs(1) - 1
    c_in = x_ref.shape[-1]
    w1 = w1_ref[...]                                # (c, 4c) bf16, BN scale folded
    s1 = s1_ref[...]                                # (1, 4c) f32

    def pw1(rows, nrows):                           # 1x1 conv + BN shift + SiLU
        z = jnp.dot(rows.reshape(nrows * width, c_in), w1,
                    preferred_element_type=jnp.float32) + s1
        z = z * jax.nn.sigmoid(z)
        return z.reshape(nrows, width, c_mid)

    t_mid = pw1(x_ref[0], th)                       # (th, W, 4c) f32, never hits HBM
    t_top = pw1(top_ref[0], 1) * (s > 0).astype(jnp.float32)      # zero at image top
    t_bot = pw1(bot_ref[0], 1) * (s < last).astype(jnp.float32)   # zero at image bottom
    t = jnp.concatenate([t_top, t_mid, t_bot], axis=0)            # (th+2, W, 4c)

    # column taps: value at w-1 / w+1 with zero padding (single zero-column concat)
    zcol = jnp.zeros((th + 2, 1, c_mid), jnp.float32)
    left = jnp.concatenate([zcol, t[:, :width - 1, :]], axis=1)
    right = jnp.concatenate([t[:, 1:, :], zcol], axis=1)
    cols = (left, t, right)

    wd = wd_ref[...]                                # (3, 3, 4c) f32, BN scale folded
    acc = jnp.zeros((th, width, c_mid), jnp.float32)
    for ky in range(3):
        for kx in range(3):
            acc = acc + cols[kx][ky:ky + th] * wd[ky, kx][None, None, :]
    acc = acc + sd_ref[...][None]                   # folded BN shift (1,1,4c)
    act = acc * jax.nn.sigmoid(acc)                 # SiLU in f32
    o_ref[...] = act[None].astype(o_ref.dtype)
    ssum = jnp.sum(act, axis=(0, 1))                # (4c,) per-strip channel sums
    sum_ref[...] = jnp.broadcast_to(ssum[None, None, None, :], sum_ref.shape)


def pw1_dw3x3_silu(cur4, w1, s1, wd, sd, out_dtype=jnp.bfloat16):
    """cur4: (N,H,W,c) bf16; w1: (c,4c) bf16; s1,(4c,) f32; wd: (3,3,4c) f32; sd: (4c,) f32."""
    n, h, w, c = cur4.shape
    c_mid = w1.shape[1]
    th = _pick_strip_rows(h, w, c, c_mid, n)
    ns = h // th
    d, sums = pl.pallas_call(
        functools.partial(_pw1_dw_kernel, th=th, width=w, c_mid=c_mid),
        out_shape=(jax.ShapeDtypeStruct((n, h, w, c_mid), out_dtype),
                   jax.ShapeDtypeStruct((n, ns, 8, c_mid), jnp.float32)),
        grid=(n, ns),
        in_specs=[
            pl.BlockSpec((1, th, w, c), lambda b, s: (b, s, 0, 0)),
            # 1-row halos via clamped element-row index maps (block size 1 on H)
            pl.BlockSpec((1, 1, w, c),
                         lambda b, s: (b, jnp.maximum(s * th - 1, 0), 0, 0)),
            pl.BlockSpec((1, 1, w, c),
                         lambda b, s: (b, jnp.minimum(s * th + th, h - 1), 0, 0)),
            pl.BlockSpec((c, c_mid), lambda b, s: (0, 0)),
            pl.BlockSpec((1, c_mid), lambda b, s: (0, 0)),
            pl.BlockSpec((3, 3, c_mid), lambda b, s: (0, 0, 0)),
            pl.BlockSpec((1, c_mid), lambda b, s: (0, 0)),
        ],
        out_specs=(pl.BlockSpec((1, th, w, c_mid), lambda b, s: (b, s, 0, 0)),
                   pl.BlockSpec((1, 1, 8, c_mid), lambda b, s: (b, s, 0, 0))),
        compiler_params=_cparams(("parallel", "parallel")),
    )(cur4, cur4, cur4, w1, s1.reshape(1, c_mid), wd, sd.reshape(1, c_mid))
    sums_total = sums[:, :, 0, :].sum(axis=1)       # (N, 4c) f32
    return d, sums_total


# ----------------------------------------------------------------------------
# Fused: per-image SE gate multiply + conv1 (1x1 + folded BN, no act) + residual
# ----------------------------------------------------------------------------
def _gate_pw_kernel(x_ref, g_ref, w_ref, shift_ref, *rest, add_residual):
    if add_residual:
        r_ref, o_ref = rest
    else:
        (o_ref,) = rest
    xg = x_ref[0] * g_ref[0].astype(x_ref.dtype)    # (tp, 4c) bf16 * (1, 4c)
    y = jnp.dot(xg, w_ref[...], preferred_element_type=jnp.float32) + shift_ref[...]
    if add_residual:
        y = y + r_ref[0].astype(jnp.float32)
    o_ref[...] = y[None].astype(o_ref.dtype)


def gate_pw(x3, gate3, w, shift, residual=None, out_dtype=jnp.bfloat16):
    """x3: (N, H*W, 4c) bf16; gate3: (N, 1, 4c) f32; w: (4c, c) bf16 BN-scale folded."""
    n, p, c_mid = x3.shape
    cout = w.shape[1]
    tp = _pick_tile_m(p, c_mid, cout, max_tile=1024)
    in_specs = [
        pl.BlockSpec((1, tp, c_mid), lambda b, i: (b, i, 0)),
        pl.BlockSpec((1, 1, c_mid), lambda b, i: (b, 0, 0)),
        pl.BlockSpec((c_mid, cout), lambda b, i: (0, 0)),
        pl.BlockSpec((1, cout), lambda b, i: (0, 0)),
    ]
    args = [x3, gate3, w, shift.reshape(1, cout)]
    if residual is not None:
        in_specs.append(pl.BlockSpec((1, tp, cout), lambda b, i: (b, i, 0)))
        args.append(residual)
    out = pl.pallas_call(
        functools.partial(_gate_pw_kernel, add_residual=residual is not None),
        out_shape=jax.ShapeDtypeStruct((n, p, cout), out_dtype),
        grid=(n, pl.cdiv(p, tp)),
        in_specs=in_specs,
        out_specs=pl.BlockSpec((1, tp, cout), lambda b, i: (b, i, 0)),
        compiler_params=_cparams(("parallel", "parallel")),
    )(*args)
    return out


# ----------------------------------------------------------------------------
# cv2 fused with the channel concat: one wide-K dot on an in-VMEM concat per tile
# ----------------------------------------------------------------------------
def _cat_pw_silu_kernel(*refs, num_in):
    x_refs = refs[:num_in]
    w_ref, shift_ref, o_ref = refs[num_in], refs[num_in + 1], refs[num_in + 2]
    xcat = jnp.concatenate([r[...] for r in x_refs], axis=-1)   # (tm, (2+n)c) bf16
    y = jnp.dot(xcat, w_ref[...], preferred_element_type=jnp.float32) + shift_ref[...]
    y = y * jax.nn.sigmoid(y)                       # SiLU
    o_ref[...] = y.astype(o_ref.dtype)


def cat_pw_silu(xs, w_full, shift, out_dtype=jnp.float32):
    m = xs[0].shape[0]
    cin_total, cout = w_full.shape
    tm = _pick_tile_m(m, cin_total, cout)
    in_specs = [pl.BlockSpec((tm, x.shape[1]), lambda i: (i, 0)) for x in xs]
    in_specs.append(pl.BlockSpec((cin_total, cout), lambda i: (0, 0)))
    in_specs.append(pl.BlockSpec((1, cout), lambda i: (0, 0)))
    out = pl.pallas_call(
        functools.partial(_cat_pw_silu_kernel, num_in=len(xs)),
        out_shape=jax.ShapeDtypeStruct((m, cout), out_dtype),
        grid=(pl.cdiv(m, tm),),
        in_specs=in_specs,
        out_specs=pl.BlockSpec((tm, cout), lambda i: (i, 0)),
        compiler_params=_cparams(("parallel",)),
    )(*xs, w_full, shift.reshape(1, cout))
    return out


# ----------------------------------------------------------------------------
# Synthetic (deterministic) parameters: Conv weights + eval-mode BN (scale, shift)
# ----------------------------------------------------------------------------
def init_params(key, c1, c2, n=1, e=0.5, mbconv_e=4):
    c = int(c2 * e)
    c_mid = c * mbconv_e
    keys = iter(jax.random.split(key, 16 + 16 * n))
    nk = lambda: next(keys)

    def conv_bn(cin, cout):
        return dict(
            w=jax.random.normal(nk(), (cin, cout), jnp.float32) * (cin ** -0.5),
            scale=1.0 + 0.1 * jax.random.normal(nk(), (cout,), jnp.float32),
            shift=0.1 * jax.random.normal(nk(), (cout,), jnp.float32),
        )

    params = dict(cv0=conv_bn(c1, c), cv1=conv_bn(c1, c),
                  cv2=conv_bn((2 + n) * c, c2), blocks=[])
    for _ in range(n):
        params["blocks"].append(dict(
            pw1_w=jax.random.normal(nk(), (c, c_mid), jnp.float32) * (c ** -0.5),
            pw1_scale=1.0 + 0.1 * jax.random.normal(nk(), (c_mid,), jnp.float32),
            pw1_shift=0.1 * jax.random.normal(nk(), (c_mid,), jnp.float32),
            dw_w=jax.random.normal(nk(), (3, 3, c_mid), jnp.float32) / 3.0,
            dw_scale=1.0 + 0.1 * jax.random.normal(nk(), (c_mid,), jnp.float32),
            dw_shift=0.1 * jax.random.normal(nk(), (c_mid,), jnp.float32),
            fc_w=jax.random.normal(nk(), (c_mid, c_mid), jnp.float32) * (c_mid ** -0.5),
            fc_b=0.1 * jax.random.normal(nk(), (c_mid,), jnp.float32),
            c1_w=jax.random.normal(nk(), (c_mid, c), jnp.float32) * (c_mid ** -0.5),
            c1_scale=1.0 + 0.1 * jax.random.normal(nk(), (c,), jnp.float32),
            c1_shift=0.1 * jax.random.normal(nk(), (c,), jnp.float32),
        ))
    return params


def prepare_params(p):
    """Fold BN scales into the conv weights and cast matmul weights to bf16 ONCE."""
    bf = jnp.bfloat16
    pp = dict(
        cv01_w=jnp.concatenate([p["cv0"]["w"] * p["cv0"]["scale"][None, :],
                                p["cv1"]["w"] * p["cv1"]["scale"][None, :]],
                               axis=1).astype(bf),
        cv01_s=jnp.concatenate([p["cv0"]["shift"], p["cv1"]["shift"]]),
        cv2_w=(p["cv2"]["w"] * p["cv2"]["scale"][None, :]).astype(bf),
        cv2_s=p["cv2"]["shift"],
        blocks=[],
    )
    for blk in p["blocks"]:
        pp["blocks"].append(dict(
            pw1_w=(blk["pw1_w"] * blk["pw1_scale"][None, :]).astype(bf),
            pw1_s=blk["pw1_shift"],
            dw_w=blk["dw_w"] * blk["dw_scale"][None, None, :],     # f32 (VPU taps)
            dw_s=blk["dw_shift"],
            fc_w=blk["fc_w"], fc_b=blk["fc_b"],
            c1_w=(blk["c1_w"] * blk["c1_scale"][None, :]).astype(bf),
            c1_s=blk["c1_shift"],
        ))
    return pp


# ----------------------------------------------------------------------------
# Full forward (eval mode).  Public interface matches PyTorch (NCHW in / out).
# ----------------------------------------------------------------------------
def c2f_embc_v2(x_nchw, pp, shortcut=False):
    n, c1, h, w = x_nchw.shape
    c = pp["cv01_w"].shape[1] // 2
    m = n * h * w
    # TODO(synk): fold the NCHW<->NHWC boundary transposes into the first/last
    # kernels (strided read / in-kernel transpose) when this block is embedded in
    # an NCHW network; kept as XLA ops here.
    x2 = jnp.transpose(x_nchw, (0, 2, 3, 1)).reshape(m, c1).astype(jnp.bfloat16)

    # cv0 + cv1 fused (single read of x)
    y0, y1 = pw_split_silu(x2, pp["cv01_w"], pp["cv01_s"], c)

    ys = [y0, y1]
    cur = y1
    for blk in pp["blocks"]:
        c_mid = blk["pw1_w"].shape[1]
        # conv_pw_1 + conv_dw_1 fused, H-tiled; per-strip channel sums for the SE
        d, sums = pw1_dw3x3_silu(cur.reshape(n, h, w, c),
                                 blk["pw1_w"], blk["pw1_s"],
                                 blk["dw_w"], blk["dw_s"])
        # EffectiveSE gate (tiny per-image math in plain JAX)
        mean = sums / float(h * w)                               # (N, 4c) f32
        se = mean @ blk["fc_w"] + blk["fc_b"]
        gate = jnp.clip(se / 6.0 + 0.5, 0.0, 1.0)                # hard_sigmoid
        # gate-mul + conv1 (1x1 + BN, no act) + optional residual, fused
        out3 = gate_pw(d.reshape(n, h * w, c_mid), gate.reshape(n, 1, c_mid),
                       blk["c1_w"], blk["c1_s"],
                       residual=cur.reshape(n, h * w, c) if shortcut else None)
        cur = out3.reshape(m, c)
        ys.append(cur)

    # cv2 over the channel concat (in-VMEM concat, single wide-K dot, f32 output)
    out = cat_pw_silu(ys, pp["cv2_w"], pp["cv2_s"], out_dtype=jnp.float32)
    out = out.reshape(n, h, w, -1)
    return jnp.transpose(out, (0, 3, 1, 2))                      # NHWC -> NCHW
    # TODO(synk): training-mode BatchNorm (batch stats) and Dropout randomness are
    # not implemented; eval-mode BN is folded exactly and dropout is the identity.


# ----------------------------------------------------------------------------
# Pure-JAX/XLA reference of the same module (numerical self-check, f32)
# ----------------------------------------------------------------------------
def _ref_forward(x_nchw, p, shortcut=False):
    hp = jax.lax.Precision.HIGHEST
    silu = lambda v: v * jax.nn.sigmoid(v)
    hsig = lambda v: jnp.clip(v / 6.0 + 0.5, 0.0, 1.0)

    def conv1x1_bn(x, w, scale, shift, act):
        y = jnp.einsum("nchw,cd->ndhw", x, w, precision=hp)
        y = y * scale[None, :, None, None] + shift[None, :, None, None]
        return silu(y) if act else y

    def dw3x3_bn_silu(x, w, scale, shift):
        ch = x.shape[1]
        k = jnp.transpose(w, (2, 0, 1))[:, None, :, :]           # (C, 1, 3, 3)
        y = jax.lax.conv_general_dilated(
            x, k, window_strides=(1, 1), padding=((1, 1), (1, 1)),
            dimension_numbers=("NCHW", "OIHW", "NCHW"),
            feature_group_count=ch, precision=hp)
        y = y * scale[None, :, None, None] + shift[None, :, None, None]
        return silu(y)

    y0 = conv1x1_bn(x_nchw, p["cv0"]["w"], p["cv0"]["scale"], p["cv0"]["shift"], True)
    y1 = conv1x1_bn(x_nchw, p["cv1"]["w"], p["cv1"]["scale"], p["cv1"]["shift"], True)
    ys = [y0, y1]
    cur = y1
    for blk in p["blocks"]:
        t = conv1x1_bn(cur, blk["pw1_w"], blk["pw1_scale"], blk["pw1_shift"], True)
        t = dw3x3_bn_silu(t, blk["dw_w"], blk["dw_scale"], blk["dw_shift"])
        se = jnp.mean(t, axis=(2, 3)) @ blk["fc_w"] + blk["fc_b"]
        t = t * hsig(se)[:, :, None, None]
        t = conv1x1_bn(t, blk["c1_w"], blk["c1_scale"], blk["c1_shift"], False)
        cur = cur + t if shortcut else t
        ys.append(cur)
    ycat = jnp.concatenate(ys, axis=1)
    return conv1x1_bn(ycat, p["cv2"]["w"], p["cv2"]["scale"], p["cv2"]["shift"], True)


if __name__ == "__main__":
    key = jax.random.PRNGKey(0)
    kx, kp = jax.random.split(key)
    c1, c2, n_blocks = 4, 4, 1
    N, H, W = 2, 16, 16
    x = jax.random.normal(kx, (N, c1, H, W), jnp.float32)        # NCHW, like PyTorch
    params = init_params(kp, c1, c2, n=n_blocks)
    prepared = prepare_params(params)                            # BN fold + bf16 cast, once

    fwd = jax.jit(functools.partial(c2f_embc_v2, shortcut=False))
    out = fwd(x, prepared)
    jax.block_until_ready(out)
    assert out.shape == (N, c2, H, W) and out.dtype == jnp.float32

    # Numerical self-check vs. a pure-XLA f32 reference of the same module.
    # Tolerance covers bf16 activation/weight storage between kernels.
    ref = _ref_forward(x, params, shortcut=False)
    np.testing.assert_allclose(np.asarray(out), np.asarray(ref), rtol=1e-1, atol=5e-2)
    print("KERNEL_OK")
</pallas_src>

<mosaic_0001>
module attributes {stable_mosaic.version = 11 : i64} {
  func.func @_pw_split_kernel(%arg0: i32, %arg1: memref<256x4xbf16, #tpu.memory_space<vmem>>, %arg2: memref<4x4xbf16, #tpu.memory_space<vmem>>, %arg3: memref<1x4xf32, #tpu.memory_space<vmem>>, %arg4: memref<256x2xbf16, #tpu.memory_space<vmem>>, %arg5: memref<256x2xbf16, #tpu.memory_space<vmem>>) attributes {dimension_semantics = [#tpu.dimension_semantics<parallel>], iteration_bounds = array<i64: 2>, scalar_prefetch = 0 : i64, scratch_operands = 0 : i64, tpu.core_type = #tpu.core_type<tc>, window_params = [{transform_indices = @transform_0, window_bounds = array<i64: 256, 4>}, {pipeline_mode = #tpu.pipeline_mode<synchronous>, transform_indices = @transform_1, window_bounds = array<i64: 4, 4>}, {pipeline_mode = #tpu.pipeline_mode<synchronous>, transform_indices = @transform_2, window_bounds = array<i64: 1, 4>}, {transform_indices = @transform_3, window_bounds = array<i64: 256, 2>}, {transform_indices = @transform_4, window_bounds = array<i64: 256, 2>}]} {
    %c0 = arith.constant 0 : index
    %c0_0 = arith.constant 0 : index
    %0 = vector.load %arg1[%c0, %c0_0] : memref<256x4xbf16, #tpu.memory_space<vmem>>, vector<256x4xbf16>
    %c0_1 = arith.constant 0 : index
    %c0_2 = arith.constant 0 : index
    %1 = vector.load %arg2[%c0_1, %c0_2] : memref<4x4xbf16, #tpu.memory_space<vmem>>, vector<4x4xbf16>
    %cst = arith.constant dense<0.000000e+00> : vector<256x4xf32>
    %2 = tpu.matmul %0, %1, %cst {dimension_numbers = #tpu.dot_dimension_numbers<[1], [0], [0], [1], [0, 0, 1, 1], [], []>} : vector<256x4xbf16>, vector<4x4xbf16>, vector<256x4xf32> -> vector<256x4xf32>
    %c0_3 = arith.constant 0 : index
    %c0_4 = arith.constant 0 : index
    %3 = vector.load %arg3[%c0_3, %c0_4] : memref<1x4xf32, #tpu.memory_space<vmem>>, vector<1x4xf32>
    %4 = vector.broadcast %3 : vector<1x4xf32> to vector<256x4xf32>
    %5 = arith.addf %2, %4 : vector<256x4xf32>
    %6 = arith.negf %5 : vector<256x4xf32>
    %7 = math.exp %6 : vector<256x4xf32>
    %cst_5 = arith.constant 1.000000e+00 : f32
    %8 = vector.broadcast %cst_5 : f32 to vector<256x4xf32>
    %9 = arith.addf %8, %7 : vector<256x4xf32>
    %10 = arith.divf %8, %9 : vector<256x4xf32>
    %11 = arith.mulf %5, %10 : vector<256x4xf32>
    %12 = vector.extract_strided_slice %11 {offsets = [0, 0], sizes = [256, 2], strides = [1, 1]} : vector<256x4xf32> to vector<256x2xf32>
    %13 = arith.truncf %12 : vector<256x2xf32> to vector<256x2xbf16>
    %c0_6 = arith.constant 0 : index
    %c0_7 = arith.constant 0 : index
    %14 = vector.load %arg4[%c0_6, %c0_7] : memref<256x2xbf16, #tpu.memory_space<vmem>>, vector<256x2xbf16>
    tpu.vector_store %arg4[%c0_6, %c0_7], %13 {strides = array<i32>} : memref<256x2xbf16, #tpu.memory_space<vmem>>, vector<256x2xbf16>,
    %15 = vector.extract_strided_slice %11 {offsets = [0, 2], sizes = [256, 2], strides = [1, 1]} : vector<256x4xf32> to vector<256x2xf32>
    %16 = arith.truncf %15 : vector<256x2xf32> to vector<256x2xbf16>
    %c0_8 = arith.constant 0 : index
    %c0_9 = arith.constant 0 : index
    %17 = vector.load %arg5[%c0_8, %c0_9] : memref<256x2xbf16, #tpu.memory_space<vmem>>, vector<256x2xbf16>
    tpu.vector_store %arg5[%c0_8, %c0_9], %16 {strides = array<i32>} : memref<256x2xbf16, #tpu.memory_space<vmem>>, vector<256x2xbf16>,
    return
  }
  func.func @transform_0(%arg0: i32) -> (i32, i32) {
    %c0_i32 = arith.constant 0 : i32
    %c0_i32_0 = arith.constant 0 : i32
    return %arg0, %c0_i32 : i32, i32
  }
  func.func @transform_1(%arg0: i32) -> (i32, i32) {
    %c0_i32 = arith.constant 0 : i32
    %c0_i32_0 = arith.constant 0 : i32
    %c0_i32_1 = arith.constant 0 : i32
    return %c0_i32, %c0_i32_0 : i32, i32
  }
  func.func @transform_2(%arg0: i32) -> (i32, i32) {
    %c0_i32 = arith.constant 0 : i32
    %c0_i32_0 = arith.constant 0 : i32
    %c0_i32_1 = arith.constant 0 : i32
    return %c0_i32, %c0_i32_0 : i32, i32
  }
  func.func @transform_3(%arg0: i32) -> (i32, i32) {
    %c0_i32 = arith.constant 0 : i32
    %c0_i32_0 = arith.constant 0 : i32
    return %arg0, %c0_i32 : i32, i32
  }
  func.func @transform_4(%arg0: i32) -> (i32, i32) {
    %c0_i32 = arith.constant 0 : i32
    %c0_i32_0 = arith.constant 0 : i32
    return %arg0, %c0_i32 : i32, i32
  }
}

module attributes {stable_mosaic.version = 11 : i64} {
  func.func @_cat_pw_silu_kernel(%arg0: i32, %arg1: memref<256x2xbf16, #tpu.memory_space<vmem>>, %arg2: memref<256x2xbf16, #tpu.memory_space<vmem>>, %arg3: memref<256x2xbf16, #tpu.memory_space<vmem>>, %arg4: memref<6x4xbf16, #tpu.memory_space<vmem>>, %arg5: memref<1x4xf32, #tpu.memory_space<vmem>>, %arg6: memref<256x4xf32, #tpu.memory_space<vmem>>) attributes {dimension_semantics = [#tpu.dimension_semantics<parallel>], iteration_bounds = array<i64: 2>, scalar_prefetch = 0 : i64, scratch_operands = 0 : i64, tpu.core_type = #tpu.core_type<tc>, window_params = [{transform_indices = @transform_0, window_bounds = array<i64: 256, 2>}, {transform_indices = @transform_1, window_bounds = array<i64: 256, 2>}, {transform_indices = @transform_2, window_bounds = array<i64: 256, 2>}, {pipeline_mode = #tpu.pipeline_mode<synchronous>, transform_indices = @transform_3, window_bounds = array<i64: 6, 4>}, {pipeline_mode = #tpu.pipeline_mode<synchronous>, transform_indices = @transform_4, window_bounds = array<i64: 1, 4>}, {transform_indices = @transform_5, window_bounds = array<i64: 256, 4>}]} {
    %c0 = arith.constant 0 : index
    %c0_0 = arith.constant 0 : index
    %0 = vector.load %arg1[%c0, %c0_0] : memref<256x2xbf16, #tpu.memory_space<vmem>>, vector<256x2xbf16>
    %c0_1 = arith.constant 0 : index
    %c0_2 = arith.constant 0 : index
    %1 = vector.load %arg2[%c0_1, %c0_2] : memref<256x2xbf16, #tpu.memory_space<vmem>>, vector<256x2xbf16>
    %c0_3 = arith.constant 0 : index
    %c0_4 = arith.constant 0 : index
    %2 = vector.load %arg3[%c0_3, %c0_4] : memref<256x2xbf16, #tpu.memory_space<vmem>>, vector<256x2xbf16>
    %3 = tpu.concatenate %0, %1, %2 in 1 : vector<256x2xbf16>, vector<256x2xbf16>, vector<256x2xbf16> -> vector<256x6xbf16>
    %c0_5 = arith.constant 0 : index
    %c0_6 = arith.constant 0 : index
    %4 = vector.load %arg4[%c0_5, %c0_6] : memref<6x4xbf16, #tpu.memory_space<vmem>>, vector<6x4xbf16>
    %cst = arith.constant dense<0.000000e+00> : vector<256x4xf32>
    %5 = tpu.matmul %3, %4, %cst {dimension_numbers = #tpu.dot_dimension_numbers<[1], [0], [0], [1], [0, 0, 1, 1], [], []>} : vector<256x6xbf16>, vector<6x4xbf16>, vector<256x4xf32> -> vector<256x4xf32>
    %c0_7 = arith.constant 0 : index
    %c0_8 = arith.constant 0 : index
    %6 = vector.load %arg5[%c0_7, %c0_8] : memref<1x4xf32, #tpu.memory_space<vmem>>, vector<1x4xf32>
    %7 = vector.broadcast %6 : vector<1x4xf32> to vector<256x4xf32>
    %8 = arith.addf %5, %7 : vector<256x4xf32>
    %9 = arith.negf %8 : vector<256x4xf32>
    %10 = math.exp %9 : vector<256x4xf32>
    %cst_9 = arith.constant 1.000000e+00 : f32
    %11 = vector.broadcast %cst_9 : f32 to vector<256x4xf32>
    %12 = arith.addf %11, %10 : vector<256x4xf32>
    %13 = arith.divf %11, %12 : vector<256x4xf32>
    %14 = arith.mulf %8, %13 : vector<256x4xf32>
    %c0_10 = arith.constant 0 : index
    %c0_11 = arith.constant 0 : index
    %15 = vector.load %arg6[%c0_10, %c0_11] : memref<256x4xf32, #tpu.memory_space<vmem>>, vector<256x4xf32>
    tpu.vector_store %arg6[%c0_10, %c0_11], %14 {strides = array<i32>} : memref<256x4xf32, #tpu.memory_space<vmem>>, vector<256x4xf32>,
    return
  }
  func.func @transform_0(%arg0: i32) -> (i32, i32) {
    %c0_i32 = arith.constant 0 : i32
    %c0_i32_0 = arith.constant 0 : i32
    return %arg0, %c0_i32 : i32, i32
  }
  func.func @transform_1(%arg0: i32) -> (i32, i32) {
    %c0_i32 = arith.constant 0 : i32
    %c0_i32_0 = arith.constant 0 : i32
    return %arg0, %c0_i32 : i32, i32
  }
  func.func @transform_2(%arg0: i32) -> (i32, i32) {
    %c0_i32 = arith.constant 0 : i32
    %c0_i32_0 = arith.constant 0 : i32
    return %arg0, %c0_i32 : i32, i32
  }
  func.func @transform_3(%arg0: i32) -> (i32, i32) {
    %c0_i32 = arith.constant 0 : i32
    %c0_i32_0 = arith.constant 0 : i32
    %c0_i32_1 = arith.constant 0 : i32
    return %c0_i32, %c0_i32_0 : i32, i32
  }
  func.func @transform_4(%arg0: i32) -> (i32, i32) {
    %c0_i32 = arith.constant 0 : i32
    %c0_i32_0 = arith.constant 0 : i32
    %c0_i32_1 = arith.constant 0 : i32
    return %c0_i32, %c0_i32_0 : i32, i32
  }
  func.func @transform_5(%arg0: i32) -> (i32, i32) {
    %c0_i32 = arith.constant 0 : i32
    %c0_i32_0 = arith.constant 0 : i32
    return %arg0, %c0_i32 : i32, i32
  }
}

module attributes {stable_mosaic.version = 11 : i64} {
  func.func @_pw1_dw_kernel(%arg0: i32, %arg1: i32, %arg2: memref<1x4x16x2xbf16, #tpu.memory_space<vmem>>, %arg3: memref<1x1x16x2xbf16, #tpu.memory_space<vmem>>, %arg4: memref<1x1x16x2xbf16, #tpu.memory_space<vmem>>, %arg5: memref<2x8xbf16, #tpu.memory_space<vmem>>, %arg6: memref<1x8xf32, #tpu.memory_space<vmem>>, %arg7: memref<3x3x8xf32, #tpu.memory_space<vmem>>, %arg8: memref<1x8xf32, #tpu.memory_space<vmem>>, %arg9: memref<1x4x16x8xbf16, #tpu.memory_space<vmem>>, %arg10: memref<1x1x8x8xf32, #tpu.memory_space<vmem>>) attributes {dimension_semantics = [#tpu.dimension_semantics<parallel>, #tpu.dimension_semantics<parallel>], iteration_bounds = array<i64: 2, 4>, scalar_prefetch = 0 : i64, scratch_operands = 0 : i64, tpu.core_type = #tpu.core_type<tc>, window_params = [{transform_indices = @transform_0, window_bounds = array<i64: 1, 4, 16, 2>}, {transform_indices = @transform_1, window_bounds = array<i64: 1, 1, 16, 2>}, {transform_indices = @transform_2, window_bounds = array<i64: 1, 1, 16, 2>}, {pipeline_mode = #tpu.pipeline_mode<synchronous>, transform_indices = @transform_3, window_bounds = array<i64: 2, 8>}, {pipeline_mode = #tpu.pipeline_mode<synchronous>, transform_indices = @transform_4, window_bounds = array<i64: 1, 8>}, {pipeline_mode = #tpu.pipeline_mode<synchronous>, transform_indices = @transform_5, window_bounds = array<i64: 3, 3, 8>}, {pipeline_mode = #tpu.pipeline_mode<synchronous>, transform_indices = @transform_6, window_bounds = array<i64: 1, 8>}, {transform_indices = @transform_7, window_bounds = array<i64: 1, 4, 16, 8>}, {transform_indices = @transform_8, window_bounds = array<i64: 1, 1, 8, 8>}]} {
    %c0 = arith.constant 0 : index
    %c0_0 = arith.constant 0 : index
    %0 = vector.load %arg5[%c0, %c0_0] : memref<2x8xbf16, #tpu.memory_space<vmem>>, vector<2x8xbf16>
    %c0_1 = arith.constant 0 : index
    %c0_2 = arith.constant 0 : index
    %1 = vector.load %arg6[%c0_1, %c0_2] : memref<1x8xf32, #tpu.memory_space<vmem>>, vector<1x8xf32>
    %c0_3 = arith.constant 0 : index
    %c0_4 = arith.constant 0 : index
    %c0_5 = arith.constant 0 : index
    %c0_6 = arith.constant 0 : index
    %2 = vector.load %arg2[%c0_3, %c0_4, %c0_5, %c0_6] : memref<1x4x16x2xbf16, #tpu.memory_space<vmem>>, vector<1x4x16x2xbf16>
    %3 = vector.shape_cast %2 : vector<1x4x16x2xbf16> to vector<4x16x2xbf16>
    %4 = vector.shape_cast %3 : vector<4x16x2xbf16> to vector<64x2xbf16>
    %cst = arith.constant dense<0.000000e+00> : vector<64x8xf32>
    %5 = tpu.matmul %4, %0, %cst {dimension_numbers = #tpu.dot_dimension_numbers<[1], [0], [0], [1], [0, 0, 1, 1], [], []>} : vector<64x2xbf16>, vector<2x8xbf16>, vector<64x8xf32> -> vector<64x8xf32>
    %6 = vector.broadcast %1 : vector<1x8xf32> to vector<64x8xf32>
    %7 = arith.addf %5, %6 : vector<64x8xf32>
    %8 = arith.negf %7 : vector<64x8xf32>
    %9 = math.exp %8 : vector<64x8xf32>
    %cst_7 = arith.constant 1.000000e+00 : f32
    %10 = vector.broadcast %cst_7 : f32 to vector<64x8xf32>
    %11 = arith.addf %10, %9 : vector<64x8xf32>
    %12 = arith.divf %10, %11 : vector<64x8xf32>
    %13 = arith.mulf %7, %12 : vector<64x8xf32>
    %14 = vector.shape_cast %13 : vector<64x8xf32> to vector<4x16x8xf32>
    %c0_8 = arith.constant 0 : index
    %c0_9 = arith.constant 0 : index
    %c0_10 = arith.constant 0 : index
    %c0_11 = arith.constant 0 : index
    %15 = vector.load %arg3[%c0_8, %c0_9, %c0_10, %c0_11] : memref<1x1x16x2xbf16, #tpu.memory_space<vmem>>, vector<1x1x16x2xbf16>
    %16 = vector.shape_cast %15 : vector<1x1x16x2xbf16> to vector<1x16x2xbf16>
    %17 = vector.shape_cast %16 : vector<1x16x2xbf16> to vector<16x2xbf16>
    %cst_12 = arith.constant dense<0.000000e+00> : vector<16x8xf32>
    %18 = tpu.matmul %17, %0, %cst_12 {dimension_numbers = #tpu.dot_dimension_numbers<[1], [0], [0], [1], [0, 0, 1, 1], [], []>} : vector<16x2xbf16>, vector<2x8xbf16>, vector<16x8xf32> -> vector<16x8xf32>
    %19 = vector.broadcast %1 : vector<1x8xf32> to vector<16x8xf32>
    %20 = arith.addf %18, %19 : vector<16x8xf32>
    %21 = arith.negf %20 : vector<16x8xf32>
    %22 = math.exp %21 : vector<16x8xf32>
    %cst_13 = arith.constant 1.000000e+00 : f32
    %23 = vector.broadcast %cst_13 : f32 to vector<16x8xf32>
    %24 = arith.addf %23, %22 : vector<16x8xf32>
    %25 = arith.divf %23, %24 : vector<16x8xf32>
    %26 = arith.mulf %20, %25 : vector<16x8xf32>
    %27 = vector.shape_cast %26 : vector<16x8xf32> to vector<1x16x8xf32>
    %c0_i32 = arith.constant 0 : i32
    %28 = arith.cmpi sgt, %arg1, %c0_i32 : i32
    %29 = arith.extui %28 : i1 to i32
    %30 = arith.sitofp %29 : i32 to f32
    %31 = vector.broadcast %30 : f32 to vector<1x16x8xf32>
    %32 = arith.mulf %27, %31 : vector<1x16x8xf32>
    %c0_14 = arith.constant 0 : index
    %c0_15 = arith.constant 0 : index
    %c0_16 = arith.constant 0 : index
    %c0_17 = arith.constant 0 : index
    %33 = vector.load %arg4[%c0_14, %c0_15, %c0_16, %c0_17] : memref<1x1x16x2xbf16, #tpu.memory_space<vmem>>, vector<1x1x16x2xbf16>
    %34 = vector.shape_cast %33 : vector<1x1x16x2xbf16> to vector<1x16x2xbf16>
    %35 = vector.shape_cast %34 : vector<1x16x2xbf16> to vector<16x2xbf16>
    %cst_18 = arith.constant dense<0.000000e+00> : vector<16x8xf32>
    %36 = tpu.matmul %35, %0, %cst_18 {dimension_numbers = #tpu.dot_dimension_numbers<[1], [0], [0], [1], [0, 0, 1, 1], [], []>} : vector<16x2xbf16>, vector<2x8xbf16>, vector<16x8xf32> -> vector<16x8xf32>
    %37 = vector.broadcast %1 : vector<1x8xf32> to vector<16x8xf32>
    %38 = arith.addf %36, %37 : vector<16x8xf32>
    %39 = arith.negf %38 : vector<16x8xf32>
    %40 = math.exp %39 : vector<16x8xf32>
    %cst_19 = arith.constant 1.000000e+00 : f32
    %41 = vector.broadcast %cst_19 : f32 to vector<16x8xf32>
    %42 = arith.addf %41, %40 : vector<16x8xf32>
    %43 = arith.divf %41, %42 : vector<16x8xf32>
    %44 = arith.mulf %38, %43 : vector<16x8xf32>
    %45 = vector.shape_cast %44 : vector<16x8xf32> to vector<1x16x8xf32>
    %c3_i32 = arith.constant 3 : i32
    %46 = arith.cmpi slt, %arg1, %c3_i32 : i32
    %47 = arith.extui %46 : i1 to i32
    %48 = arith.sitofp %47 : i32 to f32
    %49 = vector.broadcast %48 : f32 to vector<1x16x8xf32>
    %50 = arith.mulf %45, %49 : vector<1x16x8xf32>
    %51 = tpu.concatenate %32, %14, %50 in 0 : vector<1x16x8xf32>, vector<4x16x8xf32>, vector<1x16x8xf32> -> vector<6x16x8xf32>
    %cst_20 = arith.constant 0.000000e+00 : f32
    %52 = vector.broadcast %cst_20 : f32 to vector<6x1x8xf32>
    %53 = vector.extract_strided_slice %51 {offsets = [0, 0, 0], sizes = [6, 15, 8], strides = [1, 1, 1]} : vector<6x16x8xf32> to vector<6x15x8xf32>
    %54 = tpu.concatenate %52, %53 in 1 : vector<6x1x8xf32>, vector<6x15x8xf32> -> vector<6x16x8xf32>
    %55 = vector.extract_strided_slice %51 {offsets = [0, 1, 0], sizes = [6, 15, 8], strides = [1, 1, 1]} : vector<6x16x8xf32> to vector<6x15x8xf32>
    %56 = tpu.concatenate %55, %52 in 1 : vector<6x15x8xf32>, vector<6x1x8xf32> -> vector<6x16x8xf32>
    %c0_21 = arith.constant 0 : index
    %c0_22 = arith.constant 0 : index
    %c0_23 = arith.constant 0 : index
    %57 = vector.load %arg7[%c0_21, %c0_22, %c0_23] : memref<3x3x8xf32, #tpu.memory_space<vmem>>, vector<3x3x8xf32>
    %cst_24 = arith.constant 0.000000e+00 : f32
    %58 = vector.broadcast %cst_24 : f32 to vector<4x16x8xf32>
    %59 = vector.extract_strided_slice %54 {offsets = [0, 0, 0], sizes = [4, 16, 8], strides = [1, 1, 1]} : vector<6x16x8xf32> to vector<4x16x8xf32>
    %60 = vector.extract_strided_slice %57 {offsets = [0, 0, 0], sizes = [1, 1, 8], strides = [1, 1, 1]} : vector<3x3x8xf32> to vector<1x1x8xf32>
    %61 = vector.shape_cast %60 : vector<1x1x8xf32> to vector<8xf32>
    %62 = vector.shape_cast %61 : vector<8xf32> to vector<1x1x8xf32>
    %63 = vector.broadcast %62 : vector<1x1x8xf32> to vector<4x16x8xf32>
    %64 = arith.mulf %59, %63 : vector<4x16x8xf32>
    %65 = arith.addf %58, %64 : vector<4x16x8xf32>
    %66 = vector.extract_strided_slice %51 {offsets = [0, 0, 0], sizes = [4, 16, 8], strides = [1, 1, 1]} : vector<6x16x8xf32> to vector<4x16x8xf32>
    %67 = vector.extract_strided_slice %57 {offsets = [0, 1, 0], sizes = [1, 1, 8], strides = [1, 1, 1]} : vector<3x3x8xf32> to vector<1x1x8xf32>
    %68 = vector.shape_cast %67 : vector<1x1x8xf32> to vector<8xf32>
    %69 = vector.shape_cast %68 : vector<8xf32> to vector<1x1x8xf32>
    %70 = vector.broadcast %69 : vector<1x1x8xf32> to vector<4x16x8xf32>
    %71 = arith.mulf %66, %70 : vector<4x16x8xf32>
    %72 = arith.addf %65, %71 : vector<4x16x8xf32>
    %73 = vector.extract_strided_slice %56 {offsets = [0, 0, 0], sizes = [4, 16, 8], strides = [1, 1, 1]} : vector<6x16x8xf32> to vector<4x16x8xf32>
    %74 = vector.extract_strided_slice %57 {offsets = [0, 2, 0], sizes = [1, 1, 8], strides = [1, 1, 1]} : vector<3x3x8xf32> to vector<1x1x8xf32>
    %75 = vector.shape_cast %74 : vector<1x1x8xf32> to vector<8xf32>
    %76 = vector.shape_cast %75 : vector<8xf32> to vector<1x1x8xf32>
    %77 = vector.broadcast %76 : vector<1x1x8xf32> to vector<4x16x8xf32>
    %78 = arith.mulf %73, %77 : vector<4x16x8xf32>
    %79 = arith.addf %72, %78 : vector<4x16x8xf32>
    %80 = vector.extract_strided_slice %54 {offsets = [1, 0, 0], sizes = [4, 16, 8], strides = [1, 1, 1]} : vector<6x16x8xf32> to vector<4x16x8xf32>
    %81 = vector.extract_strided_slice %57 {offsets = [1, 0, 0], sizes = [1, 1, 8], strides = [1, 1, 1]} : vector<3x3x8xf32> to vector<1x1x8xf32>
    %82 = vector.shape_cast %81 : vector<1x1x8xf32> to vector<8xf32>
    %83 = vector.shape_cast %82 : vector<8xf32> to vector<1x1x8xf32>
    %84 = vector.broadcast %83 : vector<1x1x8xf32> to vector<4x16x8xf32>
    %85 = arith.mulf %80, %84 : vector<4x16x8xf32>
    %86 = arith.addf %79, %85 : vector<4x16x8xf32>
    %87 = vector.extract_strided_slice %51 {offsets = [1, 0, 0], sizes = [4, 16, 8], strides = [1, 1, 1]} : vector<6x16x8xf32> to vector<4x16x8xf32>
    %88 = vector.extract_strided_slice %57 {offsets = [1, 1, 0], sizes = [1, 1, 8], strides = [1, 1, 1]} : vector<3x3x8xf32> to vector<1x1x8xf32>
    %89 = vector.shape_cast %88 : vector<1x1x8xf32> to vector<8xf32>
    %90 = vector.shape_cast %89 : vector<8xf32> to vector<1x1x8xf32>
    %91 = vector.broadcast %90 : vector<1x1x8xf32> to vector<4x16x8xf32>
    %92 = arith.mulf %87, %91 : vector<4x16x8xf32>
    %93 = arith.addf %86, %92 : vector<4x16x8xf32>
    %94 = vector.extract_strided_slice %56 {offsets = [1, 0, 0], sizes = [4, 16, 8], strides = [1, 1, 1]} : vector<6x16x8xf32> to vector<4x16x8xf32>
    %95 = vector.extract_strided_slice %57 {offsets = [1, 2, 0], sizes = [1, 1, 8], strides = [1, 1, 1]} : vector<3x3x8xf32> to vector<1x1x8xf32>
    %96 = vector.shape_cast %95 : vector<1x1x8xf32> to vector<8xf32>
    %97 = vector.shape_cast %96 : vector<8xf32> to vector<1x1x8xf32>
    %98 = vector.broadcast %97 : vector<1x1x8xf32> to vector<4x16x8xf32>
    %99 = arith.mulf %94, %98 : vector<4x16x8xf32>
    %100 = arith.addf %93, %99 : vector<4x16x8xf32>
    %101 = vector.extract_strided_slice %54 {offsets = [2, 0, 0], sizes = [4, 16, 8], strides = [1, 1, 1]} : vector<6x16x8xf32> to vector<4x16x8xf32>
    %102 = vector.extract_strided_slice %57 {offsets = [2, 0, 0], sizes = [1, 1, 8], strides = [1, 1, 1]} : vector<3x3x8xf32> to vector<1x1x8xf32>
    %103 = vector.shape_cast %102 : vector<1x1x8xf32> to vector<8xf32>
    %104 = vector.shape_cast %103 : vector<8xf32> to vector<1x1x8xf32>
    %105 = vector.broadcast %104 : vector<1x1x8xf32> to vector<4x16x8xf32>
    %106 = arith.mulf %101, %105 : vector<4x16x8xf32>
    %107 = arith.addf %100, %106 : vector<4x16x8xf32>
    %108 = vector.extract_strided_slice %51 {offsets = [2, 0, 0], sizes = [4, 16, 8], strides = [1, 1, 1]} : vector<6x16x8xf32> to vector<4x16x8xf32>
    %109 = vector.extract_strided_slice %57 {offsets = [2, 1, 0], sizes = [1, 1, 8], strides = [1, 1, 1]} : vector<3x3x8xf32> to vector<1x1x8xf32>
    %110 = vector.shape_cast %109 : vector<1x1x8xf32> to vector<8xf32>
    %111 = vector.shape_cast %110 : vector<8xf32> to vector<1x1x8xf32>
    %112 = vector.broadcast %111 : vector<1x1x8xf32> to vector<4x16x8xf32>
    %113 = arith.mulf %108, %112 : vector<4x16x8xf32>
    %114 = arith.addf %107, %113 : vector<4x16x8xf32>
    %115 = vector.extract_strided_slice %56 {offsets = [2, 0, 0], sizes = [4, 16, 8], strides = [1, 1, 1]} : vector<6x16x8xf32> to vector<4x16x8xf32>
    %116 = vector.extract_strided_slice %57 {offsets = [2, 2, 0], sizes = [1, 1, 8], strides = [1, 1, 1]} : vector<3x3x8xf32> to vector<1x1x8xf32>
    %117 = vector.shape_cast %116 : vector<1x1x8xf32> to vector<8xf32>
    %118 = vector.shape_cast %117 : vector<8xf32> to vector<1x1x8xf32>
    %119 = vector.broadcast %118 : vector<1x1x8xf32> to vector<4x16x8xf32>
    %120 = arith.mulf %115, %119 : vector<4x16x8xf32>
    %121 = arith.addf %114, %120 : vector<4x16x8xf32>
    %c0_25 = arith.constant 0 : index
    %c0_26 = arith.constant 0 : index
    %122 = vector.load %arg8[%c0_25, %c0_26] : memref<1x8xf32, #tpu.memory_space<vmem>>, vector<1x8xf32>
    %123 = vector.shape_cast %122 : vector<1x8xf32> to vector<1x1x8xf32>
    %124 = vector.broadcast %123 : vector<1x1x8xf32> to vector<4x16x8xf32>
    %125 = arith.addf %121, %124 : vector<4x16x8xf32>
    %126 = arith.negf %125 : vector<4x16x8xf32>
    %127 = math.exp %126 : vector<4x16x8xf32>
    %cst_27 = arith.constant 1.000000e+00 : f32
    %128 = vector.broadcast %cst_27 : f32 to vector<4x16x8xf32>
    %129 = arith.addf %128, %127 : vector<4x16x8xf32>
    %130 = arith.divf %128, %129 : vector<4x16x8xf32>
    %131 = arith.mulf %125, %130 : vector<4x16x8xf32>
    %132 = vector.shape_cast %131 : vector<4x16x8xf32> to vector<1x4x16x8xf32>
    %133 = arith.truncf %132 : vector<1x4x16x8xf32> to vector<1x4x16x8xbf16>
    %c0_28 = arith.constant 0 : index
    %c0_29 = arith.constant 0 : index
    %c0_30 = arith.constant 0 : index
    %c0_31 = arith.constant 0 : index
    %134 = vector.load %arg9[%c0_28, %c0_29, %c0_30, %c0_31] : memref<1x4x16x8xbf16, #tpu.memory_space<vmem>>, vector<1x4x16x8xbf16>
    tpu.vector_store %arg9[%c0_28, %c0_29, %c0_30, %c0_31], %133 {strides = array<i32>} : memref<1x4x16x8xbf16, #tpu.memory_space<vmem>>, vector<1x4x16x8xbf16>,
    %cst_32 = arith.constant dense<0.000000e+00> : vector<8xf32>
    %135 = vector.multi_reduction <add>, %131, %cst_32 [0, 1] : vector<4x16x8xf32> to vector<8xf32>
    %136 = vector.shape_cast %135 : vector<8xf32> to vector<1x1x1x8xf32>
    %137 = vector.shape_cast %136 : vector<1x1x1x8xf32> to vector<1x1x1x8xf32>
    %138 = vector.broadcast %137 : vector<1x1x1x8xf32> to vector<1x1x8x8xf32>
    %c0_33 = arith.constant 0 : index
    %c0_34 = arith.constant 0 : index
    %c0_35 = arith.constant 0 : index
    %c0_36 = arith.constant 0 : index
    %139 = vector.load %arg10[%c0_33, %c0_34, %c0_35, %c0_36] : memref<1x1x8x8xf32, #tpu.memory_space<vmem>>, vector<1x1x8x8xf32>
    tpu.vector_store %arg10[%c0_33, %c0_34, %c0_35, %c0_36], %138 {strides = array<i32>} : memref<1x1x8x8xf32, #tpu.memory_space<vmem>>, vector<1x1x8x8xf32>,
    return
  }
  func.func @transform_0(%arg0: i32, %arg1: i32) -> (i32, i32, i32, i32) {
    %c0_i32 = arith.constant 0 : i32
    %c0_i32_0 = arith.constant 0 : i32
    %c0_i32_1 = arith.constant 0 : i32
    return %arg0, %arg1, %c0_i32, %c0_i32_0 : i32, i32, i32, i32
  }
  func.func @transform_1(%arg0: i32, %arg1: i32) -> (i32, i32, i32, i32) {
    %c4_i32 = arith.constant 4 : i32
    %0 = arith.muli %arg1, %c4_i32 : i32
    %c1_i32 = arith.constant 1 : i32
    %1 = arith.subi %0, %c1_i32 : i32
    %c0_i32 = arith.constant 0 : i32
    %2 = arith.maxsi %1, %c0_i32 : i32
    %c0_i32_0 = arith.constant 0 : i32
    %c0_i32_1 = arith.constant 0 : i32
    %c0_i32_2 = arith.constant 0 : i32
    return %arg0, %2, %c0_i32_0, %c0_i32_1 : i32, i32, i32, i32
  }
  func.func @transform_2(%arg0: i32, %arg1: i32) -> (i32, i32, i32, i32) {
    %c4_i32 = arith.constant 4 : i32
    %0 = arith.muli %arg1, %c4_i32 : i32
    %c4_i32_0 = arith.constant 4 : i32
    %1 = arith.addi %0, %c4_i32_0 : i32
    %c15_i32 = arith.constant 15 : i32
    %2 = arith.minsi %1, %c15_i32 : i32
    %c0_i32 = arith.constant 0 : i32
    %c0_i32_1 = arith.constant 0 : i32
    %c0_i32_2 = arith.constant 0 : i32
    return %arg0, %2, %c0_i32, %c0_i32_1 : i32, i32, i32, i32
  }
  func.func @transform_3(%arg0: i32, %arg1: i32) -> (i32, i32) {
    %c0_i32 = arith.constant 0 : i32
    %c0_i32_0 = arith.constant 0 : i32
    %c0_i32_1 = arith.constant 0 : i32
    return %c0_i32, %c0_i32_0 : i32, i32
  }
  func.func @transform_4(%arg0: i32, %arg1: i32) -> (i32, i32) {
    %c0_i32 = arith.constant 0 : i32
    %c0_i32_0 = arith.constant 0 : i32
    %c0_i32_1 = arith.constant 0 : i32
    return %c0_i32, %c0_i32_0 : i32, i32
  }
  func.func @transform_5(%arg0: i32, %arg1: i32) -> (i32, i32, i32) {
    %c0_i32 = arith.constant 0 : i32
    %c0_i32_0 = arith.constant 0 : i32
    %c0_i32_1 = arith.constant 0 : i32
    %c0_i32_2 = arith.constant 0 : i32
    return %c0_i32, %c0_i32_0, %c0_i32_1 : i32, i32, i32
  }
  func.func @transform_6(%arg0: i32, %arg1: i32) -> (i32, i32) {
    %c0_i32 = arith.constant 0 : i32
    %c0_i32_0 = arith.constant 0 : i32
    %c0_i32_1 = arith.constant 0 : i32
    return %c0_i32, %c0_i32_0 : i32, i32
  }
  func.func @transform_7(%arg0: i32, %arg1: i32) -> (i32, i32, i32, i32) {
    %c0_i32 = arith.constant 0 : i32
    %c0_i32_0 = arith.constant 0 : i32
    %c0_i32_1 = arith.constant 0 : i32
    return %arg0, %arg1, %c0_i32, %c0_i32_0 : i32, i32, i32, i32
  }
  func.func @transform_8(%arg0: i32, %arg1: i32) -> (i32, i32, i32, i32) {
    %c0_i32 = arith.constant 0 : i32
    %c0_i32_0 = arith.constant 0 : i32
    %c0_i32_1 = arith.constant 0 : i32
    return %arg0, %arg1, %c0_i32, %c0_i32_0 : i32, i32, i32, i32
  }
}

module attributes {stable_mosaic.version = 11 : i64} {
  func.func @_gate_pw_kernel(%arg0: i32, %arg1: i32, %arg2: memref<1x128x8xbf16, #tpu.memory_space<vmem>>, %arg3: memref<1x1x8xf32, #tpu.memory_space<vmem>>, %arg4: memref<8x2xbf16, #tpu.memory_space<vmem>>, %arg5: memref<1x2xf32, #tpu.memory_space<vmem>>, %arg6: memref<1x128x2xbf16, #tpu.memory_space<vmem>>) attributes {dimension_semantics = [#tpu.dimension_semantics<parallel>, #tpu.dimension_semantics<parallel>], iteration_bounds = array<i64: 2, 2>, scalar_prefetch = 0 : i64, scratch_operands = 0 : i64, tpu.core_type = #tpu.core_type<tc>, window_params = [{transform_indices = @transform_0, window_bounds = array<i64: 1, 128, 8>}, {transform_indices = @transform_1, window_bounds = array<i64: 1, 1, 8>}, {pipeline_mode = #tpu.pipeline_mode<synchronous>, transform_indices = @transform_2, window_bounds = array<i64: 8, 2>}, {pipeline_mode = #tpu.pipeline_mode<synchronous>, transform_indices = @transform_3, window_bounds = array<i64: 1, 2>}, {transform_indices = @transform_4, window_bounds = array<i64: 1, 128, 2>}]} {
    %c0 = arith.constant 0 : index
    %c0_0 = arith.constant 0 : index
    %c0_1 = arith.constant 0 : index
    %0 = vector.load %arg2[%c0, %c0_0, %c0_1] : memref<1x128x8xbf16, #tpu.memory_space<vmem>>, vector<1x128x8xbf16>
    %1 = vector.shape_cast %0 : vector<1x128x8xbf16> to vector<128x8xbf16>
    %c0_2 = arith.constant 0 : index
    %c0_3 = arith.constant 0 : index
    %c0_4 = arith.constant 0 : index
    %2 = vector.load %arg3[%c0_2, %c0_3, %c0_4] : memref<1x1x8xf32, #tpu.memory_space<vmem>>, vector<1x1x8xf32>
    %3 = vector.shape_cast %2 : vector<1x1x8xf32> to vector<1x8xf32>
    %4 = arith.truncf %3 : vector<1x8xf32> to vector<1x8xbf16>
    %5 = vector.broadcast %4 : vector<1x8xbf16> to vector<128x8xbf16>
    %6 = arith.mulf %1, %5 : vector<128x8xbf16>
    %c0_5 = arith.constant 0 : index
    %c0_6 = arith.constant 0 : index
    %7 = vector.load %arg4[%c0_5, %c0_6] : memref<8x2xbf16, #tpu.memory_space<vmem>>, vector<8x2xbf16>
    %cst = arith.constant dense<0.000000e+00> : vector<128x2xf32>
    %8 = tpu.matmul %6, %7, %cst {dimension_numbers = #tpu.dot_dimension_numbers<[1], [0], [0], [1], [0, 0, 1, 1], [], []>} : vector<128x8xbf16>, vector<8x2xbf16>, vector<128x2xf32> -> vector<128x2xf32>
    %c0_7 = arith.constant 0 : index
    %c0_8 = arith.constant 0 : index
    %9 = vector.load %arg5[%c0_7, %c0_8] : memref<1x2xf32, #tpu.memory_space<vmem>>, vector<1x2xf32>
    %10 = vector.broadcast %9 : vector<1x2xf32> to vector<128x2xf32>
    %11 = arith.addf %8, %10 : vector<128x2xf32>
    %12 = vector.shape_cast %11 : vector<128x2xf32> to vector<1x128x2xf32>
    %13 = arith.truncf %12 : vector<1x128x2xf32> to vector<1x128x2xbf16>
    %c0_9 = arith.constant 0 : index
    %c0_10 = arith.constant 0 : index
    %c0_11 = arith.constant 0 : index
    %14 = vector.load %arg6[%c0_9, %c0_10, %c0_11] : memref<1x128x2xbf16, #tpu.memory_space<vmem>>, vector<1x128x2xbf16>
    tpu.vector_store %arg6[%c0_9, %c0_10, %c0_11], %13 {strides = array<i32>} : memref<1x128x2xbf16, #tpu.memory_space<vmem>>, vector<1x128x2xbf16>,
    return
  }
  func.func @transform_0(%arg0: i32, %arg1: i32) -> (i32, i32, i32) {
    %c0_i32 = arith.constant 0 : i32
    %c0_i32_0 = arith.constant 0 : i32
    return %arg0, %arg1, %c0_i32 : i32, i32, i32
  }
  func.func @transform_1(%arg0: i32, %arg1: i32) -> (i32, i32, i32) {
    %c0_i32 = arith.constant 0 : i32
    %c0_i32_0 = arith.constant 0 : i32
    %c0_i32_1 = arith.constant 0 : i32
    return %arg0, %c0_i32, %c0_i32_0 : i32, i32, i32
  }
  func.func @transform_2(%arg0: i32, %arg1: i32) -> (i32, i32) {
    %c0_i32 = arith.constant 0 : i32
    %c0_i32_0 = arith.constant 0 : i32
    %c0_i32_1 = arith.constant 0 : i32
    return %c0_i32, %c0_i32_0 : i32, i32
  }
  func.func @transform_3(%arg0: i32, %arg1: i32) -> (i32, i32) {
    %c0_i32 = arith.constant 0 : i32
    %c0_i32_0 = arith.constant 0 : i32
    %c0_i32_1 = arith.constant 0 : i32
    return %c0_i32, %c0_i32_0 : i32, i32
  }
  func.func @transform_4(%arg0: i32, %arg1: i32) -> (i32, i32, i32) {
    %c0_i32 = arith.constant 0 : i32
    %c0_i32_0 = arith.constant 0 : i32
    return %arg0, %arg1, %c0_i32 : i32, i32, i32
  }
}

</mosaic_0001>

<bundles_post_ra>
// kernel: c2f_embc_v2.6
= control target key start
LH: loop header
LB: loop body
LE: loop exit
PB: predicated region body
PF: predicated region fallthrough
CT: control target
= control target key end

     0   :  { %s850_s15 = smov 0   ;;  %s852_s16 = smov 0   ;;  %s980_s0 = inlined_call_operand.vmem [shape: bf16[2,256,8], index: 0, kind: input, shape index: {}]   ;;  %s981_s1 = inlined_call_operand.vmem [shape: f32[2,1,8], index: 1, kind: input, shape index: {}]   ;;  %s982_s2 = inlined_call_operand.vmem [shape: bf16[8,2], index: 2, kind: input, shape index: {}]   ;;  %s983_s3 = inlined_call_operand.vmem [shape: f32[1,2], index: 3, kind: input, shape index: {}]   ;;  %s984_s4 = inlined_call_operand.vmem [shape: bf16[2,256,2], index: 4, kind: output, shape index: {}]  }
   0x1   :  { %s854_s17 = smov 0   ;;  %s856_s18 = smov 0  }
   0x2   :  { %s858_s19 = smov 0  }
   0x3 LB: > { %s23_s20 = sadd.s32 1, %s815_s17  ;;  %s26_s21 = sadd.s32 1, %s819_s18  ;;  %s823_s19 = sphi %s858_s19, %s14_s19   ;;  %s819_s18 = sphi %s856_s18, %s988_s18   ;;  %s815_s17 = sphi %s854_s17, %s987_s17   ;;  %s811_s16 = sphi %s852_s16, %s986_s16   ;;  %s807_s15 = sphi %s850_s15, %s985_s15  }
   0x4   : > { %p24_p0 = scmp.ge.s32.totalorder %s23_s20, 2  ;;  %p655_p1 = scmp.ge.s32.totalorder %s823_s19, 1 }
   0x5   : > { %p191_p2 = scmp.lt.s32.totalorder %s823_s19, 5 }
   0x6   : > { %s990_s20 = smov (%p24_p0, %s23_s20), 0  ;;  %s992_s21 = smov (!%p24_p0, %s26_s21), %s819_s18 }
   0x7   : > { %p192_p3 = pnand %p655_p1, %p191_p2  ;;  %p28_p4 = scmp.ge.s32.totalorder %s992_s21, 2 }
   0x8   : > { %s656_s24 = sshll.u32 (!%p192_p3), %s807_s15, 4  ;;  %p229_p5 = scmp.lt.s32.totalorder (!%p192_p3), %s811_s16, 1 }
   0x9   : > { %s994_s21 = smov (%p28_p4, %s992_s21), 0  ;;  %195 = sbr.rel (%p192_p3) target bundleno = 242 (0xf2), region = 36 }
   0xa   : > { %p231_p6 = scmp.lt.s32.totalorder (!%p192_p3), %s656_s24, 31 }
   0xe   : > { %v297_v0 = vld [vmem:[%s982_s2] sm:$0xf]  ;;  %vm370_vm0 = vcmask 1043456   ;;  %v273_v1 = vlaneseq  ;;  %s996_s16 = smov (!%p229_p5, %s811_s16), 1  ;;  %s998_s24 = smov (!%p231_p6, %s656_s24), 31  ;;  %vm345_vm1 = vcmask 64512  }
   0xf   : > { %743 = vmatprep.subr.msk.bf16.mxu0 %vm370_vm0, %v297_v0  ;;  %744 = vmatprep.subr.msk.bf16.mxu1 %vm370_vm0, %v297_v0  ;;  %v372_v2 = vsel %vm370_vm0, %v297_v0, 0  ;;  %s657_s25 = sshll.u32 %s996_s16, 5  ;;  %s240_s28 = scalar_lea.vmem %s981_s1, %s996_s16  ;;  %v663_v50 = vld [vmem:[%s983_s3] ss:$0 sm:$0xff]  ;;  %vm535_vm2 = vcmask 11264  }
  0x10   : > { %724 = vmatpush3.bf16.msra.mxu0 %v372_v2  ;;  %742 = vmatpush3.bf16.msra.mxu1 %v372_v2  ;;  %v274_v3 = vshrl.u32 %v273_v1, 7  ;;  %s889_s29 = sadd.s32 %s657_s25, %s998_s24  ;;  %v268_v4 = vld [vmem:[%s240_s28] sm:$0x1] }
  0x11   : > { %s658_s30 = sshll.u32 %s889_s29, 2  ;;  %v269_v5 = vpack.c.bf16 %v268_v4, %v268_v4 }
  0x12   : > { %v275_v6 = vsub.s32 0, %v274_v3  ;;  %s897_s7 = scalar_lea.vmem %s980_s0, %s658_s30  ;;  %s931_s12 = scalar_lea.vmem %s984_s4, %s658_s30 }
  0x13   : > { %v271_v7 = vpack.i.b16 %v269_v5, %v269_v5  ;;  %v252_v8 = vld [vmem:[%s897_s7] sm:$0xf]  ;;  %v253_v9 = vld [vmem:[%s897_s7 + $0x4] sm:$0xf]  ;;  %v254_v13 = vld [vmem:[%s897_s7 + $0x8] sm:$0xf] }
  0x14   : > { %v260_v11 = vld [vmem:[%s897_s7 + $0x20] sm:$0xf]  ;;  %v261_v12 = vld [vmem:[%s897_s7 + $0x24] sm:$0xf]  ;;  %v255_v15 = vld [vmem:[%s897_s7 + $0xc] sm:$0xf] }
  0x15   : > { %v276_v10 = vrot.slane %v271_v7, %v275_v6  ;;  %v262_v16 = vld [vmem:[%s897_s7 + $0x28] sm:$0xf]  ;;  %v263_v17 = vld [vmem:[%s897_s7 + $0x2c] sm:$0xf]  ;;  %v256_v18 = vld [vmem:[%s897_s7 + $0x10] sm:$0xf] }
  0x16   : > { %v257_v19 = vld [vmem:[%s897_s7 + $0x14] sm:$0xf]  ;;  %v264_v24 = vld [vmem:[%s897_s7 + $0x30] sm:$0xf]  ;;  %v258_v30 = vld [vmem:[%s897_s7 + $0x18] sm:$0xf] }
  0x17   : > { %v662_v14 = vcombine.low %v276_v10, %v276_v10  ;;  %v265_v25 = vld [vmem:[%s897_s7 + $0x34] sm:$0xf]  ;;  %v259_v31 = vld [vmem:[%s897_s7 + $0x1c] sm:$0xf]  ;;  %v266_v36 = vld [vmem:[%s897_s7 + $0x38] sm:$0xf] }
  0x18   : > { %v267_v37 = vld [vmem:[%s897_s7 + $0x3c] sm:$0xf] }
  0x19   : > { %v281_v20 = vmul.bf16 %v662_v14, %v252_v8  ;;  %v282_v21 = vmul.bf16 %v662_v14, %v253_v9  ;;  %v289_v22 = vmul.bf16 %v662_v14, %v260_v11  ;;  %v290_v23 = vmul.bf16 %v662_v14, %v261_v12 }
  0x1a   : > { %v283_v26 = vmul.bf16 %v662_v14, %v254_v13  ;;  %v284_v27 = vmul.bf16 %v662_v14, %v255_v15  ;;  %v291_v28 = vmul.bf16 %v662_v14, %v262_v16  ;;  %v292_v29 = vmul.bf16 %v662_v14, %v263_v17 }
  0x1b   : > { %v664_v32 = vcombine.low %v281_v20, %v282_v21  ;;  %v668_v33 = vcombine.low %v289_v22, %v290_v23  ;;  %v285_v34 = vmul.bf16 %v662_v14, %v256_v18  ;;  %v286_v35 = vmul.bf16 %v662_v14, %v257_v19 }
  0x1c   : > { %v665_v38 = vcombine.low %v283_v26, %v284_v27  ;;  %v669_v39 = vcombine.low %v291_v28, %v292_v29  ;;  %v293_v40 = vmul.bf16 %v662_v14, %v264_v24  ;;  %v294_v41 = vmul.bf16 %v662_v14, %v265_v25 }
  0x1d   : > { %725 = vmatprep.mubr.msk.bf16.mxu0 %vm345_vm1, %v664_v32  ;;  %733 = vmatprep.mubr.msk.bf16.mxu1 %vm345_vm1, %v668_v33  ;;  %v666_v42 = vcombine.low %v285_v34, %v286_v35  ;;  %v287_v43 = vmul.bf16 %v662_v14, %v258_v30  ;;  %v288_v44 = vmul.bf16 %v662_v14, %v259_v31 }
  0x1e   : > { %726 = vmatmul.mubr.msk.bf16.vlgmr.msra.gmra.mxu0 %vm345_vm1, %v665_v38  ;;  %734 = vmatmul.mubr.msk.bf16.vlgmr.msra.gmra.mxu1 %vm345_vm1, %v669_v39  ;;  %v670_v45 = vcombine.low %v293_v40, %v294_v41  ;;  %v295_v46 = vmul.bf16 %v662_v14, %v266_v36  ;;  %v296_v47 = vmul.bf16 %v662_v14, %v267_v37 }
  0x1f   : > { %729 = vmatprep.mubr.msk.bf16.mxu0 %vm345_vm1, %v666_v42  ;;  %v667_v48 = vcombine.low %v287_v43, %v288_v44 }
  0x20   : > { %737 = vmatprep.mubr.msk.bf16.mxu1 %vm345_vm1, %v670_v45  ;;  %v671_v49 = vcombine.low %v295_v46, %v296_v47 }
  0x26   : > { %730 = vmatmul.mubr.msk.bf16.gmra.mxu0 %vm345_vm1, %v667_v48  ;;  %738 = vmatmul.mubr.msk.bf16.gmra.mxu1 %vm345_vm1, %v671_v49 }
  0xde   : > { %v727_v51 = vpop.f32.mrf.mxu0  ;;  %v735_v52 = vpop.f32.mrf.mxu1 }
  0xdf   : > { %v417_v53 = vadd.f32 %v727_v51, %v663_v50  ;;  %v449_v54 = vadd.f32 %v735_v52, %v663_v50 }
  0xe0   : > { %v408_v55 = vpop.f32.mrf.mxu0  ;;  %v440_v56 = vpop.f32.mrf.mxu1 }
  0xe1   : > { %v700_v57 = vpack.c.bf16 %v417_v53, %v417_v53  ;;  %v708_v58 = vpack.c.bf16 %v449_v54, %v449_v54  ;;  %v409_v59 = vadd.f32 %v663_v50, %v408_v55  ;;  %v441_v60 = vadd.f32 %v663_v50, %v440_v56 }
  0xe2   : > { %v728_v61 = vpop.f32.mrf.mxu0  ;;  %v736_v62 = vpop.f32.mrf.mxu1 }
  0xe3   : > { %538 = vst.msk [vmem:[%s931_s12 + $0x8] sm:$0xf] %vm535_vm2, %v700_v57  ;;  %546 = vst.msk [vmem:[%s931_s12 + $0x28] sm:$0xf] %vm535_vm2, %v708_v58  ;;  %v698_v63 = vpack.c.bf16 %v409_v59, %v409_v59  ;;  %v706_v0 = vpack.c.bf16 %v441_v60, %v441_v60  ;;  %v420_v1 = vadd.f32 %v728_v61, %v663_v50 }
  0xe4   : > { %v452_v2 = vadd.f32 %v736_v62, %v663_v50  ;;  %v411_v3 = vpop.f32.mrf.mxu0  ;;  %v443_v4 = vpop.f32.mrf.mxu1 }
  0xe5   : > { %536 = vst.msk [vmem:[%s931_s12] sm:$0xf] %vm535_vm2, %v698_v63  ;;  %544 = vst.msk [vmem:[%s931_s12 + $0x20] sm:$0xf] %vm535_vm2, %v706_v0  ;;  %v701_v5 = vpack.c.bf16 %v420_v1, %v420_v1  ;;  %v412_v7 = vadd.f32 %v663_v50, %v411_v3  ;;  %v444_v8 = vadd.f32 %v663_v50, %v443_v4 }
  0xe6   : > { %v709_v6 = vpack.c.bf16 %v452_v2, %v452_v2  ;;  %v731_v9 = vpop.f32.mrf.mxu0  ;;  %v739_v10 = vpop.f32.mrf.mxu1 }
  0xe7   : > { %539 = vst.msk [vmem:[%s931_s12 + $0xc] sm:$0xf] %vm535_vm2, %v701_v5  ;;  %v699_v11 = vpack.c.bf16 %v412_v7, %v412_v7  ;;  %v707_v12 = vpack.c.bf16 %v444_v8, %v444_v8  ;;  %v433_v13 = vadd.f32 %v731_v9, %v663_v50  ;;  %v465_v14 = vadd.f32 %v739_v10, %v663_v50 }
  0xe8   : > { %547 = vst.msk [vmem:[%s931_s12 + $0x2c] sm:$0xf] %vm535_vm2, %v709_v6  ;;  %v424_v15 = vpop.f32.mrf.mxu0  ;;  %v456_v16 = vpop.f32.mrf.mxu1 }
  0xe9   : > { %537 = vst.msk [vmem:[%s931_s12 + $0x4] sm:$0xf] %vm535_vm2, %v699_v11  ;;  %545 = vst.msk [vmem:[%s931_s12 + $0x24] sm:$0xf] %vm535_vm2, %v707_v12  ;;  %v704_v17 = vpack.c.bf16 %v433_v13, %v433_v13  ;;  %v712_v18 = vpack.c.bf16 %v465_v14, %v465_v14  ;;  %v425_v19 = vadd.f32 %v663_v50, %v424_v15 }
  0xea   : > { %v457_v20 = vadd.f32 %v663_v50, %v456_v16  ;;  %v732_v21 = vpop.f32.mrf.mxu0  ;;  %v740_v22 = vpop.f32.mrf.mxu1 }
  0xeb   : > { %542 = vst.msk [vmem:[%s931_s12 + $0x18] sm:$0xf] %vm535_vm2, %v704_v17  ;;  %550 = vst.msk [vmem:[%s931_s12 + $0x38] sm:$0xf] %vm535_vm2, %v712_v18  ;;  %v702_v23 = vpack.c.bf16 %v425_v19, %v425_v19  ;;  %v436_v25 = vadd.f32 %v732_v21, %v663_v50  ;;  %v468_v26 = vadd.f32 %v740_v22, %v663_v50 }
  0xec   : > { %v710_v24 = vpack.c.bf16 %v457_v20, %v457_v20  ;;  %v427_v27 = vpop.f32.mrf.mxu0  ;;  %v459_v28 = vpop.f32.mrf.mxu1 }
  0xed   : > { %540 = vst.msk [vmem:[%s931_s12 + $0x10] sm:$0xf] %vm535_vm2, %v702_v23  ;;  %v705_v29 = vpack.c.bf16 %v436_v25, %v436_v25  ;;  %v713_v30 = vpack.c.bf16 %v468_v26, %v468_v26  ;;  %v428_v31 = vadd.f32 %v663_v50, %v427_v27  ;;  %v460_v32 = vadd.f32 %v663_v50, %v459_v28 }
  0xee   : > { %548 = vst.msk [vmem:[%s931_s12 + $0x30] sm:$0xf] %vm535_vm2, %v710_v24 }
  0xef   : > { %543 = vst.msk [vmem:[%s931_s12 + $0x1c] sm:$0xf] %vm535_vm2, %v705_v29  ;;  %551 = vst.msk [vmem:[%s931_s12 + $0x3c] sm:$0xf] %vm535_vm2, %v713_v30  ;;  %v703_v33 = vpack.c.bf16 %v428_v31, %v428_v31  ;;  %v711_v34 = vpack.c.bf16 %v460_v32, %v460_v32 }
  0xf1   : > { %541 = vst.msk [vmem:[%s931_s12 + $0x14] sm:$0xf] %vm535_vm2, %v703_v33  ;;  %549 = vst.msk [vmem:[%s931_s12 + $0x34] sm:$0xf] %vm535_vm2, %v711_v34 }
  0xf2 PF: > { %s14_s19 = sadd.s32 1, %s823_s19   ;;  %s985_s15 = smov %s815_s17 }
  0xf3   : > { %p11_p7 = scmp.ge.s32.totalorder %s14_s19, 6   ;;  %s986_s16 = smov %s819_s18 }
  0xf4   : > { %s987_s17 = smov %s990_s20  ;;  %s988_s18 = smov %s994_s21 }
  0xf5   :  { %13 = sbr.rel (!%p11_p7) target bundleno = 3 (0x3), region = 69 }

// kernel: c2f_embc_v2.5
= control target key start
LH: loop header
LB: loop body
LE: loop exit
PB: predicated region body
PF: predicated region fallthrough
CT: control target
= control target key end

     0   :  { %s1742_s27 = smov 0   ;;  %s1744_s28 = smov 0   ;;  %s2206_s0 = inlined_call_operand.vmem [shape: bf16[2,16,16,2], index: 0, kind: input, shape index: {}, may-alias: {0,1,2}]   ;;  %s2207_s1 = inlined_call_operand.vmem [shape: bf16[2,16,16,2], index: 1, kind: input, shape index: {}, may-alias: {0,1,2}]   ;;  %s2208_s2 = inlined_call_operand.vmem [shape: bf16[2,16,16,2], index: 2, kind: input, shape index: {}, may-alias: {0,1,2}]   ;;  %s2209_s3 = inlined_call_operand.vmem [shape: bf16[2,8], index: 3, kind: input, shape index: {}]   ;;  %s2210_s4 = inlined_call_operand.vmem [shape: f32[1,8], index: 4, kind: input, shape index: {}]   ;;  %s2211_s5 = inlined_call_operand.vmem [shape: f32[3,3,8], index: 5, kind: input, shape index: {}]   ;;  %s2212_s6 = inlined_call_operand.vmem [shape: f32[1,8], index: 6, kind: input, shape index: {}]   ;;  %s2213_s7 = inlined_call_operand.vmem [shape: bf16[2,16,16,8], index: 7, kind: output, shape index: {0}]   ;;  %s2214_s8 = inlined_call_operand.vmem [shape: f32[2,4,8,8], index: 8, kind: output, shape index: {1}]  }
   0x1   :  { %2216 = sst [smem:[#allocation3_spill]] %s2206_s0  ;;  %s1746_s29 = smov 0  }
   0x2   :  { %2217 = sst [smem:[#allocation4_spill]] %s2209_s3  ;;  %s1748_s30 = smov 0  }
   0x3   :  { %s1750_s9 = smov 0  }
   0x4 LB: > { %s28_s10 = sadd.s32 1, %s1685_s29  ;;  %s31_s11 = sadd.s32 1, %s1689_s30  ;;  %s1693_s9 = sphi %s1750_s9, %s19_s9   ;;  %s1689_s30 = sphi %s1748_s30, %s2227_s30   ;;  %s1685_s29 = sphi %s1746_s29, %s2226_s29   ;;  %s1681_s28 = sphi %s1744_s28, %s2225_s28   ;;  %s1677_s27 = sphi %s1742_s27, %s2224_s27  }
   0x5   : > { %p29_p0 = scmp.ge.s32.totalorder %s28_s10, 4  ;;  %p1413_p1 = scmp.ge.s32.totalorder %s1693_s9, 1 }
   0x6   : > { %p353_p2 = scmp.lt.s32.totalorder %s1693_s9, 9 }
   0x7   : > { %s2229_s10 = smov (%p29_p0, %s28_s10), 0  ;;  %s2231_s11 = smov (!%p29_p0, %s31_s11), %s1689_s30 }
   0x8   : > { %p354_p3 = pnand %p1413_p1, %p353_p2  ;;  %p33_p4 = scmp.ge.s32.totalorder %s2231_s11, 2 }
   0x9   : > { %s2219_s3 = sld [smem:[#allocation4_spill]] (!%p354_p3)  ;;  %s1414_s14 = sshll.u32 (!%p354_p3), %s1677_s27, 2 }
   0xa   : > { %s2233_s11 = smov (%p33_p4, %s2231_s11), 0  ;;  %357 = sbr.rel (%p354_p3) target bundleno = 366 (0x16e), region = 48 }
   0xb   : > { %2218 = sst [smem:[#allocation2_spill]] %s2233_s11  ;;  %p432_p5 = scmp.lt.s32.totalorder (!%p354_p3), %s1681_s28, 1 }
   0xc   : > { %p434_p6 = scmp.lt.s32.totalorder (!%p354_p3), %s1414_s14, 15  ;;  %s1419_s15 = sadd.s32 (!%p354_p3), 4294967295, %s1414_s14 }
   0xd   : > { %p444_p7 = scmp.gt.s32.totalorder (!%p354_p3), %s1419_s15, 0  ;;  %p1420_p8 = scmp.lt.s32.totalorder (!%p354_p3), %s1419_s15, 15 }
   0xe   : > { %s460_s20 = sadd.s32 (!%p354_p3), 4, %s1414_s14  ;;  %s2221_s0 = sld [smem:[#allocation3_spill]] (!%p354_p3) }
   0xf   : > { %v496_v0 = vld [vmem:[%s2219_s3] sm:$0x1]  ;;  %vm545_vm0 = vcmask 1040384   ;;  %v1695_v2 = vmov 0.0   ;;  %s2235_s28 = smov (!%p432_p5, %s1681_s28), 1  ;;  %vm1696_vm1 = vmmov 0   ;;  %v900_v50 = vlaneseq }
  0x10   : > { %v547_v1 = vsel %vm545_vm0, %v496_v0, 0  ;;  %1526 = vmatprep.subr.msk.bf16.mxu0 %vm545_vm0, %v496_v0  ;;  %1514 = vmatprep.subr.bf16.mxu1 %v1695_v2  ;;  %s435_s16 = scalar_select %p434_p6, %s1414_s14, 15  ;;  %vm532_vm2 = vcmask 15360   ;;  %v1441_v9 = vld [vmem:[%s2210_s4] ss:$0 sm:$0xff]  ;;  %vm860_vm3 = vcmask 1046528  }
  0x11   : > { %1505 = vmatpush3.bf16.msra.mxu0 %v547_v1  ;;  %1515 = vmatpush3.bf16.msra.mxu1 %v547_v1  ;;  %s1416_s17 = sshll.u32 %s2235_s28, 5  ;;  %p1787_p9 = scmp.lt.s32.totalorder %s460_s20, 15  ;;  %v901_v58 = vshrl.u32 %v900_v50, 7  ;;  %vm1183_vm4 = vcmask 60416   ;;  %vm1192_vm5 = vcmask 64512  }
  0x12   : > { %1516 = vmatprep.mubr.msk.bf16.mxu1 %vm1696_vm1, %v1695_v2  ;;  %1520 = vmatprep.subr.bf16.mxu1 %v1695_v2  ;;  %s1415_s18 = sshll.u32 %s435_s16, 1  ;;  %s2237_s15 = smov (!%p444_p7, %s1419_s15), 0 }
  0x13   : > { %s1784_s19 = sadd.s32 %s1416_s17, %s1415_s18  ;;  %s2239_s20 = smov (!%p1787_p9, %s460_s20), 15  ;;  %v922_v63 = vsub.s32 1, %v901_v58 }
  0x14   : > { %s2215_s21 = sshll.u32 %s1784_s19, 2  ;;  %s2241_s15 = smov (!%p1420_p8, %s2237_s15), 15 }
  0x15   : > { %s440_s25 = scalar_lea.vmem %s2221_s0, %s2215_s21  ;;  %s2243_s20 = smov (!%p1787_p9, %s2239_s20), 15 }
  0x16   : > { %v1569_v3 = vld [vmem:[%s440_s25] sm:$0xff]   ;;  %v1570_v4 = vld [vmem:[%s440_s25 + $0x8] sm:$0xff]   ;;  %v1572_v5 = vld [vmem:[%s440_s25 + $0x10] sm:$0xff]   ;;  %s1425_s26 = sshll.u32 %s2241_s15, 1  ;;  %s1432_s13 = sshll.u32 %s2243_s20, 1 }
  0x17   : > { %1506 = vmatprep.mubr.msk.bf16.mxu0 %vm532_vm2, %v1569_v3  ;;  %s452_s12 = sadd.s32 %s1425_s26, %s1416_s17  ;;  %s469_s16 = sadd.s32 %s1432_s13, %s1416_s17  ;;  %v1573_v6 = vld [vmem:[%s440_s25 + $0x18] sm:$0xff]  }
  0x18   : > { %1507 = vmatmul.mubr.msk.bf16.vlgmr.msra.gmra.mxu0 %vm532_vm2, %v1570_v4  ;;  %s1427_s14 = sshll.u32 %s452_s12, 2  ;;  %s1434_s21 = sshll.u32 %s469_s16, 2  ;;  %v898_v4 = vld [vmem:[%s2211_s5 + $0x4] sm:$0x7] }
  0x19   : > { %1510 = vmatprep.mubr.msk.bf16.mxu0 %vm532_vm2, %v1572_v5  ;;  %s454_s24 = scalar_lea.vmem %s2207_s1, %s1427_s14  ;;  %s471_s11 = scalar_lea.vmem %s2208_s2, %s1434_s21 }
  0x1a   : > { %v1571_v7 = vld [vmem:[%s454_s24] sm:$0xff]   ;;  %p735_p10 = scmp.gt.s32.totalorder %s1677_s27, 0  ;;  %p489_p11 = scmp.lt.s32.totalorder %s1677_s27, 3 }
  0x1b   : > { %1517 = vmatmul.mubr.msk.bf16.vlgmr.msra.gmra.mxu1 %vm532_vm2, %v1571_v7  ;;  %v1574_v8 = vld [vmem:[%s471_s11] sm:$0xff]   ;;  %v899_v7 = vld [vmem:[%s2211_s5 + $0x8] sm:$0x7]  ;;  %s2222_s18 = sshll.u32 %s1784_s19, 2  ;;  %s1439_s19 = sshll.u32 %s2235_s28, 2 }
  0x1c   : > { %1521 = vmatpush3.bf16.msra.mxu1 %v547_v1  ;;  %1522 = vmatprep.mubr.msk.bf16.mxu1 %vm1696_vm1, %v1695_v2  ;;  %s1854_s0 = scalar_select %p735_p10, 1, 0  ;;  %v897_v2 = vld [vmem:[%s2211_s5] sm:$0x7] }
  0x1d   : > { %s1864_s22 = scalar_select %p489_p11, 1, 0 }
  0x1e   : > { %s737_s12 = scvt.s32.f32 %s1854_s0  ;;  %s2152_s15 = scalar_lea.vmem %s2213_s7, %s2222_s18 }
  0x1f   : > { %s808_s13 = scvt.s32.f32 %s1864_s22  ;;  %s2245_s27 = smov (!%p489_p11, %s1677_s27), 3 }
  0x20   : > { %1511 = vmatmul.mubr.msk.bf16.gmra.mxu0 %vm532_vm2, %v1573_v6  ;;  %s492_s17 = sadd.s32 %s1439_s19, %s2245_s27 }
  0x21   : > { %s1440_s0 = sshll.u32 %s492_s17, 3 }
  0x22   : > { %s494_s20 = scalar_lea.vmem %s2214_s8, %s1440_s0 }
  0x23   : > { %1523 = vmatmul.mubr.msk.bf16.vlgmr.msra.gmra.mxu1 %vm532_vm2, %v1574_v8  ;;  %v902_v8 = vsub.s32 0, %v901_v58 }
  0xd8   : > { %v1508_v10 = vpop.f32.mrf.mxu0 }
  0xd9   : > { %v1816_v11 = vadd.f32 %v1508_v10, %v1441_v9 }
  0xda   : > { %v583_v12 = vpop.f32.mrf.mxu0 }
  0xdb   : > { %v1452_v13 = vmul.f32 -1.442695, %v1816_v11  ;;  %v1819_v14 = vadd.f32 %v1441_v9, %v583_v12  ;;  %v714_v19 = vpop.f32.mrf.mxu1  ;;  %v1869_v12 = vrot.slane %v897_v2, %v922_v63 }
  0xdc   : > { %v1509_v15 = vpop.f32.mrf.mxu0  ;;  %v1827_v22 = vadd.f32 %v1441_v9, %v714_v19 }
  0xdd   : > { %1575 = vpow2.f32 %v1452_v13  ;;  %v1450_v16 = vmul.f32 -1.442695, %v1819_v14  ;;  %v1822_v17 = vadd.f32 %v1509_v15, %v1441_v9  ;;  %v1518_v24 = vpop.f32.mrf.mxu1  ;;  %v1872_v15 = vrot.slane %v898_v4, %v922_v63 }
  0xde   : > { %v586_v18 = vpop.f32.mrf.mxu0  ;;  %v1460_v27 = vmul.f32 -1.442695, %v1827_v22 }
  0xdf   : > { %1577 = vpow2.f32 %v1450_v16  ;;  %v1453_v20 = vmul.f32 -1.442695, %v1822_v17  ;;  %v1825_v21 = vadd.f32 %v1441_v9, %v586_v18  ;;  %v717_v29 = vpop.f32.mrf.mxu1  ;;  %v942_v16 = vsub.s32 2, %v901_v58 }
  0xe0   : > { %v1512_v23 = vpop.f32.mrf.mxu0  ;;  %v1836_v32 = vadd.f32 %v1441_v9, %v717_v29 }
  0xe1   : > { %1579 = vpow2.f32 %v1453_v20  ;;  %v1451_v25 = vmul.f32 -1.442695, %v1825_v21  ;;  %v1830_v26 = vadd.f32 %v1512_v23, %v1441_v9  ;;  %v1519_v34 = vpop.f32.mrf.mxu1  ;;  %v1874_v20 = vrot.slane %v899_v7, %v922_v63 }
  0xe2   : > { %v599_v28 = vpop.f32.mrf.mxu0  ;;  %v1461_v37 = vmul.f32 -1.442695, %v1836_v32 }
  0xe3   : > { %1581 = vpow2.f32 %v1451_v25  ;;  %v1456_v30 = vmul.f32 -1.442695, %v1830_v26  ;;  %v1834_v31 = vadd.f32 %v1441_v9, %v599_v28  ;;  %v785_v39 = vpop.f32.mrf.mxu1  ;;  %v1880_v28 = vrot.slane %v898_v4, %v902_v8 }
  0xe4   : > { %1583 = vpow2.f32 %v1460_v27  ;;  %v1513_v33 = vpop.f32.mrf.mxu0  ;;  %v1845_v42 = vadd.f32 %v1441_v9, %v785_v39  ;;  %v1878_v27 = vrot.slane %v897_v2, %v902_v8 }
  0xe5   : > { %v1454_v35 = vmul.f32 -1.442695, %v1834_v31  ;;  %v1839_v36 = vadd.f32 %v1513_v33, %v1441_v9  ;;  %1585 = vpow2.f32 %v1456_v30  ;;  %v1524_v43 = vpop.f32.mrf.mxu1  ;;  %v1882_v30 = vrot.slane %v899_v7, %v902_v8 }
  0xe6   : > { %v602_v38 = vpop.f32.mrf.mxu0  ;;  %v1464_v46 = vmul.f32 -1.442695, %v1845_v42  ;;  %v1884_v33 = vstv %s737_s12  ;;  %v1895_v43 = vstv %s808_s13 }
  0xe7   : > { %1587 = vpow2.f32 %v1454_v35  ;;  %v1457_v40 = vmul.f32 -1.442695, %v1839_v36  ;;  %v1843_v41 = vadd.f32 %v1441_v9, %v602_v38  ;;  %v788_v48 = vpop.f32.mrf.mxu1  ;;  %v1888_v38 = vrot.slane %v898_v4, %v942_v16 }
  0xe8   : > { %1589 = vpow2.f32 %v1461_v37  ;;  %v1849_v51 = vadd.f32 %v1441_v9, %v788_v48  ;;  %v1886_v37 = vrot.slane %v897_v2, %v942_v16 }
  0xe9   : > { %1591 = vpow2.f32 %v1457_v40  ;;  %v1455_v44 = vmul.f32 -1.442695, %v1843_v41  ;;  %v1525_v53 = vpop.f32.mrf.mxu1  ;;  %v1893_v40 = vrot.slane %v899_v7, %v942_v16 }
  0xea   : > { %v1576_v45 = vpop.eup %1575  ;;  %v1465_v55 = vmul.f32 -1.442695, %v1849_v51 }
  0xeb   : > { %v640_v47 = vadd.f32 1.0, %v1576_v45  ;;  %1593 = vpow2.f32 %v1455_v44 }
  0xec   : > { %v1578_v49 = vpop.eup %1577  ;;  %1595 = vpow2.f32 %v1464_v46 }
  0xed   : > { %1597 = vrcp.f32 %v640_v47  ;;  %v638_v52 = vadd.f32 1.0, %v1578_v49 }
  0xee   : > { %v1580_v54 = vpop.eup %1579 }
  0xef   : > { %1599 = vrcp.f32 %v638_v52  ;;  %v641_v56 = vadd.f32 1.0, %v1580_v54 }
  0xf0   : > { %v1582_v57 = vpop.eup %1581  ;;  %1601 = vpow2.f32 %v1465_v55 }
  0xf1   : > { %v1584_v59 = vpop.eup %1583  ;;  %1603 = vrcp.f32 %v641_v56  ;;  %v639_v0 = vadd.f32 1.0, %v1582_v57 }
  0xf2   : > { %v727_v60 = vadd.f32 1.0, %v1584_v59  ;;  %v1586_v61 = vpop.eup %1585 }
  0xf3   : > { %v644_v6 = vadd.f32 1.0, %v1586_v61 }
  0xf4   : > { %v1588_v62 = vpop.eup %1587  ;;  %1605 = vrcp.f32 %v727_v60 }
  0xf5   : > { %v1590_v1 = vpop.eup %1589  ;;  %v642_v9 = vadd.f32 1.0, %v1588_v62  ;;  %1607 = vrcp.f32 %v639_v0 }
  0xf6   : > { %v1592_v3 = vpop.eup %1591  ;;  %v728_v5 = vadd.f32 1.0, %v1590_v1 }
  0xf7   : > { %v645_v18 = vadd.f32 1.0, %v1592_v3 }
  0xf8   : > { %v1594_v10 = vpop.eup %1593  ;;  %1609 = vrcp.f32 %v728_v5 }
  0xf9   : > { %v1596_v13 = vpop.eup %1595  ;;  %1611 = vrcp.f32 %v644_v6  ;;  %v643_v24 = vadd.f32 1.0, %v1594_v10 }
  0xfa   : > { %v1598_v19 = vpop.eup %1597  ;;  %v798_v23 = vadd.f32 1.0, %v1596_v13  ;;  %1613 = vrcp.f32 %v642_v9 }
  0xfb   : > { %v664_v25 = vmul.f32 %v1598_v19, %v1816_v11 }
  0xfc   : > { %v1600_v29 = vpop.eup %1599  ;;  %1615 = vrcp.f32 %v798_v23 }
  0xfd   : > { %v1602_v34 = vpop.eup %1601  ;;  %v830_v35 = vrot.slane %v664_v25, 7  ;;  %1617 = vrcp.f32 %v645_v18  ;;  %v1891_v39 = vmul.f32 %v1600_v29, %v1819_v14  ;;  %v867_v45 = vrot.slane %v664_v25, 1 }
  0xfe   : > { %v1604_v11 = vpop.eup %1603  ;;  %1619 = vrcp.f32 %v643_v24  ;;  %v928_v46 = vmul.f32 %v1869_v12, %v664_v25  ;;  %v1901_v48 = vmul.f32 %v1872_v15, %v664_v25  ;;  %v1904_v49 = vmul.f32 %v1874_v20, %v664_v25 }
  0xff   : > { %v856_v44 = vsel %vm545_vm0, 0.0, %v830_v35  ;;  %v665_v47 = vmul.f32 %v1604_v11, %v1822_v17  ;;  %v827_v14 = vrot.slane %v1891_v39, 7  ;;  %v1907_v50 = vadd.f32 1.0, %v1602_v34 }
 0x100   : > { %v908_v53 = vmul.f32 %v1878_v27, %v856_v44  ;;  %v1911_v54 = vmul.f32 %v1880_v28, %v856_v44  ;;  %v1914_v55 = vmul.f32 %v1882_v30, %v856_v44  ;;  %v864_v57 = vrot.slane %v1891_v39, 1 }
 0x101   : > { %v1606_v52 = vpop.eup %1605  ;;  %v831_v17 = vrot.slane %v665_v47, 7  ;;  %v855_v56 = vsel %vm545_vm0, 0.0, %v827_v14  ;;  %v868_v59 = vrot.slane %v665_v47, 1  ;;  %v926_v61 = vmul.f32 %v1869_v12, %v1891_v39 }
 0x102   : > { %v733_v58 = vmul.f32 %v1606_v52, %v1827_v22  ;;  %v906_v60 = vmul.f32 %v1878_v27, %v855_v56  ;;  %v929_v63 = vmul.f32 %v1869_v12, %v665_v47  ;;  %v1608_v4 = vpop.eup %1607  ;;  %v936_v22 = vadd.f32 %v928_v46, %v908_v53 }
 0x103   : > { %v832_v62 = vsel %vm545_vm0, %v830_v35, %v831_v17  ;;  %v869_v1 = vsel %vm860_vm3, %v867_v45, %v868_v59  ;;  %v893_v2 = vsel %vm860_vm3, %v868_v59, 0.0  ;;  %v1929_v6 = vmul.f32 %v1880_v28, %v855_v56 }
 0x104   : > { %v739_v0 = vmul.f32 %v1884_v33, %v733_v58  ;;  %v909_v3 = vmul.f32 %v1878_v27, %v832_v62  ;;  %v934_v5 = vadd.f32 %v926_v61, %v906_v60  ;;  %v1933_v7 = vmul.f32 %v1872_v15, %v1891_v39 }
 0x105   : > { %v1610_v8 = vpop.eup %1609  ;;  %v948_v13 = vmul.f32 %v1886_v37, %v869_v1  ;;  %v949_v16 = vmul.f32 %v1886_v37, %v893_v2  ;;  %v987_v24 = vmul.f32 %v1872_v15, %v665_v47  ;;  %v1940_v25 = vmul.f32 %v1888_v38, %v869_v1 }
 0x106   : > { %v824_v9 = vrot.slane %v739_v0, 7  ;;  %v937_v10 = vadd.f32 %v929_v63, %v909_v3  ;;  %v1612_v18 = vpop.eup %1611  ;;  %v861_v19 = vrot.slane %v739_v0, 1  ;;  %v924_v23 = vmul.f32 %v1869_v12, %v739_v0 }
 0x107   : > { %v1614_v29 = vpop.eup %1613  ;;  %v1944_v35 = vmul.f32 %v1888_v38, %v893_v2  ;;  %v1947_v11 = vmul.f32 %v1882_v30, %v832_v62  ;;  %v1950_v39 = vmul.f32 %v1874_v20, %v665_v47  ;;  %v663_v52 = vmul.f32 %v1608_v4, %v1825_v21 }
 0x108   : > { %v854_v34 = vsel %vm545_vm0, 0.0, %v824_v9  ;;  %v1953_v46 = vadd.f32 %v949_v16, %v937_v10  ;;  %v734_v53 = vmul.f32 %v1610_v8, %v1836_v32  ;;  %v1960_v56 = vmul.f32 %v1893_v40, %v869_v1 }
 0x109   : > { %v1616_v44 = vpop.eup %1615  ;;  %v904_v45 = vmul.f32 %v1878_v27, %v854_v34  ;;  %v1963_v58 = vmul.f32 %v1893_v40, %v893_v2  ;;  %v967_v47 = vmul.f32 %v1880_v28, %v832_v62  ;;  %v1967_v59 = vmul.f32 %v1612_v18, %v1830_v26 }
 0x10a   : > { %v1957_v17 = vpop.eup %1617  ;;  %v828_v61 = vrot.slane %v663_v52, 7  ;;  %v865_v63 = vrot.slane %v663_v52, 1  ;;  %v1972_v21 = vmul.f32 %v1614_v29, %v1834_v31  ;;  %v956_v32 = vadd.f32 %v948_v13, %v936_v22 }
 0x10b   : > { %v1969_v60 = vpop.eup %1619  ;;  %v932_v0 = vadd.f32 %v924_v23, %v904_v45  ;;  %v927_v1 = vmul.f32 %v1869_v12, %v663_v52  ;;  %v740_v3 = vmul.f32 %v1884_v33, %v734_v53  ;;  %v804_v2 = vmul.f32 %v1616_v44, %v1845_v42 }
 0x10c   : > { %v829_v62 = vsel %vm545_vm0, %v827_v14, %v828_v61  ;;  %v866_v26 = vsel %vm860_vm3, %v864_v57, %v865_v63  ;;  %v892_v4 = vsel %vm860_vm3, %v865_v63, 0.0  ;;  %v836_v8 = vrot.slane %v1967_v59, 7 }
 0x10d   : > { %v907_v10 = vmul.f32 %v1878_v27, %v829_v62  ;;  %v946_v31 = vmul.f32 %v1886_v37, %v866_v26  ;;  %v985_v22 = vmul.f32 %v1872_v15, %v663_v52  ;;  %v873_v13 = vrot.slane %v1967_v59, 1 }
 0x10e   : > { %v947_v33 = vmul.f32 %v1886_v37, %v892_v4  ;;  %v825_v16 = vrot.slane %v740_v3, 7  ;;  %v862_v42 = vrot.slane %v740_v3, 1  ;;  %v1988_v14 = vmul.f32 %v1872_v15, %v1967_v59 }
 0x10f   : > { %v935_v57 = vadd.f32 %v927_v1, %v907_v10  ;;  %v954_v18 = vadd.f32 %v946_v31, %v934_v5  ;;  %v965_v23 = vmul.f32 %v1880_v28, %v829_v62  ;;  %v925_v29 = vmul.f32 %v1869_v12, %v740_v3 }
 0x110   : > { %v826_v34 = vsel %vm545_vm0, %v824_v9, %v825_v16  ;;  %v863_v44 = vsel %vm860_vm3, %v861_v19, %v862_v42  ;;  %v891_v45 = vsel %vm860_vm3, %v862_v42, 0.0  ;;  %v858_v52 = vsel %vm545_vm0, 0.0, %v836_v8 }
 0x111   : > { %v955_v53 = vadd.f32 %v947_v33, %v935_v57  ;;  %v974_v61 = vadd.f32 %v1911_v54, %v954_v18  ;;  %v905_v63 = vmul.f32 %v1878_v27, %v826_v34  ;;  %v944_v5 = vmul.f32 %v1886_v37, %v863_v44 }
 0x112   : > { %v1004_v1 = vmul.f32 %v1888_v38, %v866_v26  ;;  %v1005_v3 = vmul.f32 %v1888_v38, %v892_v4  ;;  %v945_v9 = vmul.f32 %v1886_v37, %v891_v45  ;;  %v833_v19 = vrot.slane %v1972_v21, 7 }
 0x113   : > { %v975_v62 = vadd.f32 %v967_v47, %v955_v53  ;;  %v994_v10 = vadd.f32 %v1901_v48, %v974_v61  ;;  %v933_v31 = vadd.f32 %v925_v29, %v905_v63  ;;  %v952_v16 = vadd.f32 %v944_v5, %v932_v0 }
 0x114   : > { %v2007_v33 = vmul.f32 %v1880_v28, %v858_v52  ;;  %v2010_v54 = vmul.f32 %v1882_v30, %v858_v52  ;;  %v2014_v26 = vmul.f32 %v1874_v20, %v1967_v59  ;;  %v857_v4 = vsel %vm545_vm0, 0.0, %v833_v19  ;;  %v2071_v59 = vld [vmem:[%s2212_s6] ss:$0 sm:$0xff] }
 0x115   : > { %v995_v42 = vadd.f32 %v987_v24, %v975_v62  ;;  %v953_v47 = vadd.f32 %v945_v9, %v933_v31  ;;  %v972_v48 = vadd.f32 %v1929_v6, %v952_v16  ;;  %v870_v0 = vrot.slane %v1972_v21, 1 }
 0x116   : > { %v910_v57 = vmul.f32 %v1878_v27, %v857_v4  ;;  %v968_v18 = vmul.f32 %v1880_v28, %v857_v4  ;;  %v1014_v29 = vadd.f32 %v1940_v25, %v994_v10  ;;  %v1026_v34 = vmul.f32 %v1882_v30, %v857_v4 }
 0x117   : > { %v973_v44 = vadd.f32 %v965_v23, %v953_v47  ;;  %v992_v45 = vadd.f32 %v1933_v7, %v972_v48  ;;  %v930_v52 = vmul.f32 %v1869_v12, %v1972_v21  ;;  %v988_v24 = vmul.f32 %v1872_v15, %v1972_v21 }
 0x118   : > { %v976_v6 = vadd.f32 %v968_v18, %v956_v32  ;;  %v1034_v53 = vadd.f32 %v1026_v34, %v1014_v29  ;;  %v2031_v61 = vmul.f32 %v1895_v43, %v804_v2  ;;  %v669_v63 = vmul.f32 %v1957_v17, %v1839_v36 }
 0x119   : > { %v993_v25 = vadd.f32 %v985_v22, %v973_v44  ;;  %v1012_v5 = vadd.f32 %v1004_v1, %v992_v45  ;;  %v1046_v23 = vmul.f32 %v1874_v20, %v1972_v21  ;;  %1621 = vrcp.f32 %v1907_v50 }
 0x11a   : > { %v1015_v7 = vadd.f32 %v1944_v35, %v995_v42  ;;  %v938_v9 = vadd.f32 %v930_v52, %v910_v57  ;;  %v839_v62 = vrot.slane %v2031_v61, 7  ;;  %v667_v32 = vmul.f32 %v1969_v60, %v1843_v41 }
 0x11b   : > { %v1013_v2 = vadd.f32 %v1005_v3, %v993_v25  ;;  %v1032_v10 = vadd.f32 %v1914_v55, %v1012_v5  ;;  %v996_v31 = vadd.f32 %v988_v24, %v976_v6  ;;  %v837_v36 = vrot.slane %v669_v63, 7 }
 0x11c   : > { %v1054_v17 = vadd.f32 %v1046_v23, %v1034_v53  ;;  %v859_v22 = vsel %vm545_vm0, 0.0, %v839_v62  ;;  %v876_v50 = vrot.slane %v2031_v61, 1  ;;  %v874_v1 = vrot.slane %v669_v63, 1 }
 0x11d   : > { %v1033_v35 = vadd.f32 %v1947_v11, %v1013_v2  ;;  %v1052_v16 = vadd.f32 %v1904_v49, %v1032_v10  ;;  %v2051_v41 = vmul.f32 %v1874_v20, %v2031_v61  ;;  %v838_v55 = vsel %vm545_vm0, %v836_v8, %v837_v36 }
 0x11e   : > { %v875_v60 = vsel %vm860_vm3, %v873_v13, %v874_v1  ;;  %v895_v3 = vsel %vm860_vm3, %v874_v1, 0.0  ;;  %v991_v4 = vmul.f32 %v1872_v15, %v669_v63  ;;  %v2062_v11 = vmul.f32 %v1874_v20, %v669_v63 }
 0x11f   : > { %v1053_v49 = vadd.f32 %v1950_v39, %v1033_v35  ;;  %v1072_v42 = vadd.f32 %v1960_v56, %v1052_v16  ;;  %v1030_v47 = vmul.f32 %v1882_v30, %v859_v22  ;;  %v971_v48 = vmul.f32 %v1880_v28, %v838_v55 }
 0x120   : > { %v1010_v8 = vmul.f32 %v1888_v38, %v875_v60  ;;  %v1029_v13 = vmul.f32 %v1882_v30, %v838_v55  ;;  %v834_v57 = vrot.slane %v667_v32, 7  ;;  %v871_v18 = vrot.slane %v667_v32, 1 }
 0x121   : > { %v1073_v29 = vadd.f32 %v1963_v58, %v1053_v49  ;;  %v2077_v39 = vadd.f32 %v2071_v59, %v1072_v42  ;;  %v1011_v56 = vmul.f32 %v1888_v38, %v895_v3  ;;  %v931_v34 = vmul.f32 %v1869_v12, %v667_v32 }
 0x122   : > { %v835_v44 = vsel %vm545_vm0, %v833_v19, %v834_v57  ;;  %v872_v45 = vsel %vm860_vm3, %v870_v0, %v871_v18  ;;  %v894_v52 = vsel %vm860_vm3, %v871_v18, 0.0  ;;  %v989_v24 = vmul.f32 %v1872_v15, %v667_v32 }
 0x123   : > { %v2088_v6 = vadd.f32 %v2071_v59, %v1073_v29  ;;  %v1467_v58 = vmul.f32 -1.442695, %v2077_v39  ;;  %v911_v53 = vmul.f32 %v1878_v27, %v835_v44  ;;  %v950_v63 = vmul.f32 %v1886_v37, %v872_v45 }
 0x124   : > { %v951_v12 = vmul.f32 %v1886_v37, %v894_v52  ;;  %v969_v21 = vmul.f32 %v1880_v28, %v835_v44  ;;  %v1008_v19 = vmul.f32 %v1888_v38, %v872_v45  ;;  %v1047_v0 = vmul.f32 %v1874_v20, %v667_v32 }
 0x125   : > { %1623 = vpow2.f32 %v1467_v58  ;;  %v1468_v15 = vmul.f32 -1.442695, %v2088_v6  ;;  %v939_v25 = vadd.f32 %v931_v34, %v911_v53  ;;  %v958_v5 = vadd.f32 %v950_v63, %v938_v9 }
 0x126   : > { %v1622_v23 = vpop.eup %1621  ;;  %v977_v2 = vadd.f32 %v969_v21, %v1953_v46  ;;  %v1016_v10 = vadd.f32 %v1008_v19, %v996_v31  ;;  %v1027_v27 = vmul.f32 %v1882_v30, %v835_v44  ;;  %v1066_v36 = vmul.f32 %v1893_v40, %v872_v45 }
 0x127   : > { %1625 = vpow2.f32 %v1468_v15  ;;  %v959_v37 = vadd.f32 %v951_v12, %v939_v25  ;;  %v978_v28 = vadd.f32 %v2007_v33, %v958_v5  ;;  %v1009_v22 = vmul.f32 %v1888_v38, %v894_v52 }
 0x128   : > { %v997_v32 = vadd.f32 %v989_v24, %v977_v2  ;;  %v1035_v1 = vadd.f32 %v1027_v27, %v1015_v7  ;;  %v1036_v35 = vadd.f32 %v2010_v54, %v1016_v10  ;;  %v1074_v16 = vadd.f32 %v1066_v36, %v1054_v17 }
 0x129   : > { %v1067_v9 = vmul.f32 %v1893_v40, %v894_v52  ;;  %v805_v46 = vmul.f32 %v1622_v23, %v1849_v51  ;;  %v979_v31 = vadd.f32 %v971_v48, %v959_v37  ;;  %v998_v55 = vadd.f32 %v1988_v14, %v978_v28 }
 0x12a   : > { %v1017_v49 = vadd.f32 %v1009_v22, %v997_v32  ;;  %v1055_v42 = vadd.f32 %v1047_v0, %v1035_v1  ;;  %v1056_v57 = vadd.f32 %v2014_v26, %v1036_v35  ;;  %v2109_v33 = vadd.f32 %v2071_v59, %v1074_v16 }
 0x12b   : > { %v1068_v38 = vmul.f32 %v1893_v40, %v875_v60  ;;  %v811_v7 = vmul.f32 %v1895_v43, %v805_v46  ;;  %v999_v54 = vadd.f32 %v991_v4, %v979_v31  ;;  %v1018_v17 = vadd.f32 %v1010_v8, %v998_v55 }
 0x12c   : > { %v1069_v18 = vmul.f32 %v1893_v40, %v895_v3  ;;  %v1037_v29 = vadd.f32 %v1029_v13, %v1017_v49  ;;  %v1075_v51 = vadd.f32 %v1067_v9, %v1055_v42  ;;  %v1469_v48 = vmul.f32 -1.442695, %v2109_v33 }
 0x12d   : > { %v1076_v14 = vadd.f32 %v1068_v38, %v1056_v57  ;;  %v840_v34 = vrot.slane %v811_v7, 7  ;;  %v877_v44 = vrot.slane %v811_v7, 1  ;;  %v1038_v45 = vadd.f32 %v1030_v47, %v1018_v17 }
 0x12e   : > { %v1057_v26 = vadd.f32 %v2062_v11, %v1037_v29  ;;  %v2117_v52 = vadd.f32 %v2071_v59, %v1075_v51  ;;  %1627 = vpow2.f32 %v1469_v48  ;;  %v1019_v60 = vadd.f32 %v1011_v56, %v999_v54 }
 0x12f   : > { %v841_v43 = vsel %vm545_vm0, %v839_v62, %v840_v34  ;;  %v878_v3 = vsel %vm860_vm3, %v876_v50, %v877_v44  ;;  %v896_v4 = vsel %vm860_vm3, %v877_v44, 0.0  ;;  %v1058_v8 = vadd.f32 %v2051_v41, %v1038_v45 }
 0x130   : > { %v1077_v47 = vadd.f32 %v1069_v18, %v1057_v26  ;;  %v1470_v11 = vmul.f32 -1.442695, %v2117_v52  ;;  %v1031_v13 = vmul.f32 %v1882_v30, %v841_v43  ;;  %v1070_v24 = vmul.f32 %v1893_v40, %v878_v3 }
 0x131   : > { %v1051_v56 = vmul.f32 %v1874_v20, %v811_v7  ;;  %v2132_v58 = vadd.f32 %v2071_v59, %v1076_v14  ;;  %v1071_v63 = vmul.f32 %v1893_v40, %v896_v4 }
 0x132   : > { %v1624_v62 = vpop.eup %1623  ;;  %v2135_v61 = vadd.f32 %v2071_v59, %v1077_v47  ;;  %1629 = vpow2.f32 %v1470_v11  ;;  %v1039_v50 = vadd.f32 %v1031_v13, %v1019_v60  ;;  %v1078_v53 = vadd.f32 %v1070_v24, %v1058_v8 }
 0x133   : > { %v1119_v41 = vadd.f32 1.0, %v1624_v62  ;;  %v1471_v20 = vmul.f32 -1.442695, %v2132_v58 }
 0x134   : > { %v1626_v12 = vpop.eup %1625  ;;  %v1472_v30 = vmul.f32 -1.442695, %v2135_v61  ;;  %v1059_v21 = vadd.f32 %v1051_v56, %v1039_v50  ;;  %v2140_v19 = vadd.f32 %v2071_v59, %v1078_v53 }
 0x135   : > { %v1120_v0 = vadd.f32 1.0, %v1626_v12  ;;  %1631 = vrcp.f32 %v1119_v41 }
 0x136   : > { %1633 = vpow2.f32 %v1472_v30  ;;  %v1079_v15 = vadd.f32 %v1071_v63, %v1059_v21  ;;  %v1473_v25 = vmul.f32 -1.442695, %v2140_v19 }
 0x137   : > { %1635 = vrcp.f32 %v1120_v0 }
 0x138   : > { %v1094_v5 = vadd.f32 %v2071_v59, %v1079_v15  ;;  %1637 = vpow2.f32 %v1471_v20 }
 0x139   : > { %1639 = vpow2.f32 %v1473_v25 }
 0x13a   : > { %v1474_v40 = vmul.f32 -1.442695, %v1094_v5 }
 0x13b   : > { %v1628_v23 = vpop.eup %1627 }
 0x13c   : > { %v1121_v2 = vadd.f32 1.0, %v1628_v23  ;;  %1641 = vpow2.f32 %v1474_v40 }
 0x13e   : > { %1643 = vrcp.f32 %v1121_v2 }
 0x13f   : > { %v1630_v10 = vpop.eup %1629 }
 0x140   : > { %v1122_v27 = vadd.f32 1.0, %v1630_v10 }
 0x142   : > { %v1632_v36 = vpop.eup %1631  ;;  %1645 = vrcp.f32 %v1122_v27 }
 0x143   : > { %v1634_v37 = vpop.eup %1633  ;;  %v1143_v28 = vmul.f32 %v1632_v36, %v2077_v39 }
 0x144   : > { %v1636_v22 = vpop.eup %1635  ;;  %v1124_v32 = vadd.f32 1.0, %v1634_v37 }
 0x145   : > { %v1638_v1 = vpop.eup %1637  ;;  %v1144_v59 = vmul.f32 %v1636_v22, %v2088_v6  ;;  %v1487_v35 = vpack.c.bf16 %v1143_v28, %v1143_v28  ;;  %v1193_v57 = vsel %vm1192_vm5, %v1143_v28, 0.0 }
 0x146   : > { %v1640_v16 = vpop.eup %1639  ;;  %1647 = vrcp.f32 %v1124_v32  ;;  %v1123_v9 = vadd.f32 1.0, %v1638_v1 }
 0x147   : > { %v1488_v46 = vpack.c.bf16 %v1144_v59, %v1144_v59  ;;  %1184 = vst.msk [vmem:[%s2152_s15] sm:$0xf] %vm1183_vm4, %v1487_v35  ;;  %v1125_v39 = vadd.f32 1.0, %v1640_v16  ;;  %v1194_v31 = vsel %vm1192_vm5, %v1144_v59, 0.0 }
 0x148   : > { %1649 = vrcp.f32 %v1123_v9  ;;  %v1195_v38 = vadd.f32 %v1194_v31, %v1193_v57 }
 0x149   : > { %v1642_v6 = vpop.eup %1641  ;;  %1185 = vst.msk [vmem:[%s2152_s15 + $0x4] sm:$0xf] %vm1183_vm4, %v1488_v46  ;;  %1651 = vrcp.f32 %v1125_v39 }
 0x14a   : > { %v1126_v55 = vadd.f32 1.0, %v1642_v6 }
 0x14b   : > { %v1644_v49 = vpop.eup %1643 }
 0x14c   : > { %v1145_v42 = vmul.f32 %v1644_v49, %v2109_v33  ;;  %1653 = vrcp.f32 %v1126_v55 }
 0x14e   : > { %v1489_v7 = vpack.c.bf16 %v1145_v42, %v1145_v42  ;;  %v1196_v18 = vsel %vm1192_vm5, %v1145_v42, 0.0 }
 0x14f   : > { %v1646_v54 = vpop.eup %1645  ;;  %v1197_v29 = vadd.f32 %v1196_v18, %v1195_v38 }
 0x150   : > { %v1146_v17 = vmul.f32 %v1646_v54, %v2117_v52  ;;  %1186 = vst.msk [vmem:[%s2152_s15 + $0x8] sm:$0xf] %vm1183_vm4, %v1489_v7 }
 0x152   : > { %v1490_v51 = vpack.c.bf16 %v1146_v17, %v1146_v17  ;;  %v1198_v33 = vsel %vm1192_vm5, %v1146_v17, 0.0 }
 0x153   : > { %v1648_v48 = vpop.eup %1647  ;;  %v1199_v44 = vadd.f32 %v1198_v33, %v1197_v29 }
 0x154   : > { %1187 = vst.msk [vmem:[%s2152_s15 + $0xc] sm:$0xf] %vm1183_vm4, %v1490_v51  ;;  %v1148_v14 = vmul.f32 %v1648_v48, %v2135_v61 }
 0x155   : > { %v1650_v34 = vpop.eup %1649 }
 0x156   : > { %v1652_v45 = vpop.eup %1651  ;;  %v1147_v26 = vmul.f32 %v1650_v34, %v2132_v58  ;;  %v1492_v52 = vpack.c.bf16 %v1148_v14, %v1148_v14  ;;  %v1202_v13 = vsel %vm1192_vm5, %v1148_v14, 0.0 }
 0x157   : > { %v1149_v60 = vmul.f32 %v1652_v45, %v2140_v19 }
 0x158   : > { %v1491_v43 = vpack.c.bf16 %v1147_v26, %v1147_v26  ;;  %1189 = vst.msk [vmem:[%s2152_s15 + $0x14] sm:$0xf] %vm1183_vm4, %v1492_v52  ;;  %v1200_v3 = vsel %vm1192_vm5, %v1147_v26, 0.0 }
 0x159   : > { %v1654_v4 = vpop.eup %1653  ;;  %v1493_v8 = vpack.c.bf16 %v1149_v60, %v1149_v60  ;;  %v1201_v47 = vadd.f32 %v1200_v3, %v1199_v44  ;;  %v1204_v58 = vsel %vm1192_vm5, %v1149_v60, 0.0 }
 0x15a   : > { %v1150_v11 = vmul.f32 %v1654_v4, %v1094_v5  ;;  %1188 = vst.msk [vmem:[%s2152_s15 + $0x10] sm:$0xf] %vm1183_vm4, %v1491_v43 }
 0x15b   : > { %1190 = vst.msk [vmem:[%s2152_s15 + $0x18] sm:$0xf] %vm1183_vm4, %v1493_v8  ;;  %v1203_v24 = vadd.f32 %v1202_v13, %v1201_v47 }
 0x15c   : > { %v1494_v56 = vpack.c.bf16 %v1150_v11, %v1150_v11  ;;  %v1206_v61 = vsel %vm1192_vm5, %v1150_v11, 0.0 }
 0x15d   : > { %v1205_v62 = vadd.f32 %v1204_v58, %v1203_v24 }
 0x15e   : > { %1191 = vst.msk [vmem:[%s2152_s15 + $0x1c] sm:$0xf] %vm1183_vm4, %v1494_v56 }
 0x15f   : > { %v1207_v50 = vadd.f32 %v1206_v61, %v1205_v62 }
 0x161   : > { %v1208_v53 = vrot.slane %v1207_v50, 4 }
 0x163   : > { %v1209_v41 = vadd.f32 %v1208_v53, %v1207_v50 }
 0x165   : > { %v1210_v63 = vrot.slane %v1209_v41, 2 }
 0x167   : > { %v1211_v12 = vadd.f32 %v1210_v63, %v1209_v41 }
 0x169   : > { %v1212_v30 = vrot.slane %v1211_v12, 1 }
 0x16b   : > { %v1213_v21 = vadd.f32 %v1212_v30, %v1211_v12 }
 0x16d   : > { %1214 = vst.msk [vmem:[%s494_s20] sm:$0xff] %vm1192_vm5, %v1213_v21 }
 0x16e PF: > { %s19_s9 = sadd.s32 1, %s1693_s9   ;;  %s2223_s21 = sld [smem:[#allocation2_spill]] }
 0x16f   : > { %p16_p12 = scmp.ge.s32.totalorder %s19_s9, 10   ;;  %s2224_s27 = smov %s1685_s29 }
 0x170   : > { %s2225_s28 = smov %s1689_s30  ;;  %s2226_s29 = smov %s2229_s10 }
 0x171   :  { %18 = sbr.rel (!%p16_p12) target bundleno = 4 (0x4), region = 96 }
 0x174   : > { %s2227_s30 = smov %s2223_s21 }

// kernel: c2f_embc_v2.4
= control target key start
LH: loop header
LB: loop body
LE: loop exit
PB: predicated region body
PF: predicated region fallthrough
CT: control target
= control target key end

     0   :  { %s1537_s15 = smov 0   ;;  %s1940_s0 = inlined_call_operand.vmem [shape: bf16[512,4], index: 0, kind: input, shape index: {}]   ;;  %s1941_s1 = inlined_call_operand.vmem [shape: bf16[4,4], index: 1, kind: input, shape index: {}]   ;;  %s1942_s2 = inlined_call_operand.vmem [shape: f32[1,4], index: 2, kind: input, shape index: {}]   ;;  %s1943_s3 = inlined_call_operand.vmem [shape: bf16[512,2], index: 3, kind: output, shape index: {0}]   ;;  %s1944_s4 = inlined_call_operand.vmem [shape: bf16[512,2], index: 4, kind: output, shape index: {1}]  }
   0x1 LB: > { %s1153_s16 = sadd.s32 4294967295, %s1509_s15   ;;  %p1157_p0 = scmp.ge.s32.totalorder %s1509_s15, 1  ;;  %s1509_s15 = sphi %s1537_s15, %s15_s15  }
   0x2   : > { %p166_p1 = scmp.lt.s32.totalorder %s1509_s15, 3 }
   0x4   : > { %p167_p2 = pnand %p1157_p0, %p166_p1 }
   0x5   : > { %s1158_s19 = sshll.u32 (!%p167_p2), %s1153_s16, 5  ;;  %s1511_s29 = smov (!%p167_p2), 126  }
   0x6   : > { %170 = sbr.rel (%p167_p2) target bundleno = 427 (0x1ab), region = 32  ;;  %p198_p3 = scmp.lt.s32.totalorder (!%p167_p2), %s1158_s19, 63 }
   0xb   : > { %v248_v0 = vld [vmem:[%s1941_s1] sm:$0x3]  ;;  %vm385_vm0 = vcmask 1041408   ;;  %s1946_s19 = smov (!%p198_p3, %s1158_s19), 63  ;;  %vm336_vm1 = vcmask 31744   ;;  %vm902_vm2 = vcmask 11264  }
   0xc   : > { %1348 = vmatprep.subr.msk.bf16.mxu0 %vm385_vm0, %v248_v0  ;;  %1349 = vmatprep.subr.msk.bf16.mxu1 %vm385_vm0, %v248_v0  ;;  %v387_v1 = vsel %vm385_vm0, %v248_v0, 0  ;;  %s1548_s20 = sshll.u32 %s1946_s19, 2  ;;  %v1591_v18 = vld [vmem:[%s1942_s2] ss:$0 sm:$0xff] }
   0xd   : > { %1313 = vmatpush3.bf16.msra.mxu0 %v387_v1  ;;  %1347 = vmatpush3.bf16.msra.mxu1 %v387_v1  ;;  %s1554_s23 = scalar_lea.vmem %s1940_s0, %s1548_s20  ;;  %s1702_s28 = scalar_lea.vmem %s1943_s3, %s1548_s20 }
   0xe   : > { %v1359_v2 = vld [vmem:[%s1554_s23] sm:$0xff]   ;;  %v1361_v4 = vld [vmem:[%s1554_s23 + $0x8] sm:$0xff]   ;;  %v1363_v6 = vld [vmem:[%s1554_s23 + $0x10] sm:$0xff]   ;;  %s1871_s6 = scalar_lea.vmem %s1944_s4, %s1548_s20 }
   0xf   : > { %v1360_v3 = vld [vmem:[%s1554_s23 + $0x40] sm:$0xff]   ;;  %1314 = vmatprep.mubr.msk.bf16.mxu0 %vm336_vm1, %v1359_v2  ;;  %v1362_v5 = vld [vmem:[%s1554_s23 + $0x48] sm:$0xff]   ;;  %v1364_v7 = vld [vmem:[%s1554_s23 + $0x50] sm:$0xff]  }
  0x10   : > { %1330 = vmatprep.mubr.msk.bf16.mxu1 %vm336_vm1, %v1360_v3  ;;  %1315 = vmatmul.mubr.msk.bf16.vlgmr.msra.gmra.mxu0 %vm336_vm1, %v1361_v4  ;;  %v1365_v8 = vld [vmem:[%s1554_s23 + $0x18] sm:$0xff]   ;;  %v1367_v10 = vld [vmem:[%s1554_s23 + $0x20] sm:$0xff]   ;;  %v1369_v12 = vld [vmem:[%s1554_s23 + $0x28] sm:$0xff]  }
  0x11   : > { %1331 = vmatmul.mubr.msk.bf16.vlgmr.msra.gmra.mxu1 %vm336_vm1, %v1362_v5  ;;  %1318 = vmatprep.mubr.msk.bf16.mxu0 %vm336_vm1, %v1363_v6  ;;  %v1366_v9 = vld [vmem:[%s1554_s23 + $0x58] sm:$0xff]   ;;  %v1368_v11 = vld [vmem:[%s1554_s23 + $0x60] sm:$0xff]   ;;  %v1370_v13 = vld [vmem:[%s1554_s23 + $0x68] sm:$0xff]  }
  0x12   : > { %1334 = vmatprep.mubr.msk.bf16.mxu1 %vm336_vm1, %v1364_v7  ;;  %v1371_v14 = vld [vmem:[%s1554_s23 + $0x30] sm:$0xff]   ;;  %v1373_v16 = vld [vmem:[%s1554_s23 + $0x38] sm:$0xff]  }
  0x13   : > { %v1372_v15 = vld [vmem:[%s1554_s23 + $0x70] sm:$0xff]   ;;  %v1374_v17 = vld [vmem:[%s1554_s23 + $0x78] sm:$0xff]  }
  0x18   : > { %1319 = vmatmul.mubr.msk.bf16.gmra.mxu0 %vm336_vm1, %v1365_v8 }
  0x19   : > { %1335 = vmatmul.mubr.msk.bf16.gmra.mxu1 %vm336_vm1, %v1366_v9  ;;  %1322 = vmatprep.mubr.msk.bf16.mxu0 %vm336_vm1, %v1367_v10 }
  0x1a   : > { %1338 = vmatprep.mubr.msk.bf16.mxu1 %vm336_vm1, %v1368_v11 }
  0x20   : > { %1323 = vmatmul.mubr.msk.bf16.gmra.mxu0 %vm336_vm1, %v1369_v12 }
  0x21   : > { %1339 = vmatmul.mubr.msk.bf16.gmra.mxu1 %vm336_vm1, %v1370_v13  ;;  %1326 = vmatprep.mubr.msk.bf16.mxu0 %vm336_vm1, %v1371_v14 }
  0x22   : > { %1342 = vmatprep.mubr.msk.bf16.mxu1 %vm336_vm1, %v1372_v15 }
  0x28   : > { %1327 = vmatmul.mubr.msk.bf16.gmra.mxu0 %vm336_vm1, %v1373_v16 }
  0x29   : > { %1343 = vmatmul.mubr.msk.bf16.gmra.mxu1 %vm336_vm1, %v1374_v17 }
  0xd0   : > { %v1316_v19 = vpop.f32.mrf.mxu0 }
  0xd1   : > { %v1594_v20 = vadd.f32 %v1316_v19, %v1591_v18  ;;  %v1332_v21 = vpop.f32.mrf.mxu1 }
  0xd2   : > { %v1597_v22 = vadd.f32 %v1332_v21, %v1591_v18  ;;  %v423_v23 = vpop.f32.mrf.mxu0 }
  0xd3   : > { %v1199_v24 = vmul.f32 -1.442695, %v1594_v20  ;;  %v1601_v25 = vadd.f32 %v1591_v18, %v423_v23  ;;  %v487_v26 = vpop.f32.mrf.mxu1 }
  0xd4   : > { %v1215_v27 = vmul.f32 -1.442695, %v1597_v22  ;;  %v1605_v28 = vadd.f32 %v1591_v18, %v487_v26  ;;  %v1317_v29 = vpop.f32.mrf.mxu0 }
  0xd5   : > { %1375 = vpow2.f32 %v1199_v24  ;;  %v1197_v30 = vmul.f32 -1.442695, %v1601_v25  ;;  %v1609_v31 = vadd.f32 %v1317_v29, %v1591_v18  ;;  %v1333_v32 = vpop.f32.mrf.mxu1 }
  0xd6   : > { %1377 = vpow2.f32 %v1215_v27  ;;  %v1213_v33 = vmul.f32 -1.442695, %v1605_v28  ;;  %v1613_v34 = vadd.f32 %v1333_v32, %v1591_v18  ;;  %v426_v35 = vpop.f32.mrf.mxu0 }
  0xd7   : > { %1379 = vpow2.f32 %v1197_v30  ;;  %v1200_v36 = vmul.f32 -1.442695, %v1609_v31  ;;  %v1617_v37 = vadd.f32 %v1591_v18, %v426_v35  ;;  %v490_v38 = vpop.f32.mrf.mxu1 }
  0xd8   : > { %1381 = vpow2.f32 %v1213_v33  ;;  %v1216_v39 = vmul.f32 -1.442695, %v1613_v34  ;;  %v1621_v40 = vadd.f32 %v1591_v18, %v490_v38  ;;  %v1320_v41 = vpop.f32.mrf.mxu0 }
  0xd9   : > { %1383 = vpow2.f32 %v1200_v36  ;;  %v1198_v42 = vmul.f32 -1.442695, %v1617_v37  ;;  %v1625_v43 = vadd.f32 %v1320_v41, %v1591_v18  ;;  %v1336_v44 = vpop.f32.mrf.mxu1 }
  0xda   : > { %1385 = vpow2.f32 %v1216_v39  ;;  %v1214_v45 = vmul.f32 -1.442695, %v1621_v40  ;;  %v1629_v46 = vadd.f32 %v1336_v44, %v1591_v18  ;;  %v439_v47 = vpop.f32.mrf.mxu0 }
  0xdb   : > { %1387 = vpow2.f32 %v1198_v42  ;;  %v1203_v48 = vmul.f32 -1.442695, %v1625_v43  ;;  %v1633_v49 = vadd.f32 %v1591_v18, %v439_v47  ;;  %v503_v50 = vpop.f32.mrf.mxu1 }
  0xdc   : > { %1389 = vpow2.f32 %v1214_v45  ;;  %v1219_v51 = vmul.f32 -1.442695, %v1629_v46  ;;  %v1637_v52 = vadd.f32 %v1591_v18, %v503_v50  ;;  %v1321_v53 = vpop.f32.mrf.mxu0 }
  0xdd   : > { %1391 = vpow2.f32 %v1203_v48  ;;  %v1201_v54 = vmul.f32 -1.442695, %v1633_v49  ;;  %v1641_v55 = vadd.f32 %v1321_v53, %v1591_v18  ;;  %v1337_v56 = vpop.f32.mrf.mxu1 }
  0xde   : > { %1393 = vpow2.f32 %v1219_v51  ;;  %v1217_v57 = vmul.f32 -1.442695, %v1637_v52  ;;  %v1645_v58 = vadd.f32 %v1337_v56, %v1591_v18  ;;  %v442_v59 = vpop.f32.mrf.mxu0 }
  0xdf   : > { %1395 = vpow2.f32 %v1201_v54  ;;  %v1204_v60 = vmul.f32 -1.442695, %v1641_v55  ;;  %v1649_v61 = vadd.f32 %v1591_v18, %v442_v59  ;;  %v506_v62 = vpop.f32.mrf.mxu1 }
  0xe0   : > { %1397 = vpow2.f32 %v1217_v57  ;;  %v1220_v63 = vmul.f32 -1.442695, %v1645_v58  ;;  %v1653_v0 = vadd.f32 %v1591_v18, %v506_v62  ;;  %v1324_v1 = vpop.f32.mrf.mxu0 }
  0xe1   : > { %1399 = vpow2.f32 %v1204_v60  ;;  %v1202_v2 = vmul.f32 -1.442695, %v1649_v61  ;;  %v1340_v3 = vpop.f32.mrf.mxu1  ;;  %v1658_v26 = vadd.f32 %v1324_v1, %v1591_v18 }
  0xe2   : > { %v1376_v4 = vpop.eup %1375  ;;  %1401 = vpow2.f32 %v1220_v63  ;;  %v1218_v5 = vmul.f32 -1.442695, %v1653_v0  ;;  %v455_v6 = vpop.f32.mrf.mxu0  ;;  %v1661_v36 = vadd.f32 %v1340_v3, %v1591_v18 }
  0xe3   : > { %v1378_v7 = vpop.eup %1377  ;;  %v648_v8 = vadd.f32 1.0, %v1376_v4  ;;  %1403 = vpow2.f32 %v1202_v2  ;;  %v519_v9 = vpop.f32.mrf.mxu1  ;;  %v1664_v41 = vadd.f32 %v1591_v18, %v455_v6  ;;  %v1207_v45 = vmul.f32 -1.442695, %v1658_v26 }
  0xe4   : > { %v1380_v10 = vpop.eup %1379  ;;  %v664_v11 = vadd.f32 1.0, %v1378_v7  ;;  %1405 = vpow2.f32 %v1218_v5  ;;  %v1325_v12 = vpop.f32.mrf.mxu0  ;;  %v1668_v51 = vadd.f32 %v1591_v18, %v519_v9  ;;  %v1223_v59 = vmul.f32 -1.442695, %v1661_v36 }
  0xe5   : > { %v1382_v13 = vpop.eup %1381  ;;  %1407 = vrcp.f32 %v648_v8  ;;  %v646_v14 = vadd.f32 1.0, %v1380_v10  ;;  %v1341_v15 = vpop.f32.mrf.mxu1  ;;  %v1671_v53 = vadd.f32 %v1325_v12, %v1591_v18  ;;  %v1205_v1 = vmul.f32 -1.442695, %v1664_v41 }
  0xe6   : > { %v1384_v16 = vpop.eup %1383  ;;  %1409 = vrcp.f32 %v664_v11  ;;  %v662_v17 = vadd.f32 1.0, %v1382_v13  ;;  %v458_v27 = vpop.f32.mrf.mxu0  ;;  %v1675_v60 = vadd.f32 %v1341_v15, %v1591_v18  ;;  %v1221_v10 = vmul.f32 -1.442695, %v1668_v51 }
  0xe7   : > { %v1386_v19 = vpop.eup %1385  ;;  %1411 = vrcp.f32 %v646_v14  ;;  %v649_v21 = vadd.f32 1.0, %v1384_v16  ;;  %v522_v32 = vpop.f32.mrf.mxu1  ;;  %v1679_v2 = vadd.f32 %v1591_v18, %v458_v27  ;;  %v1208_v11 = vmul.f32 -1.442695, %v1671_v53 }
  0xe8   : > { %v1388_v23 = vpop.eup %1387  ;;  %1413 = vrcp.f32 %v662_v17  ;;  %v665_v24 = vadd.f32 1.0, %v1386_v19  ;;  %v1328_v47 = vpop.f32.mrf.mxu0  ;;  %v1682_v5 = vadd.f32 %v1591_v18, %v522_v32  ;;  %v1224_v15 = vmul.f32 -1.442695, %v1675_v60 }
  0xe9   : > { %v1390_v29 = vpop.eup %1389  ;;  %1415 = vrcp.f32 %v649_v21  ;;  %v647_v30 = vadd.f32 1.0, %v1388_v23  ;;  %v1344_v54 = vpop.f32.mrf.mxu1  ;;  %v1685_v6 = vadd.f32 %v1328_v47, %v1591_v18  ;;  %v1206_v19 = vmul.f32 -1.442695, %v1679_v2 }
  0xea   : > { %v1392_v33 = vpop.eup %1391  ;;  %1417 = vrcp.f32 %v665_v24  ;;  %v663_v35 = vadd.f32 1.0, %v1390_v29  ;;  %v471_v7 = vpop.f32.mrf.mxu0  ;;  %v1691_v16 = vadd.f32 %v1344_v54, %v1591_v18  ;;  %v1222_v27 = vmul.f32 -1.442695, %v1682_v5 }
  0xeb   : > { %v1394_v38 = vpop.eup %1393  ;;  %1419 = vrcp.f32 %v647_v30  ;;  %v652_v39 = vadd.f32 1.0, %v1392_v33  ;;  %v535_v12 = vpop.f32.mrf.mxu1  ;;  %v1695_v21 = vadd.f32 %v1591_v18, %v471_v7  ;;  %v1211_v29 = vmul.f32 -1.442695, %v1685_v6 }
  0xec   : > { %v1396_v42 = vpop.eup %1395  ;;  %1421 = vrcp.f32 %v663_v35  ;;  %v668_v44 = vadd.f32 1.0, %v1394_v38  ;;  %v1329_v30 = vpop.f32.mrf.mxu0  ;;  %v1227_v47 = vmul.f32 -1.442695, %v1691_v16 }
  0xed   : > { %v1398_v48 = vpop.eup %1397  ;;  %1423 = vrcp.f32 %v652_v39  ;;  %v650_v50 = vadd.f32 1.0, %v1396_v42  ;;  %v1345_v38 = vpop.f32.mrf.mxu1 }
  0xee   : > { %v1400_v56 = vpop.eup %1399  ;;  %1425 = vrcp.f32 %v668_v44  ;;  %v666_v57 = vadd.f32 1.0, %v1398_v48 }
  0xef   : > { %v1402_v62 = vpop.eup %1401  ;;  %1427 = vrcp.f32 %v650_v50  ;;  %v653_v63 = vadd.f32 1.0, %v1400_v56 }
  0xf0   : > { %v1404_v3 = vpop.eup %1403  ;;  %1429 = vrcp.f32 %v666_v57  ;;  %v669_v4 = vadd.f32 1.0, %v1402_v62  ;;  %v1720_v57 = vadd.f32 %v1329_v30, %v1591_v18 }
  0xf1   : > { %v1406_v8 = vpop.eup %1405  ;;  %1431 = vrcp.f32 %v653_v63  ;;  %v651_v9 = vadd.f32 1.0, %v1404_v3 }
  0xf2   : > { %v1408_v13 = vpop.eup %1407  ;;  %1433 = vrcp.f32 %v669_v4  ;;  %v667_v14 = vadd.f32 1.0, %v1406_v8  ;;  %v1733_v8 = vadd.f32 %v1345_v38, %v1591_v18 }
  0xf3   : > { %v1410_v17 = vpop.eup %1409  ;;  %1435 = vrcp.f32 %v651_v9  ;;  %v744_v23 = vmul.f32 %v1408_v13, %v1594_v20  ;;  %v1709_v20 = vadd.f32 %v1591_v18, %v535_v12 }
  0xf4   : > { %v1412_v24 = vpop.eup %1411  ;;  %1437 = vrcp.f32 %v667_v14  ;;  %v760_v32 = vmul.f32 %v1410_v17, %v1597_v22 }
  0xf5   : > { %v1414_v33 = vpop.eup %1413  ;;  %v742_v35 = vmul.f32 %v1412_v24, %v1601_v25  ;;  %1439 = vpow2.f32 %v1207_v45  ;;  %v1265_v39 = vpack.c.bf16 %v744_v23, %v744_v23  ;;  %v1209_v45 = vmul.f32 -1.442695, %v1695_v21 }
  0xf6   : > { %v1416_v42 = vpop.eup %1415  ;;  %v758_v44 = vmul.f32 %v1414_v33, %v1605_v28  ;;  %1441 = vpow2.f32 %v1223_v59  ;;  %v1281_v48 = vpack.c.bf16 %v760_v32, %v760_v32  ;;  %v474_v59 = vpop.f32.mrf.mxu0  ;;  %v1228_v24 = vmul.f32 -1.442695, %v1733_v8 }
  0xf7   : > { %v1418_v50 = vpop.eup %1417  ;;  %v1263_v22 = vpack.c.bf16 %v742_v35, %v742_v35  ;;  %v745_v25 = vmul.f32 %v1416_v42, %v1609_v31  ;;  %1443 = vpow2.f32 %v1205_v1  ;;  %939 = vrot.lane.b32.xlu1 %v1265_v39, %s1511_s29  ;;  %905 = vst.msk [vmem:[%s1702_s28 + $0x8] sm:$0xf] %vm902_vm2, %v1265_v39  ;;  %v1225_v1 = vmul.f32 -1.442695, %v1709_v20 }
  0xf8   : > { %v1420_v54 = vpop.eup %1419  ;;  %v1279_v28 = vpack.c.bf16 %v758_v44, %v758_v44  ;;  %v761_v56 = vmul.f32 %v1418_v50, %v1613_v34  ;;  %1445 = vpow2.f32 %v1221_v10  ;;  %971 = vrot.lane.b32.xlu0 %v1281_v48, %s1511_s29  ;;  %921 = vst.msk [vmem:[%s1702_s28 + $0x48] sm:$0xf] %vm902_vm2, %v1281_v48  ;;  %v538_v34 = vpop.f32.mrf.mxu1 }
  0xf9   : > { %v1422_v31 = vpop.eup %1421  ;;  %903 = vst.msk [vmem:[%s1702_s28] sm:$0xf] %vm902_vm2, %v1263_v22  ;;  %v1266_v62 = vpack.c.bf16 %v745_v25, %v745_v25  ;;  %v743_v63 = vmul.f32 %v1420_v54, %v1617_v37  ;;  %1447 = vpow2.f32 %v1208_v11  ;;  %v1739_v11 = vadd.f32 %v1591_v18, %v474_v59 }
  0xfa   : > { %v1424_v3 = vpop.eup %1423  ;;  %919 = vst.msk [vmem:[%s1702_s28 + $0x40] sm:$0xf] %vm902_vm2, %v1279_v28  ;;  %v1282_v4 = vpack.c.bf16 %v761_v56, %v761_v56  ;;  %v759_v7 = vmul.f32 %v1422_v31, %v1621_v40  ;;  %1449 = vpow2.f32 %v1224_v15  ;;  %v1746_v14 = vadd.f32 %v1591_v18, %v538_v34 }
  0xfb   : > { %v1426_v9 = vpop.eup %1425  ;;  %906 = vst.msk [vmem:[%s1702_s28 + $0xc] sm:$0xf] %vm902_vm2, %v1266_v62  ;;  %v1264_v37 = vpack.c.bf16 %v743_v63, %v743_v63  ;;  %v748_v10 = vmul.f32 %v1424_v3, %v1625_v43  ;;  %1451 = vpow2.f32 %v1206_v19  ;;  %941 = vrot.lane.b32.xlu1 %v1266_v62, %s1511_s29  ;;  %v1212_v19 = vmul.f32 -1.442695, %v1720_v57 }
  0xfc   : > { %v1428_v12 = vpop.eup %1427  ;;  %922 = vst.msk [vmem:[%s1702_s28 + $0x4c] sm:$0xf] %vm902_vm2, %v1282_v4  ;;  %v1280_v40 = vpack.c.bf16 %v759_v7, %v759_v7  ;;  %v764_v13 = vmul.f32 %v1426_v9, %v1629_v46  ;;  %1453 = vpow2.f32 %v1222_v27  ;;  %935 = vrot.lane.b32.xlu0 %v1263_v22, %s1511_s29  ;;  %v1226_v35 = vmul.f32 -1.442695, %v1746_v14 }
  0xfd   : > { %v1430_v43 = vpop.eup %1429  ;;  %904 = vst.msk [vmem:[%s1702_s28 + $0x4] sm:$0xf] %vm902_vm2, %v1264_v37  ;;  %v1269_v15 = vpack.c.bf16 %v748_v10, %v748_v10  ;;  %v746_v17 = vmul.f32 %v1428_v12, %v1633_v49  ;;  %1455 = vpow2.f32 %v1211_v29  ;;  %v1210_v29 = vmul.f32 -1.442695, %v1739_v11 }
  0xfe   : > { %v1432_v23 = vpop.eup %1431  ;;  %920 = vst.msk [vmem:[%s1702_s28 + $0x44] sm:$0xf] %vm902_vm2, %v1280_v40  ;;  %v1755_v46 = vpack.c.bf16 %v764_v13, %v764_v13  ;;  %v762_v18 = vmul.f32 %v1430_v43, %v1637_v52  ;;  %1457 = vpow2.f32 %v1227_v47 }
  0xff   : > { %v1434_v27 = vpop.eup %1433  ;;  %909 = vst.msk [vmem:[%s1702_s28 + $0x18] sm:$0xf] %vm902_vm2, %v1269_v15  ;;  %v1761_v30 = vpack.c.bf16 %v746_v17, %v746_v17  ;;  %v749_v49 = vmul.f32 %v1432_v23, %v1641_v55  ;;  %1459 = vpow2.f32 %v1209_v45  ;;  %973 = vrot.lane.b32.xlu1 %v1282_v4, %s1511_s29 }
 0x100   : > { %v1436_v32 = vpop.eup %1435  ;;  %925 = vst.msk [vmem:[%s1702_s28 + $0x58] sm:$0xf] %vm902_vm2, %v1755_v46  ;;  %v1769_v52 = vpack.c.bf16 %v762_v18, %v762_v18  ;;  %v765_v33 = vmul.f32 %v1434_v27, %v1645_v58  ;;  %1461 = vpow2.f32 %v1225_v1  ;;  %967 = vrot.lane.b32.xlu0 %v1279_v28, %s1511_s29 }
 0x101   : > { %v1438_v55 = vpop.eup %1437  ;;  %907 = vst.msk [vmem:[%s1702_s28 + $0x10] sm:$0xf] %vm902_vm2, %v1761_v30  ;;  %v1270_v38 = vpack.c.bf16 %v749_v49, %v749_v49  ;;  %v747_v39 = vmul.f32 %v1436_v32, %v1649_v61  ;;  %1463 = vpow2.f32 %v1212_v19 }
 0x102   : > { %v1440_v42 = vpop.eup %1439  ;;  %923 = vst.msk [vmem:[%s1702_s28 + $0x50] sm:$0xf] %vm902_vm2, %v1769_v52  ;;  %v1286_v44 = vpack.c.bf16 %v765_v33, %v765_v33  ;;  %v763_v58 = vmul.f32 %v1438_v55, %v1653_v0  ;;  %1465 = vpow2.f32 %v1228_v24 }
 0x103   : > { %v1442_v47 = vpop.eup %1441  ;;  %910 = vst.msk [vmem:[%s1702_s28 + $0x1c] sm:$0xf] %vm902_vm2, %v1270_v38  ;;  %v1268_v48 = vpack.c.bf16 %v747_v39, %v747_v39  ;;  %v656_v50 = vadd.f32 1.0, %v1440_v42  ;;  %1467 = vpow2.f32 %v1210_v29  ;;  %969 = vrot.lane.b32.xlu1 %v1280_v40, %s1511_s29 }
 0x104   : > { %v1444_v61 = vpop.eup %1443  ;;  %926 = vst.msk [vmem:[%s1702_s28 + $0x5c] sm:$0xf] %vm902_vm2, %v1286_v44  ;;  %v1284_v22 = vpack.c.bf16 %v763_v58, %v763_v58  ;;  %v672_v25 = vadd.f32 1.0, %v1442_v47  ;;  %1469 = vpow2.f32 %v1226_v35  ;;  %937 = vrot.lane.b32.xlu0 %v1264_v37, %s1511_s29 }
 0x105   : > { %v1446_v45 = vpop.eup %1445  ;;  %908 = vst.msk [vmem:[%s1702_s28 + $0x14] sm:$0xf] %vm902_vm2, %v1268_v48  ;;  %1471 = vrcp.f32 %v656_v50  ;;  %v654_v0 = vadd.f32 1.0, %v1444_v61 }
 0x106   : > { %v1448_v54 = vpop.eup %1447  ;;  %924 = vst.msk [vmem:[%s1702_s28 + $0x54] sm:$0xf] %vm902_vm2, %v1284_v22  ;;  %1473 = vrcp.f32 %v672_v25  ;;  %v670_v28 = vadd.f32 1.0, %v1446_v45 }
 0x107   : > { %v1450_v56 = vpop.eup %1449  ;;  %1475 = vrcp.f32 %v654_v0  ;;  %v657_v59 = vadd.f32 1.0, %v1448_v54  ;;  %949 = vrot.lane.b32.xlu1 %v1270_v38, %s1511_s29 }
 0x108   : > { %v1452_v31 = vpop.eup %1451  ;;  %1477 = vrcp.f32 %v670_v28  ;;  %v673_v62 = vadd.f32 1.0, %v1450_v56  ;;  %947 = vrot.lane.b32.xlu0 %v1269_v15, %s1511_s29 }
 0x109   : > { %v1454_v63 = vpop.eup %1453  ;;  %1479 = vrcp.f32 %v657_v59  ;;  %v655_v1 = vadd.f32 1.0, %v1452_v31 }
 0x10a   : > { %v1456_v34 = vpop.eup %1455  ;;  %1481 = vrcp.f32 %v673_v62  ;;  %v671_v3 = vadd.f32 1.0, %v1454_v63 }
 0x10b   : > { %v1458_v4 = vpop.eup %1457  ;;  %1483 = vrcp.f32 %v655_v1  ;;  %v660_v7 = vadd.f32 1.0, %v1456_v34  ;;  %981 = vrot.lane.b32.xlu1 %v1286_v44, %s1511_s29 }
 0x10c   : > { %v1460_v9 = vpop.eup %1459  ;;  %1485 = vrcp.f32 %v671_v3  ;;  %v676_v37 = vadd.f32 1.0, %v1458_v4  ;;  %979 = vrot.lane.b32.xlu0 %v1755_v46, %s1511_s29 }
 0x10d   : > { %v1462_v10 = vpop.eup %1461  ;;  %1487 = vrcp.f32 %v660_v7  ;;  %v658_v12 = vadd.f32 1.0, %v1460_v9 }
 0x10e   : > { %v1464_v40 = vpop.eup %1463  ;;  %1489 = vrcp.f32 %v676_v37  ;;  %v674_v13 = vadd.f32 1.0, %v1462_v10 }
 0x10f   : > { %v1466_v43 = vpop.eup %1465  ;;  %1491 = vrcp.f32 %v658_v12  ;;  %v661_v15 = vadd.f32 1.0, %v1464_v40  ;;  %945 = vrot.lane.b32.xlu1 %v1268_v48, %s1511_s29 }
 0x110   : > { %v1468_v17 = vpop.eup %1467  ;;  %1493 = vrcp.f32 %v674_v13  ;;  %v677_v19 = vadd.f32 1.0, %v1466_v43  ;;  %943 = vrot.lane.b32.xlu0 %v1761_v30, %s1511_s29 }
 0x111   : > { %v1470_v23 = vpop.eup %1469  ;;  %1495 = vrcp.f32 %v661_v15  ;;  %v659_v46 = vadd.f32 1.0, %v1468_v17 }
 0x112   : > { %v1472_v18 = vpop.eup %1471  ;;  %1497 = vrcp.f32 %v677_v19  ;;  %v675_v24 = vadd.f32 1.0, %v1470_v23 }
 0x113   : > { %v1474_v27 = vpop.eup %1473  ;;  %v752_v49 = vmul.f32 %v1472_v18, %v1658_v26  ;;  %1499 = vrcp.f32 %v659_v46  ;;  %977 = vrot.lane.b32.xlu1 %v1284_v22, %s1511_s29 }
 0x114   : > { %v1476_v29 = vpop.eup %1475  ;;  %v768_v32 = vmul.f32 %v1474_v27, %v1661_v36  ;;  %1501 = vrcp.f32 %v675_v24  ;;  %975 = vrot.lane.b32.xlu0 %v1769_v52, %s1511_s29 }
 0x115   : > { %v1478_v30 = vpop.eup %1477  ;;  %v1273_v33 = vpack.c.bf16 %v752_v49, %v752_v49  ;;  %v750_v35 = vmul.f32 %v1476_v29, %v1664_v41 }
 0x116   : > { %v1480_v55 = vpop.eup %1479  ;;  %v1289_v38 = vpack.c.bf16 %v768_v32, %v768_v32  ;;  %v766_v26 = vmul.f32 %v1478_v30, %v1668_v51 }
 0x117   : > { %v1482_v39 = vpop.eup %1481  ;;  %913 = vst.msk [vmem:[%s1702_s28 + $0x28] sm:$0xf] %vm902_vm2, %v1273_v33  ;;  %v1271_v42 = vpack.c.bf16 %v750_v35, %v750_v35  ;;  %v753_v36 = vmul.f32 %v1480_v55, %v1671_v53 }
 0x118   : > { %v1484_v44 = vpop.eup %1483  ;;  %929 = vst.msk [vmem:[%s1702_s28 + $0x68] sm:$0xf] %vm902_vm2, %v1289_v38  ;;  %v1287_v52 = vpack.c.bf16 %v766_v26, %v766_v26  ;;  %v769_v58 = vmul.f32 %v1482_v39, %v1675_v60  ;;  %955 = vrot.lane.b32.xlu0 %v1273_v33, %s1511_s29 }
 0x119   : > { %v1486_v41 = vpop.eup %1485  ;;  %911 = vst.msk [vmem:[%s1702_s28 + $0x20] sm:$0xf] %vm902_vm2, %v1271_v42  ;;  %v1274_v51 = vpack.c.bf16 %v753_v36, %v753_v36  ;;  %v751_v47 = vmul.f32 %v1484_v44, %v1679_v2 }
 0x11a   : > { %v1488_v48 = vpop.eup %1487  ;;  %927 = vst.msk [vmem:[%s1702_s28 + $0x60] sm:$0xf] %vm902_vm2, %v1287_v52  ;;  %v1290_v53 = vpack.c.bf16 %v769_v58, %v769_v58  ;;  %v767_v50 = vmul.f32 %v1486_v41, %v1682_v5 }
 0x11b   : > { %v1490_v61 = vpop.eup %1489  ;;  %914 = vst.msk [vmem:[%s1702_s28 + $0x2c] sm:$0xf] %vm902_vm2, %v1274_v51  ;;  %v1272_v60 = vpack.c.bf16 %v751_v47, %v751_v47  ;;  %v756_v22 = vmul.f32 %v1488_v48, %v1685_v6  ;;  %957 = vrot.lane.b32.xlu1 %v1274_v51, %s1511_s29 }
 0x11c   : > { %v1492_v25 = vpop.eup %1491  ;;  %930 = vst.msk [vmem:[%s1702_s28 + $0x6c] sm:$0xf] %vm902_vm2, %v1290_v53  ;;  %v1288_v2 = vpack.c.bf16 %v767_v50, %v767_v50  ;;  %v772_v45 = vmul.f32 %v1490_v61, %v1691_v16  ;;  %987 = vrot.lane.b32.xlu0 %v1289_v38, %s1511_s29 }
 0x11d   : > { %v1494_v5 = vpop.eup %1493  ;;  %912 = vst.msk [vmem:[%s1702_s28 + $0x24] sm:$0xf] %vm902_vm2, %v1272_v60  ;;  %v1277_v0 = vpack.c.bf16 %v756_v22, %v756_v22  ;;  %v754_v54 = vmul.f32 %v1492_v25, %v1695_v21 }
 0x11e   : > { %v1496_v6 = vpop.eup %1495  ;;  %928 = vst.msk [vmem:[%s1702_s28 + $0x64] sm:$0xf] %vm902_vm2, %v1288_v2  ;;  %v1293_v28 = vpack.c.bf16 %v772_v45, %v772_v45  ;;  %v770_v56 = vmul.f32 %v1494_v5, %v1709_v20 }
 0x11f   : > { %v1498_v59 = vpop.eup %1497  ;;  %917 = vst.msk [vmem:[%s1702_s28 + $0x38] sm:$0xf] %vm902_vm2, %v1277_v0  ;;  %v1275_v16 = vpack.c.bf16 %v754_v54, %v754_v54  ;;  %v757_v31 = vmul.f32 %v1496_v6, %v1720_v57  ;;  %989 = vrot.lane.b32.xlu1 %v1290_v53, %s1511_s29 }
 0x120   : > { %v1500_v62 = vpop.eup %1499  ;;  %933 = vst.msk [vmem:[%s1702_s28 + $0x78] sm:$0xf] %vm902_vm2, %v1293_v28  ;;  %v1291_v21 = vpack.c.bf16 %v770_v56, %v770_v56  ;;  %v773_v63 = vmul.f32 %v1498_v59, %v1733_v8  ;;  %951 = vrot.lane.b32.xlu0 %v1271_v42, %s1511_s29 }
 0x121   : > { %v1502_v20 = vpop.eup %1501  ;;  %915 = vst.msk [vmem:[%s1702_s28 + $0x30] sm:$0xf] %vm902_vm2, %v1275_v16  ;;  %v1278_v1 = vpack.c.bf16 %v757_v31, %v757_v31  ;;  %v755_v34 = vmul.f32 %v1500_v62, %v1739_v11 }
 0x122   : > { %931 = vst.msk [vmem:[%s1702_s28 + $0x70] sm:$0xf] %vm902_vm2, %v1291_v21  ;;  %v1294_v57 = vpack.c.bf16 %v773_v63, %v773_v63  ;;  %v771_v3 = vmul.f32 %v1502_v20, %v1746_v14 }
 0x123   : > { %918 = vst.msk [vmem:[%s1702_s28 + $0x3c] sm:$0xf] %vm902_vm2, %v1278_v1  ;;  %v1276_v4 = vpack.c.bf16 %v755_v34, %v755_v34  ;;  %953 = vrot.lane.b32.xlu1 %v1272_v60, %s1511_s29 }
 0x124   : > { %934 = vst.msk [vmem:[%s1702_s28 + $0x7c] sm:$0xf] %vm902_vm2, %v1294_v57  ;;  %v1292_v8 = vpack.c.bf16 %v771_v3, %v771_v3  ;;  %983 = vrot.lane.b32.xlu0 %v1287_v52, %s1511_s29 }
 0x125   : > { %916 = vst.msk [vmem:[%s1702_s28 + $0x34] sm:$0xf] %vm902_vm2, %v1276_v4 }
 0x126   : > { %932 = vst.msk [vmem:[%s1702_s28 + $0x74] sm:$0xf] %vm902_vm2, %v1292_v8 }
 0x127   : > { %985 = vrot.lane.b32.xlu1 %v1288_v2, %s1511_s29 }
 0x128   : > { %963 = vrot.lane.b32.xlu0 %v1277_v0, %s1511_s29 }
 0x12b   : > { %965 = vrot.lane.b32.xlu1 %v1278_v1, %s1511_s29 }
 0x12c   : > { %959 = vrot.lane.b32.xlu0 %v1275_v16, %s1511_s29 }
 0x12f   : > { %961 = vrot.lane.b32.xlu1 %v1276_v4, %s1511_s29 }
 0x130   : > { %991 = vrot.lane.b32.xlu0 %v1291_v21, %s1511_s29 }
 0x133   : > { %993 = vrot.lane.b32.xlu1 %v1292_v8, %s1511_s29 }
 0x134   : > { %995 = vrot.lane.b32.xlu0 %v1293_v28, %s1511_s29 }
 0x137   : > { %997 = vrot.lane.b32.xlu1 %v1294_v57, %s1511_s29 }
 0x169   : > { %v940_v11 = vpop.permute.xlu1 %939 }
 0x16a   : > { %v972_v14 = vpop.permute.xlu0 %971  ;;  %1033 = vst.msk [vmem:[%s1871_s6 + $0x8] sm:$0xf] %vm902_vm2, %v940_v11 }
 0x16b   : > { %1049 = vst.msk [vmem:[%s1871_s6 + $0x48] sm:$0xf] %vm902_vm2, %v972_v14 }
 0x16d   : > { %v942_v7 = vpop.permute.xlu1 %941 }
 0x16e   : > { %1034 = vst.msk [vmem:[%s1871_s6 + $0xc] sm:$0xf] %vm902_vm2, %v942_v7  ;;  %v936_v9 = vpop.permute.xlu0 %935 }
 0x16f   : > { %1031 = vst.msk [vmem:[%s1871_s6] sm:$0xf] %vm902_vm2, %v936_v9 }
 0x171   : > { %v974_v37 = vpop.permute.xlu1 %973 }
 0x172   : > { %1050 = vst.msk [vmem:[%s1871_s6 + $0x4c] sm:$0xf] %vm902_vm2, %v974_v37  ;;  %v968_v10 = vpop.permute.xlu0 %967 }
 0x173   : > { %1047 = vst.msk [vmem:[%s1871_s6 + $0x40] sm:$0xf] %vm902_vm2, %v968_v10 }
 0x175   : > { %v970_v12 = vpop.permute.xlu1 %969 }
 0x176   : > { %1048 = vst.msk [vmem:[%s1871_s6 + $0x44] sm:$0xf] %vm902_vm2, %v970_v12  ;;  %v938_v40 = vpop.permute.xlu0 %937 }
 0x177   : > { %1032 = vst.msk [vmem:[%s1871_s6 + $0x4] sm:$0xf] %vm902_vm2, %v938_v40 }
 0x179   : > { %v950_v13 = vpop.permute.xlu1 %949 }
 0x17a   : > { %1038 = vst.msk [vmem:[%s1871_s6 + $0x1c] sm:$0xf] %vm902_vm2, %v950_v13  ;;  %v948_v43 = vpop.permute.xlu0 %947 }
 0x17b   : > { %1037 = vst.msk [vmem:[%s1871_s6 + $0x18] sm:$0xf] %vm902_vm2, %v948_v43 }
 0x17d   : > { %v982_v15 = vpop.permute.xlu1 %981 }
 0x17e   : > { %1054 = vst.msk [vmem:[%s1871_s6 + $0x5c] sm:$0xf] %vm902_vm2, %v982_v15  ;;  %v980_v17 = vpop.permute.xlu0 %979 }
 0x17f   : > { %1053 = vst.msk [vmem:[%s1871_s6 + $0x58] sm:$0xf] %vm902_vm2, %v980_v17 }
 0x181   : > { %v946_v19 = vpop.permute.xlu1 %945 }
 0x182   : > { %1036 = vst.msk [vmem:[%s1871_s6 + $0x14] sm:$0xf] %vm902_vm2, %v946_v19  ;;  %v944_v23 = vpop.permute.xlu0 %943 }
 0x183   : > { %1035 = vst.msk [vmem:[%s1871_s6 + $0x10] sm:$0xf] %vm902_vm2, %v944_v23 }
 0x185   : > { %v978_v46 = vpop.permute.xlu1 %977 }
 0x186   : > { %1052 = vst.msk [vmem:[%s1871_s6 + $0x54] sm:$0xf] %vm902_vm2, %v978_v46  ;;  %v976_v18 = vpop.permute.xlu0 %975 }
 0x187   : > { %1051 = vst.msk [vmem:[%s1871_s6 + $0x50] sm:$0xf] %vm902_vm2, %v976_v18 }
 0x18a   : > { %v956_v24 = vpop.permute.xlu0 %955 }
 0x18b   : > { %1041 = vst.msk [vmem:[%s1871_s6 + $0x28] sm:$0xf] %vm902_vm2, %v956_v24 }
 0x18d   : > { %v958_v27 = vpop.permute.xlu1 %957 }
 0x18e   : > { %1042 = vst.msk [vmem:[%s1871_s6 + $0x2c] sm:$0xf] %vm902_vm2, %v958_v27  ;;  %v988_v49 = vpop.permute.xlu0 %987 }
 0x18f   : > { %1057 = vst.msk [vmem:[%s1871_s6 + $0x68] sm:$0xf] %vm902_vm2, %v988_v49 }
 0x191   : > { %v990_v29 = vpop.permute.xlu1 %989 }
 0x192   : > { %1058 = vst.msk [vmem:[%s1871_s6 + $0x6c] sm:$0xf] %vm902_vm2, %v990_v29  ;;  %v952_v32 = vpop.permute.xlu0 %951 }
 0x193   : > { %1039 = vst.msk [vmem:[%s1871_s6 + $0x20] sm:$0xf] %vm902_vm2, %v952_v32 }
 0x195   : > { %v954_v30 = vpop.permute.xlu1 %953 }
 0x196   : > { %1040 = vst.msk [vmem:[%s1871_s6 + $0x24] sm:$0xf] %vm902_vm2, %v954_v30  ;;  %v984_v33 = vpop.permute.xlu0 %983 }
 0x197   : > { %1055 = vst.msk [vmem:[%s1871_s6 + $0x60] sm:$0xf] %vm902_vm2, %v984_v33 }
 0x199   : > { %v986_v35 = vpop.permute.xlu1 %985 }
 0x19a   : > { %1056 = vst.msk [vmem:[%s1871_s6 + $0x64] sm:$0xf] %vm902_vm2, %v986_v35  ;;  %v964_v55 = vpop.permute.xlu0 %963 }
 0x19b   : > { %1045 = vst.msk [vmem:[%s1871_s6 + $0x38] sm:$0xf] %vm902_vm2, %v964_v55 }
 0x19d   : > { %v966_v38 = vpop.permute.xlu1 %965 }
 0x19e   : > { %1046 = vst.msk [vmem:[%s1871_s6 + $0x3c] sm:$0xf] %vm902_vm2, %v966_v38  ;;  %v960_v26 = vpop.permute.xlu0 %959 }
 0x19f   : > { %1043 = vst.msk [vmem:[%s1871_s6 + $0x30] sm:$0xf] %vm902_vm2, %v960_v26 }
 0x1a1   : > { %v962_v39 = vpop.permute.xlu1 %961 }
 0x1a2   : > { %1044 = vst.msk [vmem:[%s1871_s6 + $0x34] sm:$0xf] %vm902_vm2, %v962_v39  ;;  %v992_v42 = vpop.permute.xlu0 %991 }
 0x1a3   : > { %1059 = vst.msk [vmem:[%s1871_s6 + $0x70] sm:$0xf] %vm902_vm2, %v992_v42 }
 0x1a5   : > { %v994_v36 = vpop.permute.xlu1 %993 }
 0x1a6   : > { %1060 = vst.msk [vmem:[%s1871_s6 + $0x74] sm:$0xf] %vm902_vm2, %v994_v36  ;;  %v996_v44 = vpop.permute.xlu0 %995 }
 0x1a7   : > { %1061 = vst.msk [vmem:[%s1871_s6 + $0x78] sm:$0xf] %vm902_vm2, %v996_v44 }
 0x1a9   : > { %v998_v52 = vpop.permute.xlu1 %997 }
 0x1aa   : > { %1062 = vst.msk [vmem:[%s1871_s6 + $0x7c] sm:$0xf] %vm902_vm2, %v998_v52 }
 0x1ab PF: > { %s15_s15 = sadd.s32 1, %s1509_s15  }
 0x1ac   : > { %p12_p4 = scmp.ge.s32.totalorder %s15_s15, 4  }
 0x1ae   :  { %14 = sbr.rel (!%p12_p4) target bundleno = 1 (0x1), region = 74 }

// kernel: c2f_embc_v2.7
= control target key start
LH: loop header
LB: loop body
LE: loop exit
PB: predicated region body
PF: predicated region fallthrough
CT: control target
= control target key end

     0   :  { %s1690_s18 = smov 0   ;;  %s2090_s0 = inlined_call_operand.vmem [shape: bf16[512,2], index: 0, kind: input, shape index: {}]   ;;  %s2091_s1 = inlined_call_operand.vmem [shape: bf16[512,2], index: 1, kind: input, shape index: {}]   ;;  %s2092_s2 = inlined_call_operand.vmem [shape: bf16[512,2], index: 2, kind: input, shape index: {}]   ;;  %s2093_s3 = inlined_call_operand.vmem [shape: bf16[6,4], index: 3, kind: input, shape index: {}]   ;;  %s2094_s4 = inlined_call_operand.vmem [shape: f32[1,4], index: 4, kind: input, shape index: {}]   ;;  %s2095_s5 = inlined_call_operand.vmem [shape: f32[512,4], index: 5, kind: output, shape index: {}]  }
   0x1 LB: > { %s1297_s19 = sadd.s32 4294967295, %s1656_s18   ;;  %p1301_p0 = scmp.ge.s32.totalorder %s1656_s18, 1  ;;  %s1656_s18 = sphi %s1690_s18, %s15_s18  }
   0x2   : > { %p210_p1 = scmp.lt.s32.totalorder %s1656_s18, 3 }
   0x4   : > { %p211_p2 = pnand %p1301_p0, %p210_p1 }
   0x5   : > { %s1302_s20 = sshll.u32 (!%p211_p2), %s1297_s19, 5  ;;  %s1658_s27 = smov (!%p211_p2), 2  }
   0x6   : > { %214 = sbr.rel (%p211_p2) target bundleno = 436 (0x1b4), region = 40  ;;  %p249_p3 = scmp.lt.s32.totalorder (!%p211_p2), %s1302_s20, 63 }
   0x7   : > { %s1659_s6 = smov (!%p211_p2), 4  }
   0xb   : > { %s2097_s20 = smov (!%p249_p3, %s1302_s20), 63  ;;  %v755_v0 = vld [vmem:[%s2093_s3] sm:$0x7]  ;;  %vm796_vm0 = vcmask 1042432   ;;  %vm673_vm1 = vcmask 15360   ;;  %vm722_vm2 = vcmask 31744  }
   0xc   : > { %s1704_s23 = sshll.u32 %s2097_s20, 2  ;;  %1462 = vmatprep.subr.msk.bf16.mxu0 %vm796_vm0, %v755_v0  ;;  %1463 = vmatprep.subr.msk.bf16.mxu1 %vm796_vm0, %v755_v0  ;;  %v798_v1 = vsel %vm796_vm0, %v755_v0, 0  ;;  %vm763_vm3 = vcmask 48128   ;;  %s1309_s12 = sshll.u32 %s2097_s20, 3 }
   0xd   : > { %s1710_s26 = scalar_lea.vmem %s2091_s1, %s1704_s23  ;;  %1427 = vmatpush3.bf16.msra.mxu0 %v798_v1  ;;  %1461 = vmatpush3.bf16.msra.mxu1 %v798_v1  ;;  %s1722_s30 = scalar_lea.vmem %s2092_s2, %s1704_s23 }
   0xe   : > { %v1474_v2 = vld [vmem:[%s1710_s26 + $0x8] sm:$0xff]   ;;  %v1475_v3 = vld [vmem:[%s1710_s26] sm:$0xff]   ;;  %v1482_v10 = vld [vmem:[%s1710_s26 + $0x50] sm:$0xff]   ;;  %s1754_s9 = scalar_lea.vmem %s2090_s0, %s1704_s23  ;;  %s1928_s15 = scalar_lea.vmem %s2095_s5, %s1309_s12 }
   0xf   : > { %531 = vrot.lane.b32.xlu1 %v1474_v2, %s1658_s27  ;;  %v1476_v4 = vld [vmem:[%s1710_s26 + $0x48] sm:$0xff]   ;;  %529 = vrot.lane.b32.xlu0 %v1475_v3, %s1658_s27  ;;  %v1477_v5 = vld [vmem:[%s1710_s26 + $0x40] sm:$0xff]  }
  0x10   : > { %v1478_v6 = vld [vmem:[%s1722_s30 + $0x40] sm:$0xff]   ;;  %v1480_v8 = vld [vmem:[%s1722_s30 + $0x48] sm:$0xff]   ;;  %v1483_v11 = vld [vmem:[%s1710_s26 + $0x10] sm:$0xff]  }
  0x11   : > { %v1479_v7 = vld [vmem:[%s1722_s30] sm:$0xff]   ;;  %v1481_v9 = vld [vmem:[%s1722_s30 + $0x8] sm:$0xff]   ;;  %v1484_v12 = vld [vmem:[%s1710_s26 + $0x58] sm:$0xff]  }
  0x12   : > { %v1485_v13 = vld [vmem:[%s1710_s26 + $0x18] sm:$0xff]   ;;  %v1486_v14 = vld [vmem:[%s1722_s30 + $0x50] sm:$0xff]   ;;  %v1490_v18 = vld [vmem:[%s1710_s26 + $0x60] sm:$0xff]  }
  0x13   : > { %547 = vrot.lane.b32.xlu1 %v1476_v4, %s1658_s27  ;;  %545 = vrot.lane.b32.xlu0 %v1477_v5, %s1658_s27  ;;  %v1487_v15 = vld [vmem:[%s1722_s30 + $0x10] sm:$0xff]   ;;  %v1488_v16 = vld [vmem:[%s1722_s30 + $0x58] sm:$0xff]  }
  0x14   : > { %v1489_v17 = vld [vmem:[%s1722_s30 + $0x18] sm:$0xff]   ;;  %v1491_v19 = vld [vmem:[%s1710_s26 + $0x20] sm:$0xff]   ;;  %v1492_v20 = vld [vmem:[%s1710_s26 + $0x68] sm:$0xff]  }
  0x15   : > { %v1493_v21 = vld [vmem:[%s1710_s26 + $0x28] sm:$0xff]   ;;  %v1494_v22 = vld [vmem:[%s1722_s30 + $0x60] sm:$0xff]   ;;  %v1498_v26 = vld [vmem:[%s1710_s26 + $0x70] sm:$0xff]  }
  0x16   : > { %v1495_v23 = vld [vmem:[%s1722_s30 + $0x20] sm:$0xff]   ;;  %v1496_v24 = vld [vmem:[%s1722_s30 + $0x68] sm:$0xff]   ;;  %v1499_v27 = vld [vmem:[%s1710_s26 + $0x30] sm:$0xff]  }
  0x17   : > { %657 = vrot.lane.b32.xlu1 %v1478_v6, %s1659_s6  ;;  %641 = vrot.lane.b32.xlu0 %v1479_v7, %s1659_s6  ;;  %v1497_v25 = vld [vmem:[%s1722_s30 + $0x28] sm:$0xff]   ;;  %v1500_v28 = vld [vmem:[%s1710_s26 + $0x78] sm:$0xff]  }
  0x18   : > { %v1501_v29 = vld [vmem:[%s1710_s26 + $0x38] sm:$0xff]   ;;  %v1502_v30 = vld [vmem:[%s1722_s30 + $0x70] sm:$0xff]   ;;  %v1509_v37 = vld [vmem:[%s1754_s9 + $0x40] sm:$0xff]  }
  0x19   : > { %v1503_v31 = vld [vmem:[%s1722_s30 + $0x30] sm:$0xff]   ;;  %v1504_v32 = vld [vmem:[%s1722_s30 + $0x78] sm:$0xff]   ;;  %v1507_v38 = vld [vmem:[%s1754_s9] sm:$0xff]  }
  0x1a   : > { %v1505_v33 = vld [vmem:[%s1722_s30 + $0x38] sm:$0xff]   ;;  %v1508_v40 = vld [vmem:[%s1754_s9 + $0x48] sm:$0xff]   ;;  %v1510_v56 = vld [vmem:[%s1754_s9 + $0x50] sm:$0xff]  }
  0x1b   : > { %659 = vrot.lane.b32.xlu1 %v1480_v8, %s1659_s6  ;;  %643 = vrot.lane.b32.xlu0 %v1481_v9, %s1659_s6  ;;  %v1506_v43 = vld [vmem:[%s1754_s9 + $0x8] sm:$0xff]   ;;  %v1511_v58 = vld [vmem:[%s1754_s9 + $0x10] sm:$0xff]  }
  0x1c   : > { %v1512_v61 = vld [vmem:[%s1754_s9 + $0x58] sm:$0xff]  }
  0x1d   : > { %v1513_v0 = vld [vmem:[%s1754_s9 + $0x18] sm:$0xff]  }
  0x1f   : > { %549 = vrot.lane.b32.xlu1 %v1482_v10, %s1658_s27  ;;  %533 = vrot.lane.b32.xlu0 %v1483_v11, %s1658_s27 }
  0x23   : > { %551 = vrot.lane.b32.xlu1 %v1484_v12, %s1658_s27  ;;  %535 = vrot.lane.b32.xlu0 %v1485_v13, %s1658_s27  ;;  %v1514_v12 = vld [vmem:[%s1754_s9 + $0x60] sm:$0xff]  }
  0x27   : > { %661 = vrot.lane.b32.xlu1 %v1486_v14, %s1659_s6  ;;  %645 = vrot.lane.b32.xlu0 %v1487_v15, %s1659_s6  ;;  %v1515_v14 = vld [vmem:[%s1754_s9 + $0x20] sm:$0xff]  }
  0x2b   : > { %663 = vrot.lane.b32.xlu1 %v1488_v16, %s1659_s6  ;;  %647 = vrot.lane.b32.xlu0 %v1489_v17, %s1659_s6  ;;  %v1516_v17 = vld [vmem:[%s1754_s9 + $0x68] sm:$0xff]  }
  0x2f   : > { %553 = vrot.lane.b32.xlu1 %v1490_v18, %s1658_s27  ;;  %537 = vrot.lane.b32.xlu0 %v1491_v19, %s1658_s27 }
  0x33   : > { %555 = vrot.lane.b32.xlu1 %v1492_v20, %s1658_s27  ;;  %539 = vrot.lane.b32.xlu0 %v1493_v21, %s1658_s27  ;;  %v1517_v20 = vld [vmem:[%s1754_s9 + $0x28] sm:$0xff]  }
  0x37   : > { %665 = vrot.lane.b32.xlu1 %v1494_v22, %s1659_s6  ;;  %649 = vrot.lane.b32.xlu0 %v1495_v23, %s1659_s6 }
  0x3b   : > { %667 = vrot.lane.b32.xlu1 %v1496_v24, %s1659_s6  ;;  %651 = vrot.lane.b32.xlu0 %v1497_v25, %s1659_s6 }
  0x3f   : > { %557 = vrot.lane.b32.xlu1 %v1498_v26, %s1658_s27  ;;  %541 = vrot.lane.b32.xlu0 %v1499_v27, %s1658_s27 }
  0x43   : > { %559 = vrot.lane.b32.xlu1 %v1500_v28, %s1658_s27  ;;  %543 = vrot.lane.b32.xlu0 %v1501_v29, %s1658_s27 }
  0x47   : > { %669 = vrot.lane.b32.xlu1 %v1502_v30, %s1659_s6  ;;  %653 = vrot.lane.b32.xlu0 %v1503_v31, %s1659_s6 }
  0x4b   : > { %671 = vrot.lane.b32.xlu1 %v1504_v32, %s1659_s6  ;;  %655 = vrot.lane.b32.xlu0 %v1505_v33, %s1659_s6  ;;  %v1518_v32 = vld [vmem:[%s1754_s9 + $0x70] sm:$0xff]  }
  0x81   : > { %v532_v34 = vpop.permute.xlu1 %531  ;;  %v530_v35 = vpop.permute.xlu0 %529 }
  0x82   : > { %v676_v44 = vsel %vm673_vm1, %v1507_v38, %v530_v35  ;;  %v679_v50 = vsel %vm673_vm1, %v1506_v43, %v532_v34  ;;  %v1519_v34 = vld [vmem:[%s1754_s9 + $0x30] sm:$0xff]  }
  0x85   : > { %v548_v36 = vpop.permute.xlu1 %547  ;;  %v546_v39 = vpop.permute.xlu0 %545 }
  0x86   : > { %v700_v41 = vsel %vm673_vm1, %v1509_v37, %v546_v39  ;;  %v703_v48 = vsel %vm673_vm1, %v1508_v40, %v548_v36  ;;  %v1520_v37 = vld [vmem:[%s1754_s9 + $0x78] sm:$0xff]  }
  0x87   : > { %v1521_v40 = vld [vmem:[%s1754_s9 + $0x38] sm:$0xff]  }
  0x89   : > { %v658_v42 = vpop.permute.xlu1 %657  ;;  %v642_v45 = vpop.permute.xlu0 %641 }
  0x8a   : > { %v740_v46 = vsel %vm722_vm2, %v700_v41, %v658_v42  ;;  %v724_v47 = vsel %vm722_vm2, %v676_v44, %v642_v45 }
  0x8b   : > { %1444 = vmatprep.mubr.msk.bf16.mxu1 %vm763_vm3, %v740_v46  ;;  %1428 = vmatprep.mubr.msk.bf16.mxu0 %vm763_vm3, %v724_v47 }
  0x8d   : > { %v660_v49 = vpop.permute.xlu1 %659  ;;  %v644_v52 = vpop.permute.xlu0 %643 }
  0x8e   : > { %v742_v51 = vsel %vm722_vm2, %v703_v48, %v660_v49  ;;  %v726_v53 = vsel %vm722_vm2, %v679_v50, %v644_v52  ;;  %v1855_v50 = vld [vmem:[%s2094_s4] ss:$0 sm:$0xff] }
  0x8f   : > { %1445 = vmatmul.mubr.msk.bf16.vlgmr.msra.gmra.mxu1 %vm763_vm3, %v742_v51  ;;  %1429 = vmatmul.mubr.msk.bf16.vlgmr.msra.gmra.mxu0 %vm763_vm3, %v726_v53 }
  0x91   : > { %v550_v54 = vpop.permute.xlu1 %549  ;;  %v534_v55 = vpop.permute.xlu0 %533 }
  0x92   : > { %v706_v60 = vsel %vm673_vm1, %v1510_v56, %v550_v54  ;;  %v682_v63 = vsel %vm673_vm1, %v1511_v58, %v534_v55 }
  0x95   : > { %v552_v57 = vpop.permute.xlu1 %551  ;;  %v536_v59 = vpop.permute.xlu0 %535 }
  0x96   : > { %v709_v4 = vsel %vm673_vm1, %v1512_v61, %v552_v57  ;;  %v685_v6 = vsel %vm673_vm1, %v1513_v0, %v536_v59 }
  0x99   : > { %v662_v62 = vpop.permute.xlu1 %661  ;;  %v646_v2 = vpop.permute.xlu0 %645 }
  0x9a   : > { %v744_v1 = vsel %vm722_vm2, %v706_v60, %v662_v62  ;;  %v728_v3 = vsel %vm722_vm2, %v682_v63, %v646_v2 }
  0x9b   : > { %1448 = vmatprep.mubr.msk.bf16.mxu1 %vm763_vm3, %v744_v1  ;;  %1432 = vmatprep.mubr.msk.bf16.mxu0 %vm763_vm3, %v728_v3 }
  0x9d   : > { %v664_v5 = vpop.permute.xlu1 %663  ;;  %v648_v8 = vpop.permute.xlu0 %647 }
  0x9e   : > { %v746_v7 = vsel %vm722_vm2, %v709_v4, %v664_v5  ;;  %v730_v9 = vsel %vm722_vm2, %v685_v6, %v648_v8 }
  0x9f   : > { %1449 = vmatmul.mubr.msk.bf16.gmra.mxu1 %vm763_vm3, %v746_v7  ;;  %1433 = vmatmul.mubr.msk.bf16.gmra.mxu0 %vm763_vm3, %v730_v9 }
  0xa1   : > { %v554_v10 = vpop.permute.xlu1 %553  ;;  %v538_v11 = vpop.permute.xlu0 %537 }
  0xa2   : > { %v712_v16 = vsel %vm673_vm1, %v1514_v12, %v554_v10  ;;  %v688_v19 = vsel %vm673_vm1, %v1515_v14, %v538_v11 }
  0xa5   : > { %v556_v13 = vpop.permute.xlu1 %555  ;;  %v540_v15 = vpop.permute.xlu0 %539 }
  0xa6   : > { %v715_v24 = vsel %vm673_vm1, %v1516_v17, %v556_v13  ;;  %v691_v26 = vsel %vm673_vm1, %v1517_v20, %v540_v15 }
  0xa9   : > { %v666_v18 = vpop.permute.xlu1 %665  ;;  %v650_v22 = vpop.permute.xlu0 %649 }
  0xaa   : > { %v748_v21 = vsel %vm722_vm2, %v712_v16, %v666_v18  ;;  %v732_v23 = vsel %vm722_vm2, %v688_v19, %v650_v22 }
  0xab   : > { %1452 = vmatprep.mubr.msk.bf16.mxu1 %vm763_vm3, %v748_v21  ;;  %1436 = vmatprep.mubr.msk.bf16.mxu0 %vm763_vm3, %v732_v23 }
  0xad   : > { %v668_v25 = vpop.permute.xlu1 %667  ;;  %v652_v28 = vpop.permute.xlu0 %651 }
  0xae   : > { %v750_v27 = vsel %vm722_vm2, %v715_v24, %v668_v25  ;;  %v734_v29 = vsel %vm722_vm2, %v691_v26, %v652_v28 }
  0xaf   : > { %1453 = vmatmul.mubr.msk.bf16.gmra.mxu1 %vm763_vm3, %v750_v27  ;;  %1437 = vmatmul.mubr.msk.bf16.gmra.mxu0 %vm763_vm3, %v734_v29 }
  0xb1   : > { %v558_v30 = vpop.permute.xlu1 %557  ;;  %v542_v31 = vpop.permute.xlu0 %541 }
  0xb2   : > { %v718_v36 = vsel %vm673_vm1, %v1518_v32, %v558_v30  ;;  %v694_v39 = vsel %vm673_vm1, %v1519_v34, %v542_v31 }
  0xb5   : > { %v560_v33 = vpop.permute.xlu1 %559  ;;  %v544_v35 = vpop.permute.xlu0 %543 }
  0xb6   : > { %v721_v44 = vsel %vm673_vm1, %v1520_v37, %v560_v33  ;;  %v697_v46 = vsel %vm673_vm1, %v1521_v40, %v544_v35 }
  0xb9   : > { %v670_v38 = vpop.permute.xlu1 %669  ;;  %v654_v42 = vpop.permute.xlu0 %653 }
  0xba   : > { %v752_v41 = vsel %vm722_vm2, %v718_v36, %v670_v38  ;;  %v736_v43 = vsel %vm722_vm2, %v694_v39, %v654_v42 }
  0xbb   : > { %1456 = vmatprep.mubr.msk.bf16.mxu1 %vm763_vm3, %v752_v41  ;;  %1440 = vmatprep.mubr.msk.bf16.mxu0 %vm763_vm3, %v736_v43 }
  0xbd   : > { %v672_v45 = vpop.permute.xlu1 %671  ;;  %v656_v48 = vpop.permute.xlu0 %655 }
  0xbe   : > { %v754_v47 = vsel %vm722_vm2, %v721_v44, %v672_v45  ;;  %v738_v49 = vsel %vm722_vm2, %v697_v46, %v656_v48 }
  0xbf   : > { %1457 = vmatmul.mubr.msk.bf16.gmra.mxu1 %vm763_vm3, %v754_v47  ;;  %1441 = vmatmul.mubr.msk.bf16.gmra.mxu0 %vm763_vm3, %v738_v49 }
 0x14f   : > { %v1446_v51 = vpop.f32.mrf.mxu1  ;;  %v1430_v52 = vpop.f32.mrf.mxu0 }
 0x150   : > { %v1858_v53 = vadd.f32 %v1446_v51, %v1855_v50  ;;  %v1861_v54 = vadd.f32 %v1430_v52, %v1855_v50 }
 0x151   : > { %v898_v55 = vpop.f32.mrf.mxu1  ;;  %v834_v57 = vpop.f32.mrf.mxu0 }
 0x152   : > { %v1393_v56 = vmul.f32 -1.442695, %v1858_v53  ;;  %v1865_v58 = vadd.f32 %v1855_v50, %v898_v55  ;;  %v1377_v59 = vmul.f32 -1.442695, %v1861_v54  ;;  %v1869_v60 = vadd.f32 %v1855_v50, %v834_v57 }
 0x153   : > { %v1447_v61 = vpop.f32.mrf.mxu1  ;;  %v1431_v63 = vpop.f32.mrf.mxu0 }
 0x154   : > { %1522 = vpow2.f32 %v1393_v56  ;;  %v1391_v62 = vmul.f32 -1.442695, %v1865_v58  ;;  %v1873_v0 = vadd.f32 %v1447_v61, %v1855_v50  ;;  %v1375_v1 = vmul.f32 -1.442695, %v1869_v60 }
 0x155   : > { %1524 = vpow2.f32 %v1377_v59  ;;  %v1877_v2 = vadd.f32 %v1431_v63, %v1855_v50  ;;  %v901_v3 = vpop.f32.mrf.mxu1  ;;  %v837_v5 = vpop.f32.mrf.mxu0 }
 0x156   : > { %1526 = vpow2.f32 %v1391_v62  ;;  %v1394_v4 = vmul.f32 -1.442695, %v1873_v0  ;;  %v1881_v6 = vadd.f32 %v1855_v50, %v901_v3  ;;  %v1885_v8 = vadd.f32 %v1855_v50, %v837_v5 }
 0x157   : > { %1528 = vpow2.f32 %v1375_v1  ;;  %v1378_v7 = vmul.f32 -1.442695, %v1877_v2 }
 0x158   : > { %1530 = vpow2.f32 %v1394_v4  ;;  %v1392_v9 = vmul.f32 -1.442695, %v1881_v6  ;;  %v1376_v10 = vmul.f32 -1.442695, %v1885_v8 }
 0x159   : > { %1532 = vpow2.f32 %v1378_v7 }
 0x15a   : > { %1534 = vpow2.f32 %v1392_v9 }
 0x15b   : > { %1536 = vpow2.f32 %v1376_v10 }
 0x15f   : > { %v1450_v11 = vpop.f32.mrf.mxu1  ;;  %v1434_v12 = vpop.f32.mrf.mxu0 }
 0x160   : > { %v1890_v22 = vadd.f32 %v1434_v12, %v1855_v50  ;;  %v1893_v27 = vadd.f32 %v1450_v11, %v1855_v50 }
 0x161   : > { %v1523_v13 = vpop.eup %1522  ;;  %v914_v14 = vpop.f32.mrf.mxu1 }
 0x162   : > { %v1525_v15 = vpop.eup %1524  ;;  %v1075_v16 = vadd.f32 1.0, %v1523_v13  ;;  %v850_v17 = vpop.f32.mrf.mxu0  ;;  %v1899_v33 = vadd.f32 %v1855_v50, %v914_v14  ;;  %v1381_v37 = vmul.f32 -1.442695, %v1890_v22  ;;  %v1397_v41 = vmul.f32 -1.442695, %v1893_v27 }
 0x163   : > { %v1527_v18 = vpop.eup %1526  ;;  %v1059_v19 = vadd.f32 1.0, %v1525_v15  ;;  %v1451_v24 = vpop.f32.mrf.mxu1  ;;  %v1896_v30 = vadd.f32 %v1855_v50, %v850_v17 }
 0x164   : > { %v1529_v20 = vpop.eup %1528  ;;  %1538 = vrcp.f32 %v1075_v16  ;;  %v1073_v21 = vadd.f32 1.0, %v1527_v18  ;;  %v1435_v23 = vpop.f32.mrf.mxu0  ;;  %v1907_v42 = vadd.f32 %v1451_v24, %v1855_v50  ;;  %v1395_v45 = vmul.f32 -1.442695, %v1899_v33 }
 0x165   : > { %v1531_v25 = vpop.eup %1530  ;;  %1540 = vrcp.f32 %v1059_v19  ;;  %v1057_v26 = vadd.f32 1.0, %v1529_v20  ;;  %v1903_v38 = vadd.f32 %v1435_v23, %v1855_v50  ;;  %v917_v39 = vpop.f32.mrf.mxu1  ;;  %v1379_v43 = vmul.f32 -1.442695, %v1896_v30 }
 0x166   : > { %v1533_v28 = vpop.eup %1532  ;;  %1542 = vrcp.f32 %v1073_v21  ;;  %v1076_v29 = vadd.f32 1.0, %v1531_v25  ;;  %v853_v34 = vpop.f32.mrf.mxu0  ;;  %v1915_v46 = vadd.f32 %v1855_v50, %v917_v39  ;;  %v1398_v48 = vmul.f32 -1.442695, %v1907_v42 }
 0x167   : > { %v1535_v31 = vpop.eup %1534  ;;  %1544 = vrcp.f32 %v1057_v26  ;;  %v1060_v32 = vadd.f32 1.0, %v1533_v28  ;;  %v1911_v44 = vadd.f32 %v1855_v50, %v853_v34  ;;  %v1382_v47 = vmul.f32 -1.442695, %v1903_v38 }
 0x168   : > { %v1537_v35 = vpop.eup %1536  ;;  %1546 = vrcp.f32 %v1076_v29  ;;  %v1074_v36 = vadd.f32 1.0, %v1535_v31  ;;  %v1396_v51 = vmul.f32 -1.442695, %v1915_v46 }
 0x169   : > { %1548 = vrcp.f32 %v1060_v32  ;;  %v1058_v40 = vadd.f32 1.0, %v1537_v35  ;;  %v1380_v49 = vmul.f32 -1.442695, %v1911_v44 }
 0x16a   : > { %1550 = vrcp.f32 %v1074_v36 }
 0x16b   : > { %1552 = vrcp.f32 %v1058_v40 }
 0x16c   : > { %1554 = vpow2.f32 %v1381_v37 }
 0x16d   : > { %1556 = vpow2.f32 %v1397_v41 }
 0x16e   : > { %1558 = vpow2.f32 %v1379_v43 }
 0x16f   : > { %1560 = vpow2.f32 %v1395_v45  ;;  %v1454_v52 = vpop.f32.mrf.mxu1  ;;  %v1438_v55 = vpop.f32.mrf.mxu0 }
 0x170   : > { %1562 = vpow2.f32 %v1382_v47  ;;  %v1923_v56 = vadd.f32 %v1454_v52, %v1855_v50  ;;  %v1931_v59 = vadd.f32 %v1438_v55, %v1855_v50 }
 0x171   : > { %v1539_v57 = vpop.eup %1538  ;;  %1564 = vpow2.f32 %v1398_v48  ;;  %v930_v61 = vpop.f32.mrf.mxu1 }
 0x172   : > { %v1541_v62 = vpop.eup %1540  ;;  %v1171_v63 = vmul.f32 %v1539_v57, %v1858_v53  ;;  %1566 = vpow2.f32 %v1380_v49  ;;  %v1401_v1 = vmul.f32 -1.442695, %v1923_v56  ;;  %v866_v3 = vpop.f32.mrf.mxu0  ;;  %v1936_v4 = vadd.f32 %v1855_v50, %v930_v61 }
 0x173   : > { %v1543_v5 = vpop.eup %1542  ;;  %v1155_v7 = vmul.f32 %v1541_v62, %v1861_v54  ;;  %1568 = vpow2.f32 %v1396_v51  ;;  %v1385_v9 = vmul.f32 -1.442695, %v1931_v59  ;;  %v1941_v10 = vadd.f32 %v1855_v50, %v866_v3  ;;  %v1455_v11 = vpop.f32.mrf.mxu1 }
 0x174   : > { %v1545_v53 = vpop.eup %1544  ;;  %1203 = vst.msk [vmem:[%s1928_s15 + $0x90] sm:$0xff] %vm722_vm2, %v1171_v63  ;;  %v1169_v12 = vmul.f32 %v1543_v5, %v1865_v58  ;;  %1570 = vpow2.f32 %v1401_v1  ;;  %v1399_v13 = vmul.f32 -1.442695, %v1936_v4  ;;  %v1439_v14 = vpop.f32.mrf.mxu0  ;;  %v1948_v15 = vadd.f32 %v1455_v11, %v1855_v50 }
 0x175   : > { %v1547_v54 = vpop.eup %1546  ;;  %1187 = vst.msk [vmem:[%s1928_s15 + $0x10] sm:$0xff] %vm722_vm2, %v1155_v7  ;;  %v1153_v16 = vmul.f32 %v1545_v53, %v1869_v60  ;;  %1572 = vpow2.f32 %v1385_v9  ;;  %v1383_v17 = vmul.f32 -1.442695, %v1941_v10  ;;  %v1955_v18 = vadd.f32 %v1439_v14, %v1855_v50  ;;  %v933_v58 = vpop.f32.mrf.mxu1 }
 0x176   : > { %v1549_v19 = vpop.eup %1548  ;;  %1201 = vst.msk [vmem:[%s1928_s15 + $0x80] sm:$0xff] %vm722_vm2, %v1169_v12  ;;  %v1172_v20 = vmul.f32 %v1547_v54, %v1873_v0  ;;  %1574 = vpow2.f32 %v1399_v13  ;;  %v1402_v21 = vmul.f32 -1.442695, %v1948_v15  ;;  %v869_v23 = vpop.f32.mrf.mxu0  ;;  %v1962_v60 = vadd.f32 %v1855_v50, %v933_v58 }
 0x177   : > { %v1551_v24 = vpop.eup %1550  ;;  %1185 = vst.msk [vmem:[%s1928_s15] sm:$0xff] %vm722_vm2, %v1153_v16  ;;  %v1156_v25 = vmul.f32 %v1549_v19, %v1877_v2  ;;  %1576 = vpow2.f32 %v1383_v17  ;;  %v1386_v26 = vmul.f32 -1.442695, %v1955_v18  ;;  %v1969_v28 = vadd.f32 %v1855_v50, %v869_v23 }
 0x178   : > { %v1553_v0 = vpop.eup %1552  ;;  %1204 = vst.msk [vmem:[%s1928_s15 + $0x98] sm:$0xff] %vm722_vm2, %v1172_v20  ;;  %v1170_v29 = vmul.f32 %v1551_v24, %v1881_v6  ;;  %1578 = vpow2.f32 %v1402_v21  ;;  %v1400_v31 = vmul.f32 -1.442695, %v1962_v60 }
 0x179   : > { %v1555_v32 = vpop.eup %1554  ;;  %1188 = vst.msk [vmem:[%s1928_s15 + $0x18] sm:$0xff] %vm722_vm2, %v1156_v25  ;;  %v1154_v2 = vmul.f32 %v1553_v0, %v1885_v8  ;;  %1580 = vpow2.f32 %v1386_v26  ;;  %v1384_v34 = vmul.f32 -1.442695, %v1969_v28 }
 0x17a   : > { %v1557_v35 = vpop.eup %1556  ;;  %1202 = vst.msk [vmem:[%s1928_s15 + $0x88] sm:$0xff] %vm722_vm2, %v1170_v29  ;;  %v1063_v36 = vadd.f32 1.0, %v1555_v32  ;;  %1582 = vpow2.f32 %v1400_v31 }
 0x17b   : > { %v1559_v37 = vpop.eup %1558  ;;  %1186 = vst.msk [vmem:[%s1928_s15 + $0x8] sm:$0xff] %vm722_vm2, %v1154_v2  ;;  %v1079_v6 = vadd.f32 1.0, %v1557_v35  ;;  %1584 = vpow2.f32 %v1384_v34 }
 0x17c   : > { %v1561_v39 = vpop.eup %1560  ;;  %1586 = vrcp.f32 %v1063_v36  ;;  %v1061_v40 = vadd.f32 1.0, %v1559_v37 }
 0x17d   : > { %v1563_v41 = vpop.eup %1562  ;;  %1588 = vrcp.f32 %v1079_v6  ;;  %v1077_v43 = vadd.f32 1.0, %v1561_v39 }
 0x17e   : > { %v1565_v8 = vpop.eup %1564  ;;  %1590 = vrcp.f32 %v1061_v40  ;;  %v1064_v45 = vadd.f32 1.0, %v1563_v41 }
 0x17f   : > { %v1567_v47 = vpop.eup %1566  ;;  %1592 = vrcp.f32 %v1077_v43  ;;  %v1080_v48 = vadd.f32 1.0, %v1565_v8  ;;  %v1458_v49 = vpop.f32.mrf.mxu1 }
 0x180   : > { %v1569_v51 = vpop.eup %1568  ;;  %1594 = vrcp.f32 %v1064_v45  ;;  %v1062_v52 = vadd.f32 1.0, %v1567_v47  ;;  %v1442_v55 = vpop.f32.mrf.mxu0  ;;  %v1987_v16 = vadd.f32 %v1458_v49, %v1855_v50 }
 0x181   : > { %v1571_v57 = vpop.eup %1570  ;;  %1596 = vrcp.f32 %v1080_v48  ;;  %v1078_v61 = vadd.f32 1.0, %v1569_v51  ;;  %v946_v62 = vpop.f32.mrf.mxu1  ;;  %v1984_v53 = vadd.f32 %v1442_v55, %v1855_v50 }
 0x182   : > { %v1573_v63 = vpop.eup %1572  ;;  %1598 = vrcp.f32 %v1062_v52  ;;  %v1083_v1 = vadd.f32 1.0, %v1571_v57  ;;  %v882_v3 = vpop.f32.mrf.mxu0  ;;  %v1993_v23 = vadd.f32 %v1855_v50, %v946_v62  ;;  %v1405_v34 = vmul.f32 -1.442695, %v1987_v16 }
 0x183   : > { %v1575_v5 = vpop.eup %1574  ;;  %1600 = vrcp.f32 %v1078_v61  ;;  %v1067_v7 = vadd.f32 1.0, %v1573_v63  ;;  %v1459_v13 = vpop.f32.mrf.mxu1  ;;  %v1990_v19 = vadd.f32 %v1855_v50, %v882_v3  ;;  %v1389_v0 = vmul.f32 -1.442695, %v1984_v53 }
 0x184   : > { %v1577_v9 = vpop.eup %1576  ;;  %1602 = vrcp.f32 %v1083_v1  ;;  %v1081_v11 = vadd.f32 1.0, %v1575_v5  ;;  %v1443_v12 = vpop.f32.mrf.mxu0  ;;  %v2001_v35 = vadd.f32 %v1459_v13, %v1855_v50  ;;  %v1403_v43 = vmul.f32 -1.442695, %v1993_v23 }
 0x185   : > { %v1579_v14 = vpop.eup %1578  ;;  %1604 = vrcp.f32 %v1067_v7  ;;  %v1065_v54 = vadd.f32 1.0, %v1577_v9  ;;  %v1997_v29 = vadd.f32 %v1443_v12, %v1855_v50  ;;  %v949_v31 = vpop.f32.mrf.mxu1  ;;  %v1387_v6 = vmul.f32 -1.442695, %v1990_v19 }
 0x186   : > { %v1581_v17 = vpop.eup %1580  ;;  %1606 = vrcp.f32 %v1081_v11  ;;  %v1084_v58 = vadd.f32 1.0, %v1579_v14  ;;  %v885_v24 = vpop.f32.mrf.mxu0  ;;  %v2011_v8 = vadd.f32 %v1855_v50, %v949_v31  ;;  %v1406_v49 = vmul.f32 -1.442695, %v2001_v35 }
 0x187   : > { %v1583_v20 = vpop.eup %1582  ;;  %1608 = vrcp.f32 %v1065_v54  ;;  %v1068_v21 = vadd.f32 1.0, %v1581_v17  ;;  %v2006_v39 = vadd.f32 %v1855_v50, %v885_v24  ;;  %v1390_v47 = vmul.f32 -1.442695, %v1997_v29 }
 0x188   : > { %v1585_v25 = vpop.eup %1584  ;;  %1610 = vrcp.f32 %v1084_v58  ;;  %v1082_v26 = vadd.f32 1.0, %v1583_v20 }
 0x189   : > { %v1587_v32 = vpop.eup %1586  ;;  %1612 = vrcp.f32 %v1068_v21  ;;  %v1066_v2 = vadd.f32 1.0, %v1585_v25 }
 0x18a   : > { %v1589_v36 = vpop.eup %1588  ;;  %v1159_v37 = vmul.f32 %v1587_v32, %v1890_v22  ;;  %1614 = vrcp.f32 %v1082_v26 }
 0x18b   : > { %v1591_v40 = vpop.eup %1590  ;;  %v1175_v41 = vmul.f32 %v1589_v36, %v1893_v27  ;;  %1616 = vrcp.f32 %v1066_v2 }
 0x18c   : > { %v1593_v45 = vpop.eup %1592  ;;  %1191 = vst.msk [vmem:[%s1928_s15 + $0x30] sm:$0xff] %vm722_vm2, %v1159_v37  ;;  %v1157_v22 = vmul.f32 %v1591_v40, %v1896_v30  ;;  %1618 = vpow2.f32 %v1389_v0  ;;  %v1388_v30 = vmul.f32 -1.442695, %v2006_v39 }
 0x18d   : > { %v1595_v48 = vpop.eup %1594  ;;  %1207 = vst.msk [vmem:[%s1928_s15 + $0xb0] sm:$0xff] %vm722_vm2, %v1175_v41  ;;  %v1173_v27 = vmul.f32 %v1593_v45, %v1899_v33  ;;  %1620 = vpow2.f32 %v1405_v34  ;;  %v1404_v33 = vmul.f32 -1.442695, %v2011_v8 }
 0x18e   : > { %v1597_v50 = vpop.eup %1596  ;;  %1189 = vst.msk [vmem:[%s1928_s15 + $0x20] sm:$0xff] %vm722_vm2, %v1157_v22  ;;  %v1160_v51 = vmul.f32 %v1595_v48, %v1903_v38  ;;  %1622 = vpow2.f32 %v1387_v6 }
 0x18f   : > { %v1599_v52 = vpop.eup %1598  ;;  %1205 = vst.msk [vmem:[%s1928_s15 + $0xa0] sm:$0xff] %vm722_vm2, %v1173_v27  ;;  %v1176_v55 = vmul.f32 %v1597_v50, %v1907_v42  ;;  %1624 = vpow2.f32 %v1403_v43 }
 0x190   : > { %v1601_v57 = vpop.eup %1600  ;;  %1192 = vst.msk [vmem:[%s1928_s15 + $0x38] sm:$0xff] %vm722_vm2, %v1160_v51  ;;  %v1158_v61 = vmul.f32 %v1599_v52, %v1911_v44  ;;  %1626 = vpow2.f32 %v1390_v47 }
 0x191   : > { %v1603_v38 = vpop.eup %1602  ;;  %1208 = vst.msk [vmem:[%s1928_s15 + $0xb8] sm:$0xff] %vm722_vm2, %v1176_v55  ;;  %v1174_v62 = vmul.f32 %v1601_v57, %v1915_v46  ;;  %1628 = vpow2.f32 %v1406_v49 }
 0x192   : > { %v1605_v42 = vpop.eup %1604  ;;  %1190 = vst.msk [vmem:[%s1928_s15 + $0x28] sm:$0xff] %vm722_vm2, %v1158_v61  ;;  %v1179_v63 = vmul.f32 %v1603_v38, %v1923_v56  ;;  %1630 = vpow2.f32 %v1388_v30 }
 0x193   : > { %v1607_v1 = vpop.eup %1606  ;;  %1206 = vst.msk [vmem:[%s1928_s15 + $0xa8] sm:$0xff] %vm722_vm2, %v1174_v62  ;;  %v1163_v44 = vmul.f32 %v1605_v42, %v1931_v59  ;;  %1632 = vpow2.f32 %v1404_v33 }
 0x194   : > { %v1609_v3 = vpop.eup %1608  ;;  %1211 = vst.msk [vmem:[%s1928_s15 + $0xd0] sm:$0xff] %vm722_vm2, %v1179_v63  ;;  %v1177_v46 = vmul.f32 %v1607_v1, %v1936_v4 }
 0x195   : > { %v1611_v5 = vpop.eup %1610  ;;  %1195 = vst.msk [vmem:[%s1928_s15 + $0x50] sm:$0xff] %vm722_vm2, %v1163_v44  ;;  %v1161_v56 = vmul.f32 %v1609_v3, %v1941_v10 }
 0x196   : > { %v1613_v7 = vpop.eup %1612  ;;  %1209 = vst.msk [vmem:[%s1928_s15 + $0xc0] sm:$0xff] %vm722_vm2, %v1177_v46  ;;  %v1180_v9 = vmul.f32 %v1611_v5, %v1948_v15 }
 0x197   : > { %v1615_v59 = vpop.eup %1614  ;;  %1193 = vst.msk [vmem:[%s1928_s15 + $0x40] sm:$0xff] %vm722_vm2, %v1161_v56  ;;  %v1164_v11 = vmul.f32 %v1613_v7, %v1955_v18 }
 0x198   : > { %v1617_v12 = vpop.eup %1616  ;;  %1212 = vst.msk [vmem:[%s1928_s15 + $0xd8] sm:$0xff] %vm722_vm2, %v1180_v9  ;;  %v1178_v4 = vmul.f32 %v1615_v59, %v1962_v60 }
 0x199   : > { %v1619_v13 = vpop.eup %1618  ;;  %1196 = vst.msk [vmem:[%s1928_s15 + $0x58] sm:$0xff] %vm722_vm2, %v1164_v11  ;;  %v1162_v10 = vmul.f32 %v1617_v12, %v1969_v28 }
 0x19a   : > { %v1621_v14 = vpop.eup %1620  ;;  %1210 = vst.msk [vmem:[%s1928_s15 + $0xc8] sm:$0xff] %vm722_vm2, %v1178_v4  ;;  %v1071_v54 = vadd.f32 1.0, %v1619_v13 }
 0x19b   : > { %v1623_v15 = vpop.eup %1622  ;;  %1194 = vst.msk [vmem:[%s1928_s15 + $0x48] sm:$0xff] %vm722_vm2, %v1162_v10  ;;  %v1087_v17 = vadd.f32 1.0, %v1621_v14 }
 0x19c   : > { %v1625_v58 = vpop.eup %1624  ;;  %1634 = vrcp.f32 %v1071_v54  ;;  %v1069_v18 = vadd.f32 1.0, %v1623_v15 }
 0x19d   : > { %v1627_v20 = vpop.eup %1626  ;;  %1636 = vrcp.f32 %v1087_v17  ;;  %v1085_v21 = vadd.f32 1.0, %v1625_v58 }
 0x19e   : > { %v1629_v60 = vpop.eup %1628  ;;  %1638 = vrcp.f32 %v1069_v18  ;;  %v1072_v24 = vadd.f32 1.0, %v1627_v20 }
 0x19f   : > { %v1631_v25 = vpop.eup %1630  ;;  %1640 = vrcp.f32 %v1085_v21  ;;  %v1088_v28 = vadd.f32 1.0, %v1629_v60 }
 0x1a0   : > { %v1633_v26 = vpop.eup %1632  ;;  %1642 = vrcp.f32 %v1072_v24  ;;  %v1070_v0 = vadd.f32 1.0, %v1631_v25 }
 0x1a1   : > { %1644 = vrcp.f32 %v1088_v28  ;;  %v1086_v31 = vadd.f32 1.0, %v1633_v26 }
 0x1a2   : > { %1646 = vrcp.f32 %v1070_v0 }
 0x1a3   : > { %1648 = vrcp.f32 %v1086_v31 }
 0x1a9   : > { %v1635_v32 = vpop.eup %1634 }
 0x1aa   : > { %v1637_v2 = vpop.eup %1636  ;;  %v1167_v34 = vmul.f32 %v1635_v32, %v1984_v53 }
 0x1ab   : > { %v1639_v36 = vpop.eup %1638  ;;  %v1183_v37 = vmul.f32 %v1637_v2, %v1987_v16 }
 0x1ac   : > { %v1641_v6 = vpop.eup %1640  ;;  %1199 = vst.msk [vmem:[%s1928_s15 + $0x70] sm:$0xff] %vm722_vm2, %v1167_v34  ;;  %v1165_v40 = vmul.f32 %v1639_v36, %v1990_v19 }
 0x1ad   : > { %v1643_v41 = vpop.eup %1642  ;;  %1215 = vst.msk [vmem:[%s1928_s15 + $0xf0] sm:$0xff] %vm722_vm2, %v1183_v37  ;;  %v1181_v43 = vmul.f32 %v1641_v6, %v1993_v23 }
 0x1ae   : > { %v1645_v45 = vpop.eup %1644  ;;  %1197 = vst.msk [vmem:[%s1928_s15 + $0x60] sm:$0xff] %vm722_vm2, %v1165_v40  ;;  %v1168_v53 = vmul.f32 %v1643_v41, %v1997_v29 }
 0x1af   : > { %v1647_v22 = vpop.eup %1646  ;;  %1213 = vst.msk [vmem:[%s1928_s15 + $0xe0] sm:$0xff] %vm722_vm2, %v1181_v43  ;;  %v1184_v16 = vmul.f32 %v1645_v45, %v2001_v35 }
 0x1b0   : > { %v1649_v47 = vpop.eup %1648  ;;  %1200 = vst.msk [vmem:[%s1928_s15 + $0x78] sm:$0xff] %vm722_vm2, %v1168_v53  ;;  %v1166_v19 = vmul.f32 %v1647_v22, %v2006_v39 }
 0x1b1   : > { %1216 = vst.msk [vmem:[%s1928_s15 + $0xf8] sm:$0xff] %vm722_vm2, %v1184_v16  ;;  %v1182_v48 = vmul.f32 %v1649_v47, %v2011_v8 }
 0x1b2   : > { %1198 = vst.msk [vmem:[%s1928_s15 + $0x68] sm:$0xff] %vm722_vm2, %v1166_v19 }
 0x1b3   : > { %1214 = vst.msk [vmem:[%s1928_s15 + $0xe8] sm:$0xff] %vm722_vm2, %v1182_v48 }
 0x1b4 PF: > { %s15_s18 = sadd.s32 1, %s1656_s18  }
 0x1b5   : > { %p12_p4 = scmp.ge.s32.totalorder %s15_s18, 4  }
 0x1b7   :  { %14 = sbr.rel (!%p12_p4) target bundleno = 1 (0x1), region = 76 }

</bundles_post_ra>
